<compile_context>
chip_gen: v7x
topology: tpu7x:2x2x1
jax: 0.10.0
libtpu: 0.0.40
codegen_flags: <defaults>
</compile_context>

<pallas_src>
import jax
import jax.numpy as jnp
from jax import lax
from jax.experimental import pallas as pl
from jax.experimental.pallas import tpu as pltpu

NEG_INF = float("-inf")


def _spp_kernel(x_ref, o_ref, wpad_ref):
    """x_ref: (1, H, W, cg)   o_ref: (1, 4, H, W, cg)   wpad_ref: (H, W+4, cg)."""
    _, H, W, cg = x_ref.shape
    dtype = x_ref.dtype

    # Only the 2-wide left/right column strips of the W-pass scratch need to be
    # -inf; the pooling passes never touch them and the centre is fully
    # rewritten by every row pass.  Refill every grid step (scratch state must
    # not be assumed to carry across steps under "parallel" megacore sharding).
    border = jnp.full((H, 2, cg), NEG_INF, dtype=dtype)
    wpad_ref[:, 0:2, :] = border
    wpad_ref[:, W + 2:W + 4, :] = border

    def pool5(read, out_slot):
        """5x5, stride-1, 'same' (-inf padded) max pool -> o_ref[0, out_slot].

        `read(lo, hi)` returns source rows [lo, hi), shape (hi - lo, W, cg).
        """
        # ---- H (row) pass: straight from the source ref (no staging copy). ----
        # Interior rows [2, H-2): full 5-tap max of H-shifted slices.
        m = jnp.maximum(read(0, H - 4), read(1, H - 3))
        m = jnp.maximum(m, read(2, H - 2))
        m = jnp.maximum(m, read(3, H - 1))
        m = jnp.maximum(m, read(4, H))
        wpad_ref[2:H - 2, 2:W + 2, :] = m
        # Two boundary rows at each end get shorter maxes (window clipped).
        top0 = jnp.maximum(jnp.maximum(read(0, 1), read(1, 2)), read(2, 3))
        top1 = jnp.maximum(top0, read(3, 4))
        bot0 = jnp.maximum(jnp.maximum(read(H - 1, H), read(H - 2, H - 1)),
                           read(H - 3, H - 2))
        bot1 = jnp.maximum(bot0, read(H - 4, H - 3))
        wpad_ref[0:1, 2:W + 2, :] = top0
        wpad_ref[1:2, 2:W + 2, :] = top1
        wpad_ref[H - 1:H, 2:W + 2, :] = bot0
        wpad_ref[H - 2:H - 1, 2:W + 2, :] = bot1

        # ---- W (column) pass: 5-tap max over the -inf-column-padded scratch. ----
        c = jnp.maximum(wpad_ref[:, 0:W, :], wpad_ref[:, 1:W + 1, :])
        c = jnp.maximum(c, wpad_ref[:, 2:W + 2, :])
        c = jnp.maximum(c, wpad_ref[:, 3:W + 3, :])
        c = jnp.maximum(c, wpad_ref[:, 4:W + 4, :])
        o_ref[0, out_slot] = c

    # Cascade: p5 = pool5(x); p9 = pool5(p5); p13 = pool5(p9).  Each stage reads
    # its source directly out of the output slab the previous stage wrote.
    pool5(lambda lo, hi: x_ref[0, lo:hi, :, :], 0)
    pool5(lambda lo, hi: o_ref[0, 0, lo:hi, :, :], 1)
    pool5(lambda lo, hi: o_ref[0, 1, lo:hi, :, :], 2)

    # Passthrough chunk of torch.cat([f1, f2, f3, x], dim=1).
    o_ref[0, 3] = x_ref[0]


def _pick_channel_group(C):
    """Lane-dense channel-group width (prefers >= 2 grid steps for v7x)."""
    if C % 128 != 0:
        return C                      # ragged / tiny C: one full-width group
    if C % 256 == 0 and C > 256:
        return 256
    return 128


def spp_pallas_features(x_nhwc):
    """x_nhwc: (N, H, W, C) float -> (N, 4, H, W, C); features = [p5, p9, p13, x]."""
    assert jnp.issubdtype(x_nhwc.dtype, jnp.floating), "SPP kernel expects float input"
    N, H, W, C = x_nhwc.shape
    assert H >= 5 and W >= 5, "boundary handling assumes spatial dims >= 5"

    cg = _pick_channel_group(C)
    G = C // cg
    itemsize = jnp.dtype(x_nhwc.dtype).itemsize

    return pl.pallas_call(
        _spp_kernel,
        out_shape=jax.ShapeDtypeStruct((N, 4, H, W, C), x_nhwc.dtype),
        grid_spec=pltpu.PrefetchScalarGridSpec(
            num_scalar_prefetch=0,
            grid=(N, G),
            in_specs=[pl.BlockSpec((1, H, W, cg), lambda n, g: (n, 0, 0, g))],
            out_specs=pl.BlockSpec((1, 4, H, W, cg), lambda n, g: (n, 0, 0, 0, g)),
            scratch_shapes=[pltpu.VMEM((H, W + 4, cg), x_nhwc.dtype)],
        ),
        compiler_params=pltpu.CompilerParams(
            dimension_semantics=("parallel", "parallel"),
        ),
        cost_estimate=pl.CostEstimate(
            flops=0,
            transcendentals=0,
            bytes_accessed=5 * N * H * W * C * itemsize,  # 1x in + 4x out
        ),
    )(x_nhwc)


def spp_pallas(x):
    """x: (N, C, H, W) float -> (N, 4*C, H, W), matching the PyTorch SPP module."""
    N, C, H, W = x.shape
    x_nhwc = jnp.transpose(x, (0, 2, 3, 1))               # (N, H, W, C)
    feats = spp_pallas_features(x_nhwc)                    # (N, 4, H, W, C)
    # (N, 4, H, W, C) -> (N, 4, C, H, W) -> (N, 4C, H, W); feature j, channel c
    # lands at torch channel j*C + c, matching torch.cat([f1, f2, f3, x], dim=1).
    return jnp.transpose(feats, (0, 1, 4, 2, 3)).reshape(N, 4 * C, H, W)


def spp_reference(x):
    """Pure-JAX reference (lax.reduce_window) matching nn.MaxPool2d (-inf pad)."""
    def pool(v, k):
        p = k // 2
        return lax.reduce_window(
            v, NEG_INF, lax.max,
            window_dimensions=(1, 1, k, k),
            window_strides=(1, 1, 1, 1),
            padding=[(0, 0), (0, 0), (p, p), (p, p)],
        )
    return jnp.concatenate([pool(x, 5), pool(x, 9), pool(x, 13), x], axis=1)


if __name__ == "__main__":
    # SPP has no learnable parameters (pure max pooling + concat).
    key = jax.random.PRNGKey(0)

    # Small smoke test.
    x = jax.random.normal(key, (2, 4, 16, 16), dtype=jnp.float32)
    y = jax.block_until_ready(spp_pallas(x))
    y_ref = jax.block_until_ready(spp_reference(x))
    assert y.shape == (2, 16, 16, 16), y.shape
    assert jnp.allclose(y, y_ref), "Pallas SPP mismatch vs reference (small shape)"

    # Production-like YOLOv4 SPP shape: exercises lane-dense channel groups
    # (C=512 -> cg=256, 2 parallel grid steps) and odd spatial size 19.
    x2 = jax.random.normal(jax.random.PRNGKey(0), (1, 512, 19, 19), dtype=jnp.float32)
    y2 = jax.block_until_ready(spp_pallas(x2))
    y2_ref = jax.block_until_ready(spp_reference(x2))
    assert y2.shape == (1, 2048, 19, 19), y2.shape
    assert jnp.allclose(y2, y2_ref), "Pallas SPP mismatch vs reference (YOLO shape)"

    print("KERNEL_OK")
</pallas_src>

<mosaic_0001>
module attributes {stable_mosaic.version = 11 : i64} {
  func.func @_spp_kernel(%arg0: i32, %arg1: i32, %arg2: memref<1x16x16x4xf32, #tpu.memory_space<vmem>>, %arg3: memref<1x4x16x16x4xf32, #tpu.memory_space<vmem>>, %arg4: memref<16x20x4xf32, #tpu.memory_space<vmem>>) attributes {dimension_semantics = [#tpu.dimension_semantics<parallel>, #tpu.dimension_semantics<parallel>], iteration_bounds = array<i64: 2, 1>, scalar_prefetch = 0 : i64, scratch_operands = 1 : i64, tpu.core_type = #tpu.core_type<tc>, window_params = [{transform_indices = @transform_0, window_bounds = array<i64: 1, 16, 16, 4>}, {transform_indices = @transform_1, window_bounds = array<i64: 1, 4, 16, 16, 4>}]} {
    %cst = arith.constant 0xFF800000 : f32
    %0 = vector.broadcast %cst : f32 to vector<16x2x4xf32>
    %c0 = arith.constant 0 : index
    %c0_0 = arith.constant 0 : index
    %c0_1 = arith.constant 0 : index
    %1 = vector.load %arg4[%c0, %c0_0, %c0_1] : memref<16x20x4xf32, #tpu.memory_space<vmem>>, vector<16x2x4xf32>
    tpu.vector_store %arg4[%c0, %c0_0, %c0_1], %0 {strides = array<i32>} : memref<16x20x4xf32, #tpu.memory_space<vmem>>, vector<16x2x4xf32>,
    %c0_2 = arith.constant 0 : index
    %c18 = arith.constant 18 : index
    %c0_3 = arith.constant 0 : index
    %2 = vector.load %arg4[%c0_2, %c18, %c0_3] : memref<16x20x4xf32, #tpu.memory_space<vmem>>, vector<16x2x4xf32>
    tpu.vector_store %arg4[%c0_2, %c18, %c0_3], %0 {strides = array<i32>} : memref<16x20x4xf32, #tpu.memory_space<vmem>>, vector<16x2x4xf32>,
    %c0_4 = arith.constant 0 : index
    %c0_5 = arith.constant 0 : index
    %c0_6 = arith.constant 0 : index
    %c0_7 = arith.constant 0 : index
    %3 = vector.load %arg2[%c0_4, %c0_5, %c0_6, %c0_7] : memref<1x16x16x4xf32, #tpu.memory_space<vmem>>, vector<1x12x16x4xf32>
    %4 = vector.shape_cast %3 : vector<1x12x16x4xf32> to vector<12x16x4xf32>
    %c0_8 = arith.constant 0 : index
    %c1 = arith.constant 1 : index
    %c0_9 = arith.constant 0 : index
    %c0_10 = arith.constant 0 : index
    %5 = vector.load %arg2[%c0_8, %c1, %c0_9, %c0_10] : memref<1x16x16x4xf32, #tpu.memory_space<vmem>>, vector<1x12x16x4xf32>
    %6 = vector.shape_cast %5 : vector<1x12x16x4xf32> to vector<12x16x4xf32>
    %7 = arith.maximumf %4, %6 : vector<12x16x4xf32>
    %c0_11 = arith.constant 0 : index
    %c2 = arith.constant 2 : index
    %c0_12 = arith.constant 0 : index
    %c0_13 = arith.constant 0 : index
    %8 = vector.load %arg2[%c0_11, %c2, %c0_12, %c0_13] : memref<1x16x16x4xf32, #tpu.memory_space<vmem>>, vector<1x12x16x4xf32>
    %9 = vector.shape_cast %8 : vector<1x12x16x4xf32> to vector<12x16x4xf32>
    %10 = arith.maximumf %7, %9 : vector<12x16x4xf32>
    %c0_14 = arith.constant 0 : index
    %c3 = arith.constant 3 : index
    %c0_15 = arith.constant 0 : index
    %c0_16 = arith.constant 0 : index
    %11 = vector.load %arg2[%c0_14, %c3, %c0_15, %c0_16] : memref<1x16x16x4xf32, #tpu.memory_space<vmem>>, vector<1x12x16x4xf32>
    %12 = vector.shape_cast %11 : vector<1x12x16x4xf32> to vector<12x16x4xf32>
    %13 = arith.maximumf %10, %12 : vector<12x16x4xf32>
    %c0_17 = arith.constant 0 : index
    %c4 = arith.constant 4 : index
    %c0_18 = arith.constant 0 : index
    %c0_19 = arith.constant 0 : index
    %14 = vector.load %arg2[%c0_17, %c4, %c0_18, %c0_19] : memref<1x16x16x4xf32, #tpu.memory_space<vmem>>, vector<1x12x16x4xf32>
    %15 = vector.shape_cast %14 : vector<1x12x16x4xf32> to vector<12x16x4xf32>
    %16 = arith.maximumf %13, %15 : vector<12x16x4xf32>
    %c2_20 = arith.constant 2 : index
    %c2_21 = arith.constant 2 : index
    %c0_22 = arith.constant 0 : index
    %17 = vector.load %arg4[%c2_20, %c2_21, %c0_22] : memref<16x20x4xf32, #tpu.memory_space<vmem>>, vector<12x16x4xf32>
    tpu.vector_store %arg4[%c2_20, %c2_21, %c0_22], %16 {strides = array<i32>} : memref<16x20x4xf32, #tpu.memory_space<vmem>>, vector<12x16x4xf32>,
    %c0_23 = arith.constant 0 : index
    %c0_24 = arith.constant 0 : index
    %c0_25 = arith.constant 0 : index
    %c0_26 = arith.constant 0 : index
    %18 = vector.load %arg2[%c0_23, %c0_24, %c0_25, %c0_26] : memref<1x16x16x4xf32, #tpu.memory_space<vmem>>, vector<1x1x16x4xf32>
    %19 = vector.shape_cast %18 : vector<1x1x16x4xf32> to vector<1x16x4xf32>
    %c0_27 = arith.constant 0 : index
    %c1_28 = arith.constant 1 : index
    %c0_29 = arith.constant 0 : index
    %c0_30 = arith.constant 0 : index
    %20 = vector.load %arg2[%c0_27, %c1_28, %c0_29, %c0_30] : memref<1x16x16x4xf32, #tpu.memory_space<vmem>>, vector<1x1x16x4xf32>
    %21 = vector.shape_cast %20 : vector<1x1x16x4xf32> to vector<1x16x4xf32>
    %22 = arith.maximumf %19, %21 : vector<1x16x4xf32>
    %c0_31 = arith.constant 0 : index
    %c2_32 = arith.constant 2 : index
    %c0_33 = arith.constant 0 : index
    %c0_34 = arith.constant 0 : index
    %23 = vector.load %arg2[%c0_31, %c2_32, %c0_33, %c0_34] : memref<1x16x16x4xf32, #tpu.memory_space<vmem>>, vector<1x1x16x4xf32>
    %24 = vector.shape_cast %23 : vector<1x1x16x4xf32> to vector<1x16x4xf32>
    %25 = arith.maximumf %22, %24 : vector<1x16x4xf32>
    %c0_35 = arith.constant 0 : index
    %c3_36 = arith.constant 3 : index
    %c0_37 = arith.constant 0 : index
    %c0_38 = arith.constant 0 : index
    %26 = vector.load %arg2[%c0_35, %c3_36, %c0_37, %c0_38] : memref<1x16x16x4xf32, #tpu.memory_space<vmem>>, vector<1x1x16x4xf32>
    %27 = vector.shape_cast %26 : vector<1x1x16x4xf32> to vector<1x16x4xf32>
    %28 = arith.maximumf %25, %27 : vector<1x16x4xf32>
    %c0_39 = arith.constant 0 : index
    %c15 = arith.constant 15 : index
    %c0_40 = arith.constant 0 : index
    %c0_41 = arith.constant 0 : index
    %29 = vector.load %arg2[%c0_39, %c15, %c0_40, %c0_41] : memref<1x16x16x4xf32, #tpu.memory_space<vmem>>, vector<1x1x16x4xf32>
    %30 = vector.shape_cast %29 : vector<1x1x16x4xf32> to vector<1x16x4xf32>
    %c0_42 = arith.constant 0 : index
    %c14 = arith.constant 14 : index
    %c0_43 = arith.constant 0 : index
    %c0_44 = arith.constant 0 : index
    %31 = vector.load %arg2[%c0_42, %c14, %c0_43, %c0_44] : memref<1x16x16x4xf32, #tpu.memory_space<vmem>>, vector<1x1x16x4xf32>
    %32 = vector.shape_cast %31 : vector<1x1x16x4xf32> to vector<1x16x4xf32>
    %33 = arith.maximumf %30, %32 : vector<1x16x4xf32>
    %c0_45 = arith.constant 0 : index
    %c13 = arith.constant 13 : index
    %c0_46 = arith.constant 0 : index
    %c0_47 = arith.constant 0 : index
    %34 = vector.load %arg2[%c0_45, %c13, %c0_46, %c0_47] : memref<1x16x16x4xf32, #tpu.memory_space<vmem>>, vector<1x1x16x4xf32>
    %35 = vector.shape_cast %34 : vector<1x1x16x4xf32> to vector<1x16x4xf32>
    %36 = arith.maximumf %33, %35 : vector<1x16x4xf32>
    %c0_48 = arith.constant 0 : index
    %c12 = arith.constant 12 : index
    %c0_49 = arith.constant 0 : index
    %c0_50 = arith.constant 0 : index
    %37 = vector.load %arg2[%c0_48, %c12, %c0_49, %c0_50] : memref<1x16x16x4xf32, #tpu.memory_space<vmem>>, vector<1x1x16x4xf32>
    %38 = vector.shape_cast %37 : vector<1x1x16x4xf32> to vector<1x16x4xf32>
    %39 = arith.maximumf %36, %38 : vector<1x16x4xf32>
    %c0_51 = arith.constant 0 : index
    %c2_52 = arith.constant 2 : index
    %c0_53 = arith.constant 0 : index
    %40 = vector.load %arg4[%c0_51, %c2_52, %c0_53] : memref<16x20x4xf32, #tpu.memory_space<vmem>>, vector<1x16x4xf32>
    tpu.vector_store %arg4[%c0_51, %c2_52, %c0_53], %25 {strides = array<i32>} : memref<16x20x4xf32, #tpu.memory_space<vmem>>, vector<1x16x4xf32>,
    %c1_54 = arith.constant 1 : index
    %c2_55 = arith.constant 2 : index
    %c0_56 = arith.constant 0 : index
    %41 = vector.load %arg4[%c1_54, %c2_55, %c0_56] : memref<16x20x4xf32, #tpu.memory_space<vmem>>, vector<1x16x4xf32>
    tpu.vector_store %arg4[%c1_54, %c2_55, %c0_56], %28 {strides = array<i32>} : memref<16x20x4xf32, #tpu.memory_space<vmem>>, vector<1x16x4xf32>,
    %c15_57 = arith.constant 15 : index
    %c2_58 = arith.constant 2 : index
    %c0_59 = arith.constant 0 : index
    %42 = vector.load %arg4[%c15_57, %c2_58, %c0_59] : memref<16x20x4xf32, #tpu.memory_space<vmem>>, vector<1x16x4xf32>
    tpu.vector_store %arg4[%c15_57, %c2_58, %c0_59], %36 {strides = array<i32>} : memref<16x20x4xf32, #tpu.memory_space<vmem>>, vector<1x16x4xf32>,
    %c14_60 = arith.constant 14 : index
    %c2_61 = arith.constant 2 : index
    %c0_62 = arith.constant 0 : index
    %43 = vector.load %arg4[%c14_60, %c2_61, %c0_62] : memref<16x20x4xf32, #tpu.memory_space<vmem>>, vector<1x16x4xf32>
    tpu.vector_store %arg4[%c14_60, %c2_61, %c0_62], %39 {strides = array<i32>} : memref<16x20x4xf32, #tpu.memory_space<vmem>>, vector<1x16x4xf32>,
    %c0_63 = arith.constant 0 : index
    %c0_64 = arith.constant 0 : index
    %c0_65 = arith.constant 0 : index
    %44 = vector.load %arg4[%c0_63, %c0_64, %c0_65] : memref<16x20x4xf32, #tpu.memory_space<vmem>>, vector<16x16x4xf32>
    %c0_66 = arith.constant 0 : index
    %c1_67 = arith.constant 1 : index
    %c0_68 = arith.constant 0 : index
    %45 = vector.load %arg4[%c0_66, %c1_67, %c0_68] : memref<16x20x4xf32, #tpu.memory_space<vmem>>, vector<16x16x4xf32>
    %46 = arith.maximumf %44, %45 : vector<16x16x4xf32>
    %c0_69 = arith.constant 0 : index
    %c2_70 = arith.constant 2 : index
    %c0_71 = arith.constant 0 : index
    %47 = vector.load %arg4[%c0_69, %c2_70, %c0_71] : memref<16x20x4xf32, #tpu.memory_space<vmem>>, vector<16x16x4xf32>
    %48 = arith.maximumf %46, %47 : vector<16x16x4xf32>
    %c0_72 = arith.constant 0 : index
    %c3_73 = arith.constant 3 : index
    %c0_74 = arith.constant 0 : index
    %49 = vector.load %arg4[%c0_72, %c3_73, %c0_74] : memref<16x20x4xf32, #tpu.memory_space<vmem>>, vector<16x16x4xf32>
    %50 = arith.maximumf %48, %49 : vector<16x16x4xf32>
    %c0_75 = arith.constant 0 : index
    %c4_76 = arith.constant 4 : index
    %c0_77 = arith.constant 0 : index
    %51 = vector.load %arg4[%c0_75, %c4_76, %c0_77] : memref<16x20x4xf32, #tpu.memory_space<vmem>>, vector<16x16x4xf32>
    %52 = arith.maximumf %50, %51 : vector<16x16x4xf32>
    %c0_78 = arith.constant 0 : index
    %c0_79 = arith.constant 0 : index
    %c0_80 = arith.constant 0 : index
    %c0_81 = arith.constant 0 : index
    %c0_82 = arith.constant 0 : index
    %53 = vector.load %arg3[%c0_78, %c0_79, %c0_80, %c0_81, %c0_82] : memref<1x4x16x16x4xf32, #tpu.memory_space<vmem>>, vector<1x1x16x16x4xf32>
    %54 = vector.shape_cast %53 : vector<1x1x16x16x4xf32> to vector<16x16x4xf32>
    %55 = vector.shape_cast %52 : vector<16x16x4xf32> to vector<1x1x16x16x4xf32>
    tpu.vector_store %arg3[%c0_78, %c0_79, %c0_80, %c0_81, %c0_82], %55 {strides = array<i32>} : memref<1x4x16x16x4xf32, #tpu.memory_space<vmem>>, vector<1x1x16x16x4xf32>,
    %c0_83 = arith.constant 0 : index
    %c0_84 = arith.constant 0 : index
    %c0_85 = arith.constant 0 : index
    %c0_86 = arith.constant 0 : index
    %c0_87 = arith.constant 0 : index
    %56 = vector.load %arg3[%c0_83, %c0_84, %c0_85, %c0_86, %c0_87] : memref<1x4x16x16x4xf32, #tpu.memory_space<vmem>>, vector<1x1x12x16x4xf32>
    %57 = vector.shape_cast %56 : vector<1x1x12x16x4xf32> to vector<12x16x4xf32>
    %c0_88 = arith.constant 0 : index
    %c0_89 = arith.constant 0 : index
    %c1_90 = arith.constant 1 : index
    %c0_91 = arith.constant 0 : index
    %c0_92 = arith.constant 0 : index
    %58 = vector.load %arg3[%c0_88, %c0_89, %c1_90, %c0_91, %c0_92] : memref<1x4x16x16x4xf32, #tpu.memory_space<vmem>>, vector<1x1x12x16x4xf32>
    %59 = vector.shape_cast %58 : vector<1x1x12x16x4xf32> to vector<12x16x4xf32>
    %60 = arith.maximumf %57, %59 : vector<12x16x4xf32>
    %c0_93 = arith.constant 0 : index
    %c0_94 = arith.constant 0 : index
    %c2_95 = arith.constant 2 : index
    %c0_96 = arith.constant 0 : index
    %c0_97 = arith.constant 0 : index
    %61 = vector.load %arg3[%c0_93, %c0_94, %c2_95, %c0_96, %c0_97] : memref<1x4x16x16x4xf32, #tpu.memory_space<vmem>>, vector<1x1x12x16x4xf32>
    %62 = vector.shape_cast %61 : vector<1x1x12x16x4xf32> to vector<12x16x4xf32>
    %63 = arith.maximumf %60, %62 : vector<12x16x4xf32>
    %c0_98 = arith.constant 0 : index
    %c0_99 = arith.constant 0 : index
    %c3_100 = arith.constant 3 : index
    %c0_101 = arith.constant 0 : index
    %c0_102 = arith.constant 0 : index
    %64 = vector.load %arg3[%c0_98, %c0_99, %c3_100, %c0_101, %c0_102] : memref<1x4x16x16x4xf32, #tpu.memory_space<vmem>>, vector<1x1x12x16x4xf32>
    %65 = vector.shape_cast %64 : vector<1x1x12x16x4xf32> to vector<12x16x4xf32>
    %66 = arith.maximumf %63, %65 : vector<12x16x4xf32>
    %c0_103 = arith.constant 0 : index
    %c0_104 = arith.constant 0 : index
    %c4_105 = arith.constant 4 : index
    %c0_106 = arith.constant 0 : index
    %c0_107 = arith.constant 0 : index
    %67 = vector.load %arg3[%c0_103, %c0_104, %c4_105, %c0_106, %c0_107] : memref<1x4x16x16x4xf32, #tpu.memory_space<vmem>>, vector<1x1x12x16x4xf32>
    %68 = vector.shape_cast %67 : vector<1x1x12x16x4xf32> to vector<12x16x4xf32>
    %69 = arith.maximumf %66, %68 : vector<12x16x4xf32>
    %c2_108 = arith.constant 2 : index
    %c2_109 = arith.constant 2 : index
    %c0_110 = arith.constant 0 : index
    %70 = vector.load %arg4[%c2_108, %c2_109, %c0_110] : memref<16x20x4xf32, #tpu.memory_space<vmem>>, vector<12x16x4xf32>
    tpu.vector_store %arg4[%c2_108, %c2_109, %c0_110], %69 {strides = array<i32>} : memref<16x20x4xf32, #tpu.memory_space<vmem>>, vector<12x16x4xf32>,
    %c0_111 = arith.constant 0 : index
    %c0_112 = arith.constant 0 : index
    %c0_113 = arith.constant 0 : index
    %c0_114 = arith.constant 0 : index
    %c0_115 = arith.constant 0 : index
    %71 = vector.load %arg3[%c0_111, %c0_112, %c0_113, %c0_114, %c0_115] : memref<1x4x16x16x4xf32, #tpu.memory_space<vmem>>, vector<1x1x1x16x4xf32>
    %72 = vector.shape_cast %71 : vector<1x1x1x16x4xf32> to vector<1x16x4xf32>
    %c0_116 = arith.constant 0 : index
    %c0_117 = arith.constant 0 : index
    %c1_118 = arith.constant 1 : index
    %c0_119 = arith.constant 0 : index
    %c0_120 = arith.constant 0 : index
    %73 = vector.load %arg3[%c0_116, %c0_117, %c1_118, %c0_119, %c0_120] : memref<1x4x16x16x4xf32, #tpu.memory_space<vmem>>, vector<1x1x1x16x4xf32>
    %74 = vector.shape_cast %73 : vector<1x1x1x16x4xf32> to vector<1x16x4xf32>
    %75 = arith.maximumf %72, %74 : vector<1x16x4xf32>
    %c0_121 = arith.constant 0 : index
    %c0_122 = arith.constant 0 : index
    %c2_123 = arith.constant 2 : index
    %c0_124 = arith.constant 0 : index
    %c0_125 = arith.constant 0 : index
    %76 = vector.load %arg3[%c0_121, %c0_122, %c2_123, %c0_124, %c0_125] : memref<1x4x16x16x4xf32, #tpu.memory_space<vmem>>, vector<1x1x1x16x4xf32>
    %77 = vector.shape_cast %76 : vector<1x1x1x16x4xf32> to vector<1x16x4xf32>
    %78 = arith.maximumf %75, %77 : vector<1x16x4xf32>
    %c0_126 = arith.constant 0 : index
    %c0_127 = arith.constant 0 : index
    %c3_128 = arith.constant 3 : index
    %c0_129 = arith.constant 0 : index
    %c0_130 = arith.constant 0 : index
    %79 = vector.load %arg3[%c0_126, %c0_127, %c3_128, %c0_129, %c0_130] : memref<1x4x16x16x4xf32, #tpu.memory_space<vmem>>, vector<1x1x1x16x4xf32>
    %80 = vector.shape_cast %79 : vector<1x1x1x16x4xf32> to vector<1x16x4xf32>
    %81 = arith.maximumf %78, %80 : vector<1x16x4xf32>
    %c0_131 = arith.constant 0 : index
    %c0_132 = arith.constant 0 : index
    %c15_133 = arith.constant 15 : index
    %c0_134 = arith.constant 0 : index
    %c0_135 = arith.constant 0 : index
    %82 = vector.load %arg3[%c0_131, %c0_132, %c15_133, %c0_134, %c0_135] : memref<1x4x16x16x4xf32, #tpu.memory_space<vmem>>, vector<1x1x1x16x4xf32>
    %83 = vector.shape_cast %82 : vector<1x1x1x16x4xf32> to vector<1x16x4xf32>
    %c0_136 = arith.constant 0 : index
    %c0_137 = arith.constant 0 : index
    %c14_138 = arith.constant 14 : index
    %c0_139 = arith.constant 0 : index
    %c0_140 = arith.constant 0 : index
    %84 = vector.load %arg3[%c0_136, %c0_137, %c14_138, %c0_139, %c0_140] : memref<1x4x16x16x4xf32, #tpu.memory_space<vmem>>, vector<1x1x1x16x4xf32>
    %85 = vector.shape_cast %84 : vector<1x1x1x16x4xf32> to vector<1x16x4xf32>
    %86 = arith.maximumf %83, %85 : vector<1x16x4xf32>
    %c0_141 = arith.constant 0 : index
    %c0_142 = arith.constant 0 : index
    %c13_143 = arith.constant 13 : index
    %c0_144 = arith.constant 0 : index
    %c0_145 = arith.constant 0 : index
    %87 = vector.load %arg3[%c0_141, %c0_142, %c13_143, %c0_144, %c0_145] : memref<1x4x16x16x4xf32, #tpu.memory_space<vmem>>, vector<1x1x1x16x4xf32>
    %88 = vector.shape_cast %87 : vector<1x1x1x16x4xf32> to vector<1x16x4xf32>
    %89 = arith.maximumf %86, %88 : vector<1x16x4xf32>
    %c0_146 = arith.constant 0 : index
    %c0_147 = arith.constant 0 : index
    %c12_148 = arith.constant 12 : index
    %c0_149 = arith.constant 0 : index
    %c0_150 = arith.constant 0 : index
    %90 = vector.load %arg3[%c0_146, %c0_147, %c12_148, %c0_149, %c0_150] : memref<1x4x16x16x4xf32, #tpu.memory_space<vmem>>, vector<1x1x1x16x4xf32>
    %91 = vector.shape_cast %90 : vector<1x1x1x16x4xf32> to vector<1x16x4xf32>
    %92 = arith.maximumf %89, %91 : vector<1x16x4xf32>
    %c0_151 = arith.constant 0 : index
    %c2_152 = arith.constant 2 : index
    %c0_153 = arith.constant 0 : index
    %93 = vector.load %arg4[%c0_151, %c2_152, %c0_153] : memref<16x20x4xf32, #tpu.memory_space<vmem>>, vector<1x16x4xf32>
    tpu.vector_store %arg4[%c0_151, %c2_152, %c0_153], %78 {strides = array<i32>} : memref<16x20x4xf32, #tpu.memory_space<vmem>>, vector<1x16x4xf32>,
    %c1_154 = arith.constant 1 : index
    %c2_155 = arith.constant 2 : index
    %c0_156 = arith.constant 0 : index
    %94 = vector.load %arg4[%c1_154, %c2_155, %c0_156] : memref<16x20x4xf32, #tpu.memory_space<vmem>>, vector<1x16x4xf32>
    tpu.vector_store %arg4[%c1_154, %c2_155, %c0_156], %81 {strides = array<i32>} : memref<16x20x4xf32, #tpu.memory_space<vmem>>, vector<1x16x4xf32>,
    %c15_157 = arith.constant 15 : index
    %c2_158 = arith.constant 2 : index
    %c0_159 = arith.constant 0 : index
    %95 = vector.load %arg4[%c15_157, %c2_158, %c0_159] : memref<16x20x4xf32, #tpu.memory_space<vmem>>, vector<1x16x4xf32>
    tpu.vector_store %arg4[%c15_157, %c2_158, %c0_159], %89 {strides = array<i32>} : memref<16x20x4xf32, #tpu.memory_space<vmem>>, vector<1x16x4xf32>,
    %c14_160 = arith.constant 14 : index
    %c2_161 = arith.constant 2 : index
    %c0_162 = arith.constant 0 : index
    %96 = vector.load %arg4[%c14_160, %c2_161, %c0_162] : memref<16x20x4xf32, #tpu.memory_space<vmem>>, vector<1x16x4xf32>
    tpu.vector_store %arg4[%c14_160, %c2_161, %c0_162], %92 {strides = array<i32>} : memref<16x20x4xf32, #tpu.memory_space<vmem>>, vector<1x16x4xf32>,
    %c0_163 = arith.constant 0 : index
    %c0_164 = arith.constant 0 : index
    %c0_165 = arith.constant 0 : index
    %97 = vector.load %arg4[%c0_163, %c0_164, %c0_165] : memref<16x20x4xf32, #tpu.memory_space<vmem>>, vector<16x16x4xf32>
    %c0_166 = arith.constant 0 : index
    %c1_167 = arith.constant 1 : index
    %c0_168 = arith.constant 0 : index
    %98 = vector.load %arg4[%c0_166, %c1_167, %c0_168] : memref<16x20x4xf32, #tpu.memory_space<vmem>>, vector<16x16x4xf32>
    %99 = arith.maximumf %97, %98 : vector<16x16x4xf32>
    %c0_169 = arith.constant 0 : index
    %c2_170 = arith.constant 2 : index
    %c0_171 = arith.constant 0 : index
    %100 = vector.load %arg4[%c0_169, %c2_170, %c0_171] : memref<16x20x4xf32, #tpu.memory_space<vmem>>, vector<16x16x4xf32>
    %101 = arith.maximumf %99, %100 : vector<16x16x4xf32>
    %c0_172 = arith.constant 0 : index
    %c3_173 = arith.constant 3 : index
    %c0_174 = arith.constant 0 : index
    %102 = vector.load %arg4[%c0_172, %c3_173, %c0_174] : memref<16x20x4xf32, #tpu.memory_space<vmem>>, vector<16x16x4xf32>
    %103 = arith.maximumf %101, %102 : vector<16x16x4xf32>
    %c0_175 = arith.constant 0 : index
    %c4_176 = arith.constant 4 : index
    %c0_177 = arith.constant 0 : index
    %104 = vector.load %arg4[%c0_175, %c4_176, %c0_177] : memref<16x20x4xf32, #tpu.memory_space<vmem>>, vector<16x16x4xf32>
    %105 = arith.maximumf %103, %104 : vector<16x16x4xf32>
    %c0_178 = arith.constant 0 : index
    %c1_179 = arith.constant 1 : index
    %c0_180 = arith.constant 0 : index
    %c0_181 = arith.constant 0 : index
    %c0_182 = arith.constant 0 : index
    %106 = vector.load %arg3[%c0_178, %c1_179, %c0_180, %c0_181, %c0_182] : memref<1x4x16x16x4xf32, #tpu.memory_space<vmem>>, vector<1x1x16x16x4xf32>
    %107 = vector.shape_cast %106 : vector<1x1x16x16x4xf32> to vector<16x16x4xf32>
    %108 = vector.shape_cast %105 : vector<16x16x4xf32> to vector<1x1x16x16x4xf32>
    tpu.vector_store %arg3[%c0_178, %c1_179, %c0_180, %c0_181, %c0_182], %108 {strides = array<i32>} : memref<1x4x16x16x4xf32, #tpu.memory_space<vmem>>, vector<1x1x16x16x4xf32>,
    %c0_183 = arith.constant 0 : index
    %c1_184 = arith.constant 1 : index
    %c0_185 = arith.constant 0 : index
    %c0_186 = arith.constant 0 : index
    %c0_187 = arith.constant 0 : index
    %109 = vector.load %arg3[%c0_183, %c1_184, %c0_185, %c0_186, %c0_187] : memref<1x4x16x16x4xf32, #tpu.memory_space<vmem>>, vector<1x1x12x16x4xf32>
    %110 = vector.shape_cast %109 : vector<1x1x12x16x4xf32> to vector<12x16x4xf32>
    %c0_188 = arith.constant 0 : index
    %c1_189 = arith.constant 1 : index
    %c1_190 = arith.constant 1 : index
    %c0_191 = arith.constant 0 : index
    %c0_192 = arith.constant 0 : index
    %111 = vector.load %arg3[%c0_188, %c1_189, %c1_190, %c0_191, %c0_192] : memref<1x4x16x16x4xf32, #tpu.memory_space<vmem>>, vector<1x1x12x16x4xf32>
    %112 = vector.shape_cast %111 : vector<1x1x12x16x4xf32> to vector<12x16x4xf32>
    %113 = arith.maximumf %110, %112 : vector<12x16x4xf32>
    %c0_193 = arith.constant 0 : index
    %c1_194 = arith.constant 1 : index
    %c2_195 = arith.constant 2 : index
    %c0_196 = arith.constant 0 : index
    %c0_197 = arith.constant 0 : index
    %114 = vector.load %arg3[%c0_193, %c1_194, %c2_195, %c0_196, %c0_197] : memref<1x4x16x16x4xf32, #tpu.memory_space<vmem>>, vector<1x1x12x16x4xf32>
    %115 = vector.shape_cast %114 : vector<1x1x12x16x4xf32> to vector<12x16x4xf32>
    %116 = arith.maximumf %113, %115 : vector<12x16x4xf32>
    %c0_198 = arith.constant 0 : index
    %c1_199 = arith.constant 1 : index
    %c3_200 = arith.constant 3 : index
    %c0_201 = arith.constant 0 : index
    %c0_202 = arith.constant 0 : index
    %117 = vector.load %arg3[%c0_198, %c1_199, %c3_200, %c0_201, %c0_202] : memref<1x4x16x16x4xf32, #tpu.memory_space<vmem>>, vector<1x1x12x16x4xf32>
    %118 = vector.shape_cast %117 : vector<1x1x12x16x4xf32> to vector<12x16x4xf32>
    %119 = arith.maximumf %116, %118 : vector<12x16x4xf32>
    %c0_203 = arith.constant 0 : index
    %c1_204 = arith.constant 1 : index
    %c4_205 = arith.constant 4 : index
    %c0_206 = arith.constant 0 : index
    %c0_207 = arith.constant 0 : index
    %120 = vector.load %arg3[%c0_203, %c1_204, %c4_205, %c0_206, %c0_207] : memref<1x4x16x16x4xf32, #tpu.memory_space<vmem>>, vector<1x1x12x16x4xf32>
    %121 = vector.shape_cast %120 : vector<1x1x12x16x4xf32> to vector<12x16x4xf32>
    %122 = arith.maximumf %119, %121 : vector<12x16x4xf32>
    %c2_208 = arith.constant 2 : index
    %c2_209 = arith.constant 2 : index
    %c0_210 = arith.constant 0 : index
    %123 = vector.load %arg4[%c2_208, %c2_209, %c0_210] : memref<16x20x4xf32, #tpu.memory_space<vmem>>, vector<12x16x4xf32>
    tpu.vector_store %arg4[%c2_208, %c2_209, %c0_210], %122 {strides = array<i32>} : memref<16x20x4xf32, #tpu.memory_space<vmem>>, vector<12x16x4xf32>,
    %c0_211 = arith.constant 0 : index
    %c1_212 = arith.constant 1 : index
    %c0_213 = arith.constant 0 : index
    %c0_214 = arith.constant 0 : index
    %c0_215 = arith.constant 0 : index
    %124 = vector.load %arg3[%c0_211, %c1_212, %c0_213, %c0_214, %c0_215] : memref<1x4x16x16x4xf32, #tpu.memory_space<vmem>>, vector<1x1x1x16x4xf32>
    %125 = vector.shape_cast %124 : vector<1x1x1x16x4xf32> to vector<1x16x4xf32>
    %c0_216 = arith.constant 0 : index
    %c1_217 = arith.constant 1 : index
    %c1_218 = arith.constant 1 : index
    %c0_219 = arith.constant 0 : index
    %c0_220 = arith.constant 0 : index
    %126 = vector.load %arg3[%c0_216, %c1_217, %c1_218, %c0_219, %c0_220] : memref<1x4x16x16x4xf32, #tpu.memory_space<vmem>>, vector<1x1x1x16x4xf32>
    %127 = vector.shape_cast %126 : vector<1x1x1x16x4xf32> to vector<1x16x4xf32>
    %128 = arith.maximumf %125, %127 : vector<1x16x4xf32>
    %c0_221 = arith.constant 0 : index
    %c1_222 = arith.constant 1 : index
    %c2_223 = arith.constant 2 : index
    %c0_224 = arith.constant 0 : index
    %c0_225 = arith.constant 0 : index
    %129 = vector.load %arg3[%c0_221, %c1_222, %c2_223, %c0_224, %c0_225] : memref<1x4x16x16x4xf32, #tpu.memory_space<vmem>>, vector<1x1x1x16x4xf32>
    %130 = vector.shape_cast %129 : vector<1x1x1x16x4xf32> to vector<1x16x4xf32>
    %131 = arith.maximumf %128, %130 : vector<1x16x4xf32>
    %c0_226 = arith.constant 0 : index
    %c1_227 = arith.constant 1 : index
    %c3_228 = arith.constant 3 : index
    %c0_229 = arith.constant 0 : index
    %c0_230 = arith.constant 0 : index
    %132 = vector.load %arg3[%c0_226, %c1_227, %c3_228, %c0_229, %c0_230] : memref<1x4x16x16x4xf32, #tpu.memory_space<vmem>>, vector<1x1x1x16x4xf32>
    %133 = vector.shape_cast %132 : vector<1x1x1x16x4xf32> to vector<1x16x4xf32>
    %134 = arith.maximumf %131, %133 : vector<1x16x4xf32>
    %c0_231 = arith.constant 0 : index
    %c1_232 = arith.constant 1 : index
    %c15_233 = arith.constant 15 : index
    %c0_234 = arith.constant 0 : index
    %c0_235 = arith.constant 0 : index
    %135 = vector.load %arg3[%c0_231, %c1_232, %c15_233, %c0_234, %c0_235] : memref<1x4x16x16x4xf32, #tpu.memory_space<vmem>>, vector<1x1x1x16x4xf32>
    %136 = vector.shape_cast %135 : vector<1x1x1x16x4xf32> to vector<1x16x4xf32>
    %c0_236 = arith.constant 0 : index
    %c1_237 = arith.constant 1 : index
    %c14_238 = arith.constant 14 : index
    %c0_239 = arith.constant 0 : index
    %c0_240 = arith.constant 0 : index
    %137 = vector.load %arg3[%c0_236, %c1_237, %c14_238, %c0_239, %c0_240] : memref<1x4x16x16x4xf32, #tpu.memory_space<vmem>>, vector<1x1x1x16x4xf32>
    %138 = vector.shape_cast %137 : vector<1x1x1x16x4xf32> to vector<1x16x4xf32>
    %139 = arith.maximumf %136, %138 : vector<1x16x4xf32>
    %c0_241 = arith.constant 0 : index
    %c1_242 = arith.constant 1 : index
    %c13_243 = arith.constant 13 : index
    %c0_244 = arith.constant 0 : index
    %c0_245 = arith.constant 0 : index
    %140 = vector.load %arg3[%c0_241, %c1_242, %c13_243, %c0_244, %c0_245] : memref<1x4x16x16x4xf32, #tpu.memory_space<vmem>>, vector<1x1x1x16x4xf32>
    %141 = vector.shape_cast %140 : vector<1x1x1x16x4xf32> to vector<1x16x4xf32>
    %142 = arith.maximumf %139, %141 : vector<1x16x4xf32>
    %c0_246 = arith.constant 0 : index
    %c1_247 = arith.constant 1 : index
    %c12_248 = arith.constant 12 : index
    %c0_249 = arith.constant 0 : index
    %c0_250 = arith.constant 0 : index
    %143 = vector.load %arg3[%c0_246, %c1_247, %c12_248, %c0_249, %c0_250] : memref<1x4x16x16x4xf32, #tpu.memory_space<vmem>>, vector<1x1x1x16x4xf32>
    %144 = vector.shape_cast %143 : vector<1x1x1x16x4xf32> to vector<1x16x4xf32>
    %145 = arith.maximumf %142, %144 : vector<1x16x4xf32>
    %c0_251 = arith.constant 0 : index
    %c2_252 = arith.constant 2 : index
    %c0_253 = arith.constant 0 : index
    %146 = vector.load %arg4[%c0_251, %c2_252, %c0_253] : memref<16x20x4xf32, #tpu.memory_space<vmem>>, vector<1x16x4xf32>
    tpu.vector_store %arg4[%c0_251, %c2_252, %c0_253], %131 {strides = array<i32>} : memref<16x20x4xf32, #tpu.memory_space<vmem>>, vector<1x16x4xf32>,
    %c1_254 = arith.constant 1 : index
    %c2_255 = arith.constant 2 : index
    %c0_256 = arith.constant 0 : index
    %147 = vector.load %arg4[%c1_254, %c2_255, %c0_256] : memref<16x20x4xf32, #tpu.memory_space<vmem>>, vector<1x16x4xf32>
    tpu.vector_store %arg4[%c1_254, %c2_255, %c0_256], %134 {strides = array<i32>} : memref<16x20x4xf32, #tpu.memory_space<vmem>>, vector<1x16x4xf32>,
    %c15_257 = arith.constant 15 : index
    %c2_258 = arith.constant 2 : index
    %c0_259 = arith.constant 0 : index
    %148 = vector.load %arg4[%c15_257, %c2_258, %c0_259] : memref<16x20x4xf32, #tpu.memory_space<vmem>>, vector<1x16x4xf32>
    tpu.vector_store %arg4[%c15_257, %c2_258, %c0_259], %142 {strides = array<i32>} : memref<16x20x4xf32, #tpu.memory_space<vmem>>, vector<1x16x4xf32>,
    %c14_260 = arith.constant 14 : index
    %c2_261 = arith.constant 2 : index
    %c0_262 = arith.constant 0 : index
    %149 = vector.load %arg4[%c14_260, %c2_261, %c0_262] : memref<16x20x4xf32, #tpu.memory_space<vmem>>, vector<1x16x4xf32>
    tpu.vector_store %arg4[%c14_260, %c2_261, %c0_262], %145 {strides = array<i32>} : memref<16x20x4xf32, #tpu.memory_space<vmem>>, vector<1x16x4xf32>,
    %c0_263 = arith.constant 0 : index
    %c0_264 = arith.constant 0 : index
    %c0_265 = arith.constant 0 : index
    %150 = vector.load %arg4[%c0_263, %c0_264, %c0_265] : memref<16x20x4xf32, #tpu.memory_space<vmem>>, vector<16x16x4xf32>
    %c0_266 = arith.constant 0 : index
    %c1_267 = arith.constant 1 : index
    %c0_268 = arith.constant 0 : index
    %151 = vector.load %arg4[%c0_266, %c1_267, %c0_268] : memref<16x20x4xf32, #tpu.memory_space<vmem>>, vector<16x16x4xf32>
    %152 = arith.maximumf %150, %151 : vector<16x16x4xf32>
    %c0_269 = arith.constant 0 : index
    %c2_270 = arith.constant 2 : index
    %c0_271 = arith.constant 0 : index
    %153 = vector.load %arg4[%c0_269, %c2_270, %c0_271] : memref<16x20x4xf32, #tpu.memory_space<vmem>>, vector<16x16x4xf32>
    %154 = arith.maximumf %152, %153 : vector<16x16x4xf32>
    %c0_272 = arith.constant 0 : index
    %c3_273 = arith.constant 3 : index
    %c0_274 = arith.constant 0 : index
    %155 = vector.load %arg4[%c0_272, %c3_273, %c0_274] : memref<16x20x4xf32, #tpu.memory_space<vmem>>, vector<16x16x4xf32>
    %156 = arith.maximumf %154, %155 : vector<16x16x4xf32>
    %c0_275 = arith.constant 0 : index
    %c4_276 = arith.constant 4 : index
    %c0_277 = arith.constant 0 : index
    %157 = vector.load %arg4[%c0_275, %c4_276, %c0_277] : memref<16x20x4xf32, #tpu.memory_space<vmem>>, vector<16x16x4xf32>
    %158 = arith.maximumf %156, %157 : vector<16x16x4xf32>
    %c0_278 = arith.constant 0 : index
    %c2_279 = arith.constant 2 : index
    %c0_280 = arith.constant 0 : index
    %c0_281 = arith.constant 0 : index
    %c0_282 = arith.constant 0 : index
    %159 = vector.load %arg3[%c0_278, %c2_279, %c0_280, %c0_281, %c0_282] : memref<1x4x16x16x4xf32, #tpu.memory_space<vmem>>, vector<1x1x16x16x4xf32>
    %160 = vector.shape_cast %159 : vector<1x1x16x16x4xf32> to vector<16x16x4xf32>
    %161 = vector.shape_cast %158 : vector<16x16x4xf32> to vector<1x1x16x16x4xf32>
    tpu.vector_store %arg3[%c0_278, %c2_279, %c0_280, %c0_281, %c0_282], %161 {strides = array<i32>} : memref<1x4x16x16x4xf32, #tpu.memory_space<vmem>>, vector<1x1x16x16x4xf32>,
    %c0_283 = arith.constant 0 : index
    %c0_284 = arith.constant 0 : index
    %c0_285 = arith.constant 0 : index
    %c0_286 = arith.constant 0 : index
    %162 = vector.load %arg2[%c0_283, %c0_284, %c0_285, %c0_286] : memref<1x16x16x4xf32, #tpu.memory_space<vmem>>, vector<1x16x16x4xf32>
    %163 = vector.shape_cast %162 : vector<1x16x16x4xf32> to vector<16x16x4xf32>
    %c0_287 = arith.constant 0 : index
    %c3_288 = arith.constant 3 : index
    %c0_289 = arith.constant 0 : index
    %c0_290 = arith.constant 0 : index
    %c0_291 = arith.constant 0 : index
    %164 = vector.load %arg3[%c0_287, %c3_288, %c0_289, %c0_290, %c0_291] : memref<1x4x16x16x4xf32, #tpu.memory_space<vmem>>, vector<1x1x16x16x4xf32>
    %165 = vector.shape_cast %164 : vector<1x1x16x16x4xf32> to vector<16x16x4xf32>
    %166 = vector.shape_cast %163 : vector<16x16x4xf32> to vector<1x1x16x16x4xf32>
    tpu.vector_store %arg3[%c0_287, %c3_288, %c0_289, %c0_290, %c0_291], %166 {strides = array<i32>} : memref<1x4x16x16x4xf32, #tpu.memory_space<vmem>>, vector<1x1x16x16x4xf32>,
    return
  }
  func.func @transform_0(%arg0: i32, %arg1: i32) -> (i32, i32, i32, i32) {
    %c0_i32 = arith.constant 0 : i32
    %c0_i32_0 = arith.constant 0 : i32
    %c0_i32_1 = arith.constant 0 : i32
    return %arg0, %c0_i32, %c0_i32_0, %arg1 : i32, i32, i32, i32
  }
  func.func @transform_1(%arg0: i32, %arg1: i32) -> (i32, i32, i32, i32, i32) {
    %c0_i32 = arith.constant 0 : i32
    %c0_i32_0 = arith.constant 0 : i32
    %c0_i32_1 = arith.constant 0 : i32
    %c0_i32_2 = arith.constant 0 : i32
    return %arg0, %c0_i32, %c0_i32_0, %c0_i32_1, %arg1 : i32, i32, i32, i32, i32
  }
}

</mosaic_0001>

<bundles_post_ra>
// kernel: tpu_custom_call.1
= control target key start
LH: loop header
LB: loop body
LE: loop exit
PB: predicated region body
PF: predicated region fallthrough
CT: control target
= control target key end

     0   :  { %s2673_s6 = smov 0   ;;  %s2675_s7 = smov 0   ;;  %s3651_s0 = inlined_call_operand.vmem [shape: f32[2,16,16,4], index: 0, kind: input, shape index: {}]   ;;  %s3652_s1 = inlined_call_operand.vmem [shape: f32[2,4,16,16,4], index: 1, kind: output, shape index: {}]  }
   0x1   :  { %s2677_s8 = smov 0  }
   0x2 LB: > { %s23_s9 = sadd.s32 1, %s2656_s7  ;;  %p2152_p0 = scmp.ge.s32.totalorder %s2660_s8, 1  ;;  %s2660_s8 = sphi %s2677_s8, %s11_s8   ;;  %s2656_s7 = sphi %s2675_s7, %s3654_s7   ;;  %s2652_s6 = sphi %s2673_s6, %s3653_s6  }
   0x3   : > { %p25_p1 = scmp.ge.s32.totalorder %s23_s9, 2  ;;  %p106_p2 = scmp.lt.s32.totalorder %s2660_s8, 3 }
   0x5   : > { %s3656_s9 = smov (%p25_p1, %s23_s9), 0  ;;  %p107_p3 = pnand %p2152_p0, %p106_p2 }
   0x6   : > { %vm148_vm0 = vcmask (!%p107_p3), 25600   ;;  %p132_p4 = scmp.lt.s32.totalorder (!%p107_p3), %s2652_s6, 1  ;;  %v2662_v0 = vmov (!%p107_p3), -inf   ;;  %vm402_vm1 = vcmask (!%p107_p3), 31744  }
   0x7   : > { %110 = sbr.rel (%p107_p3) target bundleno = 252 (0xfc), region = 24  ;;  %149 = vst.msk [vmem:[#allocation2] sm:$0x3] (!%p107_p3), %vm148_vm0, %v2662_v0  ;;  %150 = vst.msk [vmem:[#allocation2 + $0x18] sm:$0x3] (!%p107_p3), %vm148_vm0, %v2662_v0 }
   0x8   : > { %151 = vst.msk [vmem:[#allocation2 + $0x30] sm:$0x3] (!%p107_p3), %vm148_vm0, %v2662_v0  ;;  %152 = vst.msk [vmem:[#allocation2 + $0x48] sm:$0x3] (!%p107_p3), %vm148_vm0, %v2662_v0 }
   0x9   : > { %153 = vst.msk [vmem:[#allocation2 + $0x60] sm:$0x3] (!%p107_p3), %vm148_vm0, %v2662_v0  ;;  %154 = vst.msk [vmem:[#allocation2 + $0x78] sm:$0x3] (!%p107_p3), %vm148_vm0, %v2662_v0 }
   0xa   : > { %155 = vst.msk [vmem:[#allocation2 + $0x90] sm:$0x3] (!%p107_p3), %vm148_vm0, %v2662_v0  ;;  %156 = vst.msk [vmem:[#allocation2 + $0xa8] sm:$0x3] (!%p107_p3), %vm148_vm0, %v2662_v0 }
   0xb   : > { %157 = vst.msk [vmem:[#allocation2 + $0xc0] sm:$0x3] (!%p107_p3), %vm148_vm0, %v2662_v0  ;;  %158 = vst.msk [vmem:[#allocation2 + $0xd8] sm:$0x3] (!%p107_p3), %vm148_vm0, %v2662_v0 }
   0xc   : > { %159 = vst.msk [vmem:[#allocation2 + $0xf0] sm:$0x3] (!%p107_p3), %vm148_vm0, %v2662_v0  ;;  %160 = vst.msk [vmem:[#allocation2 + $0x108] sm:$0x3] (!%p107_p3), %vm148_vm0, %v2662_v0 }
   0xd   : > { %161 = vst.msk [vmem:[#allocation2 + $0x120] sm:$0x3] (!%p107_p3), %vm148_vm0, %v2662_v0  ;;  %162 = vst.msk [vmem:[#allocation2 + $0x138] sm:$0x3] (!%p107_p3), %vm148_vm0, %v2662_v0 }
   0xe   : > { %163 = vst.msk [vmem:[#allocation2 + $0x150] sm:$0x3] %vm148_vm0, %v2662_v0  ;;  %164 = vst.msk [vmem:[#allocation2 + $0x168] sm:$0x3] %vm148_vm0, %v2662_v0  ;;  %s3658_s6 = smov (!%p132_p4, %s2652_s6), 1 }
   0xf   : > { %165 = vst.msk [vmem:[#allocation2 + $0x12] sm:$0x3] %vm148_vm0, %v2662_v0  ;;  %166 = vst.msk [vmem:[#allocation2 + $0x2a] sm:$0x3] %vm148_vm0, %v2662_v0  ;;  %s2611_s10 = sshll.u32 %s3658_s6, 8  ;;  %s2612_s14 = sshll.u32 %s3658_s6, 10 }
  0x10   : > { %167 = vst.msk [vmem:[#allocation2 + $0x42] sm:$0x3] %vm148_vm0, %v2662_v0  ;;  %168 = vst.msk [vmem:[#allocation2 + $0x5a] sm:$0x3] %vm148_vm0, %v2662_v0  ;;  %s2735_s13 = scalar_lea.vmem %s3651_s0, %s2611_s10  ;;  %s2882_s17 = scalar_lea.vmem %s3652_s1, %s2612_s14 }
  0x11   : > { %169 = vst.msk [vmem:[#allocation2 + $0x72] sm:$0x3] %vm148_vm0, %v2662_v0  ;;  %170 = vst.msk [vmem:[#allocation2 + $0x8a] sm:$0x3] %vm148_vm0, %v2662_v0  ;;  %v427_v1 = vld [vmem:[%s2735_s13] sm:$0xff]  ;;  %v2253_v2 = vld [vmem:[%s2735_s13 + $0x10] sm:$0xff] }
  0x12   : > { %171 = vst.msk [vmem:[#allocation2 + $0xa2] sm:$0x3] %vm148_vm0, %v2662_v0  ;;  %172 = vst.msk [vmem:[#allocation2 + $0xba] sm:$0x3] %vm148_vm0, %v2662_v0  ;;  %v2255_v3 = vld [vmem:[%s2735_s13 + $0x20] sm:$0xff]  ;;  %v431_v4 = vmax.f32 %v427_v1, %v2253_v2  ;;  %v428_v5 = vld [vmem:[%s2735_s13 + $0x8] sm:$0xff] }
  0x13   : > { %173 = vst.msk [vmem:[#allocation2 + $0xd2] sm:$0x3] %vm148_vm0, %v2662_v0  ;;  %174 = vst.msk [vmem:[#allocation2 + $0xea] sm:$0x3] %vm148_vm0, %v2662_v0  ;;  %v2254_v6 = vld [vmem:[%s2735_s13 + $0x18] sm:$0xff]  ;;  %v2256_v7 = vld [vmem:[%s2735_s13 + $0x28] sm:$0xff]  ;;  %v232_v8 = vmax.f32 %v2253_v2, %v2255_v3 }
  0x14   : > { %175 = vst.msk [vmem:[#allocation2 + $0x102] sm:$0x3] %vm148_vm0, %v2662_v0  ;;  %176 = vst.msk [vmem:[#allocation2 + $0x11a] sm:$0x3] %vm148_vm0, %v2662_v0  ;;  %v432_v9 = vmax.f32 %v428_v5, %v2254_v6  ;;  %v2744_v10 = vld [vmem:[%s2735_s13 + $0x30] sm:$0xff]  ;;  %v2747_v11 = vld [vmem:[%s2735_s13 + $0x38] sm:$0xff]  ;;  %v233_v13 = vmax.f32 %v2254_v6, %v2256_v7  ;;  %v435_v14 = vmax.f32 %v431_v4, %v2255_v3 }
  0x15   : > { %177 = vst.msk [vmem:[#allocation2 + $0x132] sm:$0x3] %vm148_vm0, %v2662_v0  ;;  %178 = vst.msk [vmem:[#allocation2 + $0x14a] sm:$0x3] %vm148_vm0, %v2662_v0  ;;  %v2750_v12 = vld [vmem:[%s2735_s13 + $0xf0] sm:$0xff]  ;;  %v2753_v15 = vld [vmem:[%s2735_s13 + $0xe0] sm:$0xff]  ;;  %v281_v18 = vmax.f32 %v232_v8, %v2744_v10  ;;  %v234_v19 = vmax.f32 %v2255_v3, %v2744_v10  ;;  %v235_v20 = vmax.f32 %v2256_v7, %v2747_v11 }
  0x16   : > { %179 = vst.msk [vmem:[#allocation2 + $0x162] sm:$0x3] %vm148_vm0, %v2662_v0  ;;  %180 = vst.msk [vmem:[#allocation2 + $0x17a] sm:$0x3] %vm148_vm0, %v2662_v0  ;;  %v2756_v16 = vld [vmem:[%s2735_s13 + $0xd0] sm:$0xff]  ;;  %v2759_v17 = vld [vmem:[%s2735_s13 + $0xf8] sm:$0xff]  ;;  %v436_v21 = vmax.f32 %v432_v9, %v2256_v7  ;;  %v447_v22 = vmax.f32 %v2750_v12, %v2753_v15  ;;  %v282_v25 = vmax.f32 %v233_v13, %v2747_v11 }
  0x17   : > { %v2767_v23 = vld [vmem:[%s2735_s13 + $0xe8] sm:$0xff]  ;;  %v2770_v24 = vld [vmem:[%s2735_s13 + $0xd8] sm:$0xff]  ;;  %459 = vst.msk [vmem:[#allocation2 + $0x2] sm:$0xff] %vm402_vm1, %v435_v14  ;;  %v439_v26 = vmax.f32 %v435_v14, %v2744_v10  ;;  %v2229_v28 = vld [vmem:[%s2735_s13 + $0x40] sm:$0xff] }
  0x18   : > { %v448_v27 = vmax.f32 %v2759_v17, %v2767_v23  ;;  %v2230_v29 = vld [vmem:[%s2735_s13 + $0x48] sm:$0xff]  ;;  %460 = vst.msk [vmem:[#allocation2 + $0xa] sm:$0xff] %vm402_vm1, %v436_v21  ;;  %v440_v30 = vmax.f32 %v436_v21, %v2747_v11  ;;  %v452_v31 = vmax.f32 %v447_v22, %v2756_v16  ;;  %v2783_v32 = vld [vmem:[%s2735_s13 + $0xc0] sm:$0xff]  ;;  %v330_v33 = vmax.f32 %v281_v18, %v2229_v28  ;;  %v2231_v37 = vld [vmem:[%s2735_s13 + $0x50] sm:$0xff] }
  0x19   : > { %v331_v34 = vmax.f32 %v282_v25, %v2230_v29  ;;  %462 = vst.msk [vmem:[#allocation2 + $0x1a] sm:$0xff] %vm402_vm1, %v439_v26  ;;  %v377_v36 = vmax.f32 %v439_v26, %v2229_v28  ;;  %v2232_v38 = vld [vmem:[%s2735_s13 + $0x58] sm:$0xff]  ;;  %v283_v39 = vmax.f32 %v234_v19, %v2229_v28  ;;  %v2233_v40 = vld [vmem:[%s2735_s13 + $0x60] sm:$0xff]  ;;  %v284_v41 = vmax.f32 %v235_v20, %v2230_v29  ;;  %v2794_v43 = vld [vmem:[%s2735_s13 + $0xc8] sm:$0xff] }
  0x1a   : > { %v453_v35 = vmax.f32 %v448_v27, %v2770_v24  ;;  %463 = vst.msk [vmem:[#allocation2 + $0x22] sm:$0xff] %vm402_vm1, %v440_v30  ;;  %465 = vst.msk [vmem:[#allocation2 + $0x16a] sm:$0xff] %vm402_vm1, %v452_v31  ;;  %v457_v42 = vmax.f32 %v452_v31, %v2783_v32  ;;  %v378_v44 = vmax.f32 %v440_v30, %v2230_v29  ;;  %v2234_v47 = vld [vmem:[%s2735_s13 + $0x68] sm:$0xff]  ;;  %v2235_v52 = vld [vmem:[%s2735_s13 + $0x70] sm:$0xff] }
  0x1b   : > { %v379_v45 = vmax.f32 %v330_v33, %v2231_v37  ;;  %v380_v46 = vmax.f32 %v331_v34, %v2232_v38  ;;  %403 = vst.msk [vmem:[#allocation2 + $0x32] sm:$0xff] %vm402_vm1, %v377_v36  ;;  %v332_v49 = vmax.f32 %v283_v39, %v2231_v37  ;;  %v333_v50 = vmax.f32 %v284_v41, %v2232_v38  ;;  %v2236_v54 = vld [vmem:[%s2735_s13 + $0x78] sm:$0xff]  ;;  %v2237_v3 = vld [vmem:[%s2735_s13 + $0x80] sm:$0xff]  ;;  %v2239_v14 = vld [vmem:[%s2735_s13 + $0x90] sm:$0xff] }
  0x1c   : > { %466 = vst.msk [vmem:[#allocation2 + $0x172] sm:$0xff] %vm402_vm1, %v453_v35  ;;  %v458_v48 = vmax.f32 %v453_v35, %v2794_v43  ;;  %v236_v51 = vmax.f32 %v2744_v10, %v2229_v28  ;;  %468 = vst.msk [vmem:[#allocation2 + $0x152] sm:$0xff] %vm402_vm1, %v457_v42  ;;  %v237_v53 = vmax.f32 %v2747_v11, %v2230_v29  ;;  %v2238_v10 = vld [vmem:[%s2735_s13 + $0x88] sm:$0xff]  ;;  %v2240_v19 = vld [vmem:[%s2735_s13 + $0x98] sm:$0xff] }
  0x1d   : > { %404 = vst.msk [vmem:[#allocation2 + $0x3a] sm:$0xff] %vm402_vm1, %v378_v44  ;;  %405 = vst.msk [vmem:[#allocation2 + $0x4a] sm:$0xff] %vm402_vm1, %v379_v45  ;;  %v238_v55 = vmax.f32 %v2229_v28, %v2231_v37  ;;  %v239_v56 = vmax.f32 %v2230_v29, %v2232_v38  ;;  %v240_v57 = vmax.f32 %v2231_v37, %v2233_v40  ;;  %v2241_v21 = vld [vmem:[%s2735_s13 + $0xa0] sm:$0xff]  ;;  %v2242_v29 = vld [vmem:[%s2735_s13 + $0xa8] sm:$0xff] }
  0x1e   : > { %406 = vst.msk [vmem:[#allocation2 + $0x52] sm:$0xff] %vm402_vm1, %v380_v46  ;;  %469 = vst.msk [vmem:[#allocation2 + $0x15a] sm:$0xff] %vm402_vm1, %v458_v48  ;;  %v381_v58 = vmax.f32 %v332_v49, %v2233_v40  ;;  %v382_v59 = vmax.f32 %v333_v50, %v2234_v47  ;;  %v285_v60 = vmax.f32 %v236_v51, %v2231_v37  ;;  %v2823_v35 = vld [vmem:[%s2735_s13 + $0xb0] sm:$0xff]  ;;  %v2826_v37 = vld [vmem:[%s2735_s13 + $0xb8] sm:$0xff] }
  0x1f   : > { %v241_v61 = vmax.f32 %v2232_v38, %v2234_v47  ;;  %v286_v62 = vmax.f32 %v237_v53, %v2232_v38  ;;  %v287_v63 = vmax.f32 %v238_v55, %v2233_v40  ;;  %v288_v0 = vmax.f32 %v239_v56, %v2234_v47 }
  0x20   : > { %v289_v1 = vmax.f32 %v240_v57, %v2235_v52  ;;  %407 = vst.msk [vmem:[#allocation2 + $0x62] sm:$0xff] %vm402_vm1, %v381_v58  ;;  %408 = vst.msk [vmem:[#allocation2 + $0x6a] sm:$0xff] %vm402_vm1, %v382_v59  ;;  %v334_v2 = vmax.f32 %v285_v60, %v2233_v40  ;;  %v242_v5 = vmax.f32 %v2233_v40, %v2235_v52  ;;  %v470_v58 = vld [vmem:[#allocation2] sm:$0xff]  ;;  %v471_v60 = vld [vmem:[#allocation2 + $0x8] sm:$0xff] }
  0x21   : > { %v290_v4 = vmax.f32 %v241_v61, %v2236_v54  ;;  %v243_v6 = vmax.f32 %v2234_v47, %v2236_v54  ;;  %v335_v7 = vmax.f32 %v286_v62, %v2234_v47  ;;  %v336_v8 = vmax.f32 %v287_v63, %v2235_v52  ;;  %v502_v59 = vld [vmem:[#allocation2 + $0x1] sm:$0xff] }
  0x22   : > { %v337_v9 = vmax.f32 %v288_v0, %v2236_v54  ;;  %v338_v11 = vmax.f32 %v289_v1, %v2237_v3  ;;  %v383_v13 = vmax.f32 %v334_v2, %v2235_v52  ;;  %v291_v20 = vmax.f32 %v242_v5, %v2237_v3  ;;  %v566_v1 = vld [vmem:[#allocation2 + $0x2] sm:$0xff] }
  0x23   : > { %v339_v18 = vmax.f32 %v290_v4, %v2238_v10  ;;  %v292_v22 = vmax.f32 %v243_v6, %v2238_v10  ;;  %v384_v25 = vmax.f32 %v335_v7, %v2236_v54  ;;  %v385_v26 = vmax.f32 %v336_v8, %v2237_v3  ;;  %v503_v2 = vld [vmem:[#allocation2 + $0x9] sm:$0xff]  ;;  %v504_v4 = vld [vmem:[#allocation2 + $0x19] sm:$0xff] }
  0x24   : > { %v386_v27 = vmax.f32 %v337_v9, %v2238_v10  ;;  %v387_v28 = vmax.f32 %v338_v11, %v2239_v14  ;;  %409 = vst.msk [vmem:[#allocation2 + $0x7a] sm:$0xff] %vm402_vm1, %v383_v13  ;;  %v340_v31 = vmax.f32 %v291_v20, %v2239_v14  ;;  %v244_v34 = vmax.f32 %v2235_v52, %v2237_v3  ;;  %v567_v9 = vld [vmem:[#allocation2 + $0xa] sm:$0xff]  ;;  %v505_v11 = vld [vmem:[#allocation2 + $0x21] sm:$0xff] }
  0x25   : > { %v388_v30 = vmax.f32 %v339_v18, %v2240_v19  ;;  %v341_v33 = vmax.f32 %v292_v22, %v2240_v19  ;;  %410 = vst.msk [vmem:[#allocation2 + $0x82] sm:$0xff] %vm402_vm1, %v384_v25  ;;  %411 = vst.msk [vmem:[#allocation2 + $0x92] sm:$0xff] %vm402_vm1, %v385_v26  ;;  %v245_v36 = vmax.f32 %v2236_v54, %v2238_v10  ;;  %v2852_v20 = vld [vmem:[#allocation2 + $0x3] sm:$0xff]  ;;  %v498_v25 = vld [vmem:[#allocation2 + $0x150] sm:$0xff] }
  0x26   : > { %412 = vst.msk [vmem:[#allocation2 + $0x9a] sm:$0xff] %vm402_vm1, %v386_v27  ;;  %413 = vst.msk [vmem:[#allocation2 + $0xaa] sm:$0xff] %vm402_vm1, %v387_v28  ;;  %v246_v38 = vmax.f32 %v2237_v3, %v2239_v14  ;;  %v247_v39 = vmax.f32 %v2238_v10, %v2240_v19  ;;  %v248_v40 = vmax.f32 %v2239_v14, %v2241_v21  ;;  %v472_v3 = vld [vmem:[#allocation2 + $0x18] sm:$0xff]  ;;  %v473_v10 = vld [vmem:[#allocation2 + $0x20] sm:$0xff] }
  0x27   : > { %414 = vst.msk [vmem:[#allocation2 + $0xb2] sm:$0xff] %vm402_vm1, %v388_v30  ;;  %v389_v41 = vmax.f32 %v340_v31, %v2241_v21  ;;  %v390_v42 = vmax.f32 %v341_v33, %v2242_v29  ;;  %v293_v44 = vmax.f32 %v244_v34, %v2239_v14  ;;  %v249_v45 = vmax.f32 %v2240_v19, %v2242_v29  ;;  %v569_v22 = vld [vmem:[#allocation2 + $0x22] sm:$0xff]  ;;  %v499_v30 = vld [vmem:[#allocation2 + $0x158] sm:$0xff] }
  0x28   : > { %v294_v46 = vmax.f32 %v245_v36, %v2240_v19  ;;  %v295_v47 = vmax.f32 %v246_v38, %v2241_v21  ;;  %v296_v48 = vmax.f32 %v247_v39, %v2242_v29  ;;  %v297_v49 = vmax.f32 %v248_v40, %v2823_v35  ;;  %v531_v31 = vld [vmem:[#allocation2 + $0x159] sm:$0xff]  ;;  %v631_v36 = vld [vmem:[#allocation2 + $0xb] sm:$0xff] }
  0x29   : > { %415 = vst.msk [vmem:[#allocation2 + $0xc2] sm:$0xff] %vm402_vm1, %v389_v41  ;;  %416 = vst.msk [vmem:[#allocation2 + $0xca] sm:$0xff] %vm402_vm1, %v390_v42  ;;  %v342_v50 = vmax.f32 %v293_v44, %v2241_v21  ;;  %v298_v51 = vmax.f32 %v249_v45, %v2826_v37  ;;  %v250_v52 = vmax.f32 %v2241_v21, %v2823_v35  ;;  %v568_v21 = vld [vmem:[#allocation2 + $0x1a] sm:$0xff]  ;;  %v594_v40 = vld [vmem:[#allocation2 + $0x152] sm:$0xff] }
  0x2a   : > { %v251_v53 = vmax.f32 %v2242_v29, %v2826_v37  ;;  %v343_v54 = vmax.f32 %v294_v46, %v2242_v29  ;;  %v344_v55 = vmax.f32 %v295_v47, %v2823_v35  ;;  %v345_v56 = vmax.f32 %v296_v48, %v2826_v37  ;;  %v530_v29 = vld [vmem:[#allocation2 + $0x151] sm:$0xff]  ;;  %v632_v38 = vld [vmem:[#allocation2 + $0x1b] sm:$0xff]  ;;  %v633_v44 = vld [vmem:[#allocation2 + $0x23] sm:$0xff] }
  0x2b   : > { %v346_v57 = vmax.f32 %v297_v49, %v2783_v32  ;;  %v391_v61 = vmax.f32 %v342_v50, %v2823_v35  ;;  %v347_v62 = vmax.f32 %v298_v51, %v2794_v43  ;;  %v299_v63 = vmax.f32 %v250_v52, %v2783_v32  ;;  %v2866_v45 = vld [vmem:[#allocation2 + $0x153] sm:$0xff]  ;;  %v2868_v47 = vld [vmem:[#allocation2 + $0x15b] sm:$0xff]  ;;  %v2870_v48 = vld [vmem:[#allocation2 + $0x168] sm:$0xff] }
  0x2c   : > { %v300_v0 = vmax.f32 %v251_v53, %v2794_v43  ;;  %v392_v5 = vmax.f32 %v343_v54, %v2826_v37  ;;  %v393_v6 = vmax.f32 %v344_v55, %v2783_v32  ;;  %v394_v7 = vmax.f32 %v345_v56, %v2794_v43  ;;  %v595_v46 = vld [vmem:[#allocation2 + $0x15a] sm:$0xff]  ;;  %v694_v49 = vld [vmem:[#allocation2 + $0x4] sm:$0xff]  ;;  %v695_v50 = vld [vmem:[#allocation2 + $0xc] sm:$0xff] }
  0x2d   : > { %v395_v8 = vmax.f32 %v346_v57, %v2756_v16  ;;  %417 = vst.msk [vmem:[#allocation2 + $0xda] sm:$0xff] %vm402_vm1, %v391_v61  ;;  %v396_v13 = vmax.f32 %v347_v62, %v2770_v24  ;;  %v348_v14 = vmax.f32 %v299_v63, %v2756_v16  ;;  %v252_v19 = vmax.f32 %v2823_v35, %v2783_v32  ;;  %v532_v54 = vld [vmem:[#allocation2 + $0x169] sm:$0xff]  ;;  %v533_v56 = vld [vmem:[#allocation2 + $0x171] sm:$0xff]  ;;  %v723_v63 = vld [vmem:[#allocation2 + $0x15c] sm:$0xff] }
  0x2e   : > { %v349_v18 = vmax.f32 %v300_v0, %v2770_v24  ;;  %418 = vst.msk [vmem:[#allocation2 + $0xe2] sm:$0xff] %vm402_vm1, %v392_v5  ;;  %419 = vst.msk [vmem:[#allocation2 + $0xf2] sm:$0xff] %vm402_vm1, %v393_v6  ;;  %v253_v26 = vmax.f32 %v2826_v37, %v2794_v43  ;;  %v534_v27 = vmax.f32 %v470_v58, %v502_v59  ;;  %v501_v55 = vld [vmem:[#allocation2 + $0x170] sm:$0xff]  ;;  %v697_v61 = vld [vmem:[#allocation2 + $0x24] sm:$0xff] }
  0x2f   : > { %420 = vst.msk [vmem:[#allocation2 + $0xfa] sm:$0xff] %vm402_vm1, %v394_v7  ;;  %421 = vst.msk [vmem:[#allocation2 + $0x10a] sm:$0xff] %vm402_vm1, %v395_v8  ;;  %v535_v28 = vmax.f32 %v471_v60, %v503_v2  ;;  %v536_v32 = vmax.f32 %v472_v3, %v504_v4  ;;  %v397_v33 = vmax.f32 %v348_v14, %v2753_v15  ;;  %v722_v62 = vld [vmem:[#allocation2 + $0x154] sm:$0xff]  ;;  %v476_v7 = vld [vmem:[#allocation2 + $0x48] sm:$0xff] }
  0x30   : > { %422 = vst.msk [vmem:[#allocation2 + $0x112] sm:$0xff] %vm402_vm1, %v396_v13  ;;  %v398_v34 = vmax.f32 %v349_v18, %v2767_v23  ;;  %v301_v35 = vmax.f32 %v252_v19, %v2756_v16  ;;  %v537_v39 = vmax.f32 %v473_v10, %v505_v11  ;;  %v302_v43 = vmax.f32 %v253_v26, %v2770_v24  ;;  %v696_v24 = vld [vmem:[#allocation2 + $0x1c] sm:$0xff]  ;;  %v474_v0 = vld [vmem:[#allocation2 + $0x30] sm:$0xff] }
  0x31   : > { %v598_v37 = vmax.f32 %v534_v27, %v566_v1  ;;  %v599_v41 = vmax.f32 %v535_v28, %v567_v9  ;;  %v600_v42 = vmax.f32 %v536_v32, %v568_v21  ;;  %423 = vst.msk [vmem:[#allocation2 + $0x122] sm:$0xff] %vm402_vm1, %v397_v33  ;;  %v562_v52 = vmax.f32 %v498_v25, %v530_v29  ;;  %v506_v1 = vld [vmem:[#allocation2 + $0x31] sm:$0xff]  ;;  %v507_v6 = vld [vmem:[#allocation2 + $0x39] sm:$0xff]  ;;  %v508_v8 = vld [vmem:[#allocation2 + $0x49] sm:$0xff] }
  0x32   : > { %424 = vst.msk [vmem:[#allocation2 + $0x12a] sm:$0xff] %vm402_vm1, %v398_v34  ;;  %v350_v16 = vmax.f32 %v301_v35, %v2753_v15  ;;  %v601_v51 = vmax.f32 %v537_v39, %v569_v22  ;;  %v563_v53 = vmax.f32 %v499_v30, %v531_v31  ;;  %v351_v57 = vmax.f32 %v302_v43, %v2767_v23  ;;  %v596_v15 = vld [vmem:[#allocation2 + $0x16a] sm:$0xff]  ;;  %v475_v2 = vld [vmem:[#allocation2 + $0x38] sm:$0xff]  ;;  %v478_v27 = vld [vmem:[#allocation2 + $0x60] sm:$0xff] }
  0x33   : > { %v662_v58 = vmax.f32 %v598_v37, %v2852_v20  ;;  %v663_v59 = vmax.f32 %v599_v41, %v631_v36  ;;  %v664_v60 = vmax.f32 %v600_v42, %v632_v38  ;;  %v626_v4 = vmax.f32 %v562_v52, %v594_v40  ;;  %v660_v14 = vld [vmem:[#allocation2 + $0x16b] sm:$0xff]  ;;  %v510_v33 = vld [vmem:[#allocation2 + $0x61] sm:$0xff]  ;;  %v725_v40 = vld [vmem:[#allocation2 + $0x174] sm:$0xff] }
  0x34   : > { %v399_v3 = vmax.f32 %v350_v16, %v2750_v12  ;;  %v665_v23 = vmax.f32 %v601_v51, %v633_v44  ;;  %v627_v5 = vmax.f32 %v563_v53, %v595_v46  ;;  %v400_v9 = vmax.f32 %v351_v57, %v2759_v17  ;;  %v597_v18 = vld [vmem:[#allocation2 + $0x172] sm:$0xff]  ;;  %v479_v34 = vld [vmem:[#allocation2 + $0x68] sm:$0xff]  ;;  %v571_v37 = vld [vmem:[#allocation2 + $0x3a] sm:$0xff] }
  0x35   : > { %v726_v10 = vmax.f32 %v662_v58, %v694_v49  ;;  %v727_v11 = vmax.f32 %v663_v59, %v695_v50  ;;  %v728_v13 = vmax.f32 %v664_v60, %v696_v24  ;;  %v477_v19 = vld [vmem:[#allocation2 + $0x50] sm:$0xff]  ;;  %v690_v21 = vmax.f32 %v626_v4, %v2866_v45  ;;  %v699_v51 = vld [vmem:[#allocation2 + $0x3c] sm:$0xff] }
  0x36   : > { %v509_v20 = vld [vmem:[#allocation2 + $0x51] sm:$0xff]  ;;  %425 = vst.msk [vmem:[#allocation2 + $0x13a] sm:$0xff] %vm402_vm1, %v399_v3  ;;  %v729_v12 = vmax.f32 %v665_v23, %v697_v61  ;;  %v691_v22 = vmax.f32 %v627_v5, %v2868_v47  ;;  %v564_v25 = vmax.f32 %v2870_v48, %v532_v54  ;;  %426 = vst.msk [vmem:[#allocation2 + $0x142] sm:$0xff] %vm402_vm1, %v400_v9  ;;  %v511_v35 = vld [vmem:[#allocation2 + $0x69] sm:$0xff] }
  0x37   : > { %v661_v17 = vld [vmem:[#allocation2 + $0x173] sm:$0xff]  ;;  %758 = vst.msk [vmem:[%s2882_s17] sm:$0xff] %vm402_vm1, %v726_v10  ;;  %759 = vst.msk [vmem:[%s2882_s17 + $0x8] sm:$0xff] %vm402_vm1, %v727_v11  ;;  %v565_v32 = vmax.f32 %v501_v55, %v533_v56  ;;  %v538_v29 = vmax.f32 %v474_v0, %v506_v1  ;;  %v539_v30 = vmax.f32 %v475_v2, %v507_v6  ;;  %v572_v41 = vld [vmem:[#allocation2 + $0x4a] sm:$0xff] }
  0x38   : > { %v570_v26 = vld [vmem:[#allocation2 + $0x32] sm:$0xff]  ;;  %760 = vst.msk [vmem:[%s2882_s17 + $0x10] sm:$0xff] %vm402_vm1, %v728_v13  ;;  %v540_v31 = vmax.f32 %v476_v7, %v508_v8  ;;  %761 = vst.msk [vmem:[%s2882_s17 + $0x18] sm:$0xff] %vm402_vm1, %v729_v12  ;;  %v754_v36 = vmax.f32 %v690_v21, %v722_v62  ;;  %v755_v38 = vmax.f32 %v691_v22, %v723_v63  ;;  %v635_v47 = vld [vmem:[#allocation2 + $0x3b] sm:$0xff] }
  0x39   : > { %v724_v28 = vld [vmem:[#allocation2 + $0x16c] sm:$0xff]  ;;  %v628_v39 = vmax.f32 %v564_v25, %v596_v15  ;;  %v541_v42 = vmax.f32 %v477_v19, %v509_v20  ;;  %v629_v44 = vmax.f32 %v565_v32, %v597_v18  ;;  %v602_v45 = vmax.f32 %v538_v29, %v570_v26  ;;  %v698_v24 = vld [vmem:[#allocation2 + $0x34] sm:$0xff]  ;;  %v574_v56 = vld [vmem:[#allocation2 + $0x62] sm:$0xff] }
  0x3a   : > { %v634_v43 = vld [vmem:[#allocation2 + $0x33] sm:$0xff]  ;;  %v603_v46 = vmax.f32 %v539_v30, %v571_v37  ;;  %v604_v48 = vmax.f32 %v540_v31, %v572_v41  ;;  %v636_v16 = vld [vmem:[#allocation2 + $0x4b] sm:$0xff]  ;;  %786 = vst.msk [vmem:[%s2882_s17 + $0xe0] sm:$0xff] %vm402_vm1, %v754_v36  ;;  %787 = vst.msk [vmem:[%s2882_s17 + $0xe8] sm:$0xff] %vm402_vm1, %v755_v38  ;;  %v542_v55 = vmax.f32 %v478_v27, %v510_v33 }
  0x3b   : > { %v573_v49 = vld [vmem:[#allocation2 + $0x52] sm:$0xff]  ;;  %v692_v50 = vmax.f32 %v628_v39, %v660_v14  ;;  %v543_v57 = vmax.f32 %v479_v34, %v511_v35  ;;  %v575_v58 = vld [vmem:[#allocation2 + $0x6a] sm:$0xff]  ;;  %v693_v59 = vmax.f32 %v629_v44, %v661_v17  ;;  %v666_v60 = vmax.f32 %v602_v45, %v634_v43  ;;  %v481_v2 = vld [vmem:[#allocation2 + $0x80] sm:$0xff] }
  0x3c   : > { %v700_v52 = vld [vmem:[#allocation2 + $0x4c] sm:$0xff]  ;;  %v605_v53 = vmax.f32 %v541_v42, %v573_v49  ;;  %v667_v61 = vmax.f32 %v603_v46, %v635_v47  ;;  %v668_v62 = vmax.f32 %v604_v48, %v636_v16  ;;  %v701_v63 = vld [vmem:[#allocation2 + $0x54] sm:$0xff]  ;;  %v638_v15 = vld [vmem:[#allocation2 + $0x63] sm:$0xff]  ;;  %v606_v4 = vmax.f32 %v542_v55, %v574_v56 }
  0x3d   : > { %v637_v54 = vld [vmem:[#allocation2 + $0x53] sm:$0xff]  ;;  %v756_v3 = vmax.f32 %v692_v50, %v724_v28  ;;  %v607_v5 = vmax.f32 %v543_v57, %v575_v58  ;;  %v513_v6 = vld [vmem:[#allocation2 + $0x81] sm:$0xff]  ;;  %v757_v9 = vmax.f32 %v693_v59, %v725_v40  ;;  %v730_v10 = vmax.f32 %v666_v60, %v698_v24  ;;  %v639_v14 = vld [vmem:[#allocation2 + $0x6b] sm:$0xff] }
  0x3e   : > { %v480_v0 = vld [vmem:[#allocation2 + $0x78] sm:$0xff]  ;;  %v669_v23 = vmax.f32 %v605_v53, %v637_v54  ;;  %v482_v7 = vld [vmem:[#allocation2 + $0x90] sm:$0xff]  ;;  %v731_v11 = vmax.f32 %v667_v61, %v699_v51  ;;  %v732_v13 = vmax.f32 %v668_v62, %v700_v52  ;;  %v670_v12 = vmax.f32 %v606_v4, %v638_v15  ;;  %v702_v21 = vld [vmem:[#allocation2 + $0x64] sm:$0xff] }
  0x3f   : > { %v512_v1 = vld [vmem:[#allocation2 + $0x79] sm:$0xff]  ;;  %v514_v8 = vld [vmem:[#allocation2 + $0x91] sm:$0xff]  ;;  %788 = vst.msk [vmem:[%s2882_s17 + $0xf0] sm:$0xff] %vm402_vm1, %v756_v3  ;;  %v671_v22 = vmax.f32 %v607_v5, %v639_v14  ;;  %789 = vst.msk [vmem:[%s2882_s17 + $0xf8] sm:$0xff] %vm402_vm1, %v757_v9  ;;  %v545_v32 = vmax.f32 %v481_v2, %v513_v6 }
  0x40   : > { %v483_v18 = vld [vmem:[#allocation2 + $0x98] sm:$0xff]  ;;  %v733_v20 = vmax.f32 %v669_v23, %v701_v63  ;;  %v703_v25 = vld [vmem:[#allocation2 + $0x6c] sm:$0xff]  ;;  %v544_v17 = vmax.f32 %v480_v0, %v512_v1  ;;  %762 = vst.msk [vmem:[%s2882_s17 + $0x20] sm:$0xff] %vm402_vm1, %v730_v10  ;;  %763 = vst.msk [vmem:[%s2882_s17 + $0x28] sm:$0xff] %vm402_vm1, %v731_v11  ;;  %v546_v30 = vmax.f32 %v482_v7, %v514_v8 }
  0x41   : > { %v515_v19 = vld [vmem:[#allocation2 + $0x99] sm:$0xff]  ;;  %v2906_v27 = vld [vmem:[%s2882_s17 + $0x10] sm:$0xff]  ;;  %764 = vst.msk [vmem:[%s2882_s17 + $0x30] sm:$0xff] %vm402_vm1, %v732_v13  ;;  %v577_v29 = vld [vmem:[#allocation2 + $0x82] sm:$0xff]  ;;  %v734_v34 = vmax.f32 %v670_v12, %v702_v21  ;;  %v735_v35 = vmax.f32 %v671_v22, %v703_v25 }
  0x42   : > { %v576_v26 = vld [vmem:[#allocation2 + $0x7a] sm:$0xff]  ;;  %v578_v31 = vld [vmem:[#allocation2 + $0x92] sm:$0xff]  ;;  %v547_v33 = vmax.f32 %v483_v18, %v515_v19  ;;  %765 = vst.msk [vmem:[%s2882_s17 + $0x38] sm:$0xff] %vm402_vm1, %v733_v20  ;;  %v641_v38 = vld [vmem:[#allocation2 + $0x83] sm:$0xff]  ;;  %v609_v44 = vmax.f32 %v545_v32, %v577_v29 }
  0x43   : > { %v640_v28 = vld [vmem:[#allocation2 + $0x7b] sm:$0xff]  ;;  %v608_v36 = vmax.f32 %v544_v17, %v576_v26  ;;  %v484_v40 = vld [vmem:[#allocation2 + $0xa8] sm:$0xff]  ;;  %v610_v45 = vmax.f32 %v546_v30, %v578_v31  ;;  %v642_v46 = vld [vmem:[#allocation2 + $0x93] sm:$0xff]  ;;  %766 = vst.msk [vmem:[%s2882_s17 + $0x40] sm:$0xff] %vm402_vm1, %v734_v34 }
  0x44   : > { %v579_v39 = vld [vmem:[#allocation2 + $0x9a] sm:$0xff]  ;;  %v516_v43 = vld [vmem:[#allocation2 + $0xa9] sm:$0xff]  ;;  %767 = vst.msk [vmem:[%s2882_s17 + $0x48] sm:$0xff] %vm402_vm1, %v735_v35  ;;  %v673_v55 = vmax.f32 %v609_v44, %v641_v38  ;;  %v517_v60 = vld [vmem:[#allocation2 + $0xb1] sm:$0xff] }
  0x45   : > { %v790_v37 = vld [vmem:[%s2882_s17] sm:$0xff]  ;;  %v793_v41 = vld [vmem:[%s2882_s17 + $0x18] sm:$0xff]  ;;  %v611_v47 = vmax.f32 %v547_v33, %v579_v39  ;;  %v548_v48 = vmax.f32 %v484_v40, %v516_v43  ;;  %v672_v49 = vmax.f32 %v608_v36, %v640_v28  ;;  %v580_v52 = vld [vmem:[#allocation2 + $0xaa] sm:$0xff]  ;;  %v674_v56 = vmax.f32 %v610_v45, %v642_v46 }
  0x46   : > { %v704_v42 = vld [vmem:[#allocation2 + $0x7c] sm:$0xff]  ;;  %v839_v16 = vmax.f32 %v790_v37, %v2906_v27  ;;  %v705_v50 = vld [vmem:[#allocation2 + $0x84] sm:$0xff]  ;;  %v706_v24 = vld [vmem:[#allocation2 + $0x94] sm:$0xff] }
  0x47   : > { %v643_v51 = vld [vmem:[#allocation2 + $0x9b] sm:$0xff]  ;;  %v485_v53 = vld [vmem:[#allocation2 + $0xb0] sm:$0xff]  ;;  %v791_v54 = vld [vmem:[%s2882_s17 + $0x8] sm:$0xff]  ;;  %v612_v59 = vmax.f32 %v548_v48, %v580_v52  ;;  %v736_v62 = vmax.f32 %v672_v49, %v704_v42  ;;  %v737_v2 = vmax.f32 %v673_v55, %v705_v50  ;;  %v738_v3 = vmax.f32 %v674_v56, %v706_v24 }
  0x48   : > { %v675_v57 = vmax.f32 %v611_v47, %v643_v51  ;;  %v707_v58 = vld [vmem:[#allocation2 + $0x9c] sm:$0xff]  ;;  %v840_v61 = vmax.f32 %v791_v54, %v793_v41  ;;  %v644_v63 = vld [vmem:[#allocation2 + $0xab] sm:$0xff]  ;;  %v549_v15 = vmax.f32 %v485_v53, %v517_v60  ;;  %v645_v25 = vld [vmem:[#allocation2 + $0xb3] sm:$0xff] }
  0x49   : > { %v486_v0 = vld [vmem:[#allocation2 + $0xc0] sm:$0xff]  ;;  %v676_v4 = vmax.f32 %v612_v59, %v644_v63  ;;  %v581_v5 = vld [vmem:[#allocation2 + $0xb2] sm:$0xff]  ;;  %v795_v7 = vld [vmem:[%s2882_s17 + $0x28] sm:$0xff]  ;;  %768 = vst.msk [vmem:[%s2882_s17 + $0x50] sm:$0xff] %vm402_vm1, %v736_v62 }
  0x4a   : > { %v518_v1 = vld [vmem:[#allocation2 + $0xc1] sm:$0xff]  ;;  %v739_v23 = vmax.f32 %v675_v57, %v707_v58  ;;  %v613_v8 = vmax.f32 %v549_v15, %v581_v5  ;;  %v842_v11 = vmax.f32 %v793_v41, %v795_v7  ;;  %v796_v13 = vld [vmem:[%s2882_s17 + $0x30] sm:$0xff]  ;;  %v797_v14 = vld [vmem:[%s2882_s17 + $0x38] sm:$0xff]  ;;  %769 = vst.msk [vmem:[%s2882_s17 + $0x58] sm:$0xff] %vm402_vm1, %v737_v2  ;;  %v889_v20 = vmax.f32 %v840_v61, %v795_v7 }
  0x4b   : > { %v794_v6 = vld [vmem:[%s2882_s17 + $0x20] sm:$0xff]  ;;  %770 = vst.msk [vmem:[%s2882_s17 + $0x60] sm:$0xff] %vm402_vm1, %v738_v3  ;;  %v708_v18 = vld [vmem:[#allocation2 + $0xac] sm:$0xff]  ;;  %v550_v19 = vmax.f32 %v486_v0, %v518_v1  ;;  %v844_v21 = vmax.f32 %v795_v7, %v797_v14  ;;  %v488_v38 = vld [vmem:[#allocation2 + $0xd8] sm:$0xff] }
  0x4c   : > { %v841_v9 = vmax.f32 %v2906_v27, %v794_v6  ;;  %v888_v10 = vmax.f32 %v839_v16, %v794_v6  ;;  %771 = vst.msk [vmem:[%s2882_s17 + $0x68] sm:$0xff] %vm402_vm1, %v739_v23  ;;  %v843_v12 = vmax.f32 %v794_v6, %v796_v13  ;;  %v740_v22 = vmax.f32 %v676_v4, %v708_v18  ;;  %v798_v28 = vld [vmem:[%s2882_s17 + $0x40] sm:$0xff]  ;;  %v2942_v32 = vld [vmem:[%s2882_s17 + $0x48] sm:$0xff]  ;;  %v709_v42 = vld [vmem:[#allocation2 + $0xb4] sm:$0xff] }
  0x4d   : > { %v891_v27 = vmax.f32 %v842_v11, %v797_v14  ;;  %v677_v29 = vmax.f32 %v613_v8, %v645_v25  ;;  %v2944_v30 = vld [vmem:[#allocation2 + $0xc8] sm:$0xff]  ;;  %1067 = vst.msk [vmem:[#allocation2 + $0xa] sm:$0xff] %vm402_vm1, %v889_v20  ;;  %v938_v31 = vmax.f32 %v889_v20, %v797_v14  ;;  %v845_v33 = vmax.f32 %v796_v13, %v798_v28  ;;  %v520_v39 = vld [vmem:[#allocation2 + $0xd9] sm:$0xff]  ;;  %v490_v1 = vld [vmem:[#allocation2 + $0xf0] sm:$0xff] }
  0x4e   : > { %1066 = vst.msk [vmem:[#allocation2 + $0x2] sm:$0xff] %vm402_vm1, %v888_v10  ;;  %v890_v17 = vmax.f32 %v841_v9, %v796_v13  ;;  %v937_v26 = vmax.f32 %v888_v10, %v796_v13  ;;  %v892_v34 = vmax.f32 %v843_v12, %v798_v28  ;;  %v846_v35 = vmax.f32 %v797_v14, %v2942_v32  ;;  %v519_v36 = vld [vmem:[#allocation2 + $0xc9] sm:$0xff]  ;;  %v489_v47 = vld [vmem:[#allocation2 + $0xe0] sm:$0xff]  ;;  %v522_v2 = vld [vmem:[#allocation2 + $0xf1] sm:$0xff] }
  0x4f   : > { %772 = vst.msk [vmem:[%s2882_s17 + $0x70] sm:$0xff] %vm402_vm1, %v740_v22  ;;  %v893_v37 = vmax.f32 %v844_v21, %v2942_v32  ;;  %v940_v41 = vmax.f32 %v891_v27, %v2942_v32  ;;  %1069 = vst.msk [vmem:[#allocation2 + $0x22] sm:$0xff] %vm402_vm1, %v938_v31  ;;  %v987_v44 = vmax.f32 %v938_v31, %v2942_v32  ;;  %v582_v46 = vld [vmem:[#allocation2 + $0xc2] sm:$0xff]  ;;  %v583_v0 = vld [vmem:[#allocation2 + $0xca] sm:$0xff] }
  0x50   : > { %1068 = vst.msk [vmem:[#allocation2 + $0x1a] sm:$0xff] %vm402_vm1, %v937_v26  ;;  %v939_v40 = vmax.f32 %v890_v17, %v798_v28  ;;  %v986_v43 = vmax.f32 %v937_v26, %v798_v28  ;;  %v741_v45 = vmax.f32 %v677_v29, %v709_v42  ;;  %v521_v48 = vld [vmem:[#allocation2 + $0xe1] sm:$0xff]  ;;  %v2957_v16 = vld [vmem:[%s2882_s17 + $0x50] sm:$0xff]  ;;  %v614_v49 = vmax.f32 %v550_v19, %v582_v46  ;;  %v491_v5 = vld [vmem:[#allocation2 + $0xf8] sm:$0xff] }
  0x51   : > { %v551_v50 = vmax.f32 %v2944_v30, %v519_v36  ;;  %v552_v24 = vmax.f32 %v488_v38, %v520_v39  ;;  %1011 = vst.msk [vmem:[#allocation2 + $0x3a] sm:$0xff] %vm402_vm1, %v987_v44  ;;  %v847_v51 = vmax.f32 %v798_v28, %v2957_v16  ;;  %v894_v52 = vmax.f32 %v845_v33, %v2957_v16  ;;  %v2966_v55 = vld [vmem:[%s2882_s17 + $0x58] sm:$0xff]  ;;  %v646_v15 = vld [vmem:[#allocation2 + $0xc3] sm:$0xff]  ;;  %v647_v12 = vld [vmem:[#allocation2 + $0xcb] sm:$0xff] }
  0x52   : > { %1010 = vst.msk [vmem:[#allocation2 + $0x32] sm:$0xff] %vm402_vm1, %v986_v43  ;;  %v941_v53 = vmax.f32 %v892_v34, %v2957_v16  ;;  %v988_v54 = vmax.f32 %v939_v40, %v2957_v16  ;;  %773 = vst.msk [vmem:[%s2882_s17 + $0x78] sm:$0xff] %vm402_vm1, %v741_v45  ;;  %v895_v56 = vmax.f32 %v846_v35, %v2966_v55  ;;  %v2974_v59 = vld [vmem:[%s2882_s17 + $0x60] sm:$0xff]  ;;  %v492_v18 = vld [vmem:[#allocation2 + $0x108] sm:$0xff] }
  0x53   : > { %v942_v57 = vmax.f32 %v893_v37, %v2966_v55  ;;  %v989_v58 = vmax.f32 %v940_v41, %v2966_v55  ;;  %v553_v60 = vmax.f32 %v489_v47, %v521_v48  ;;  %v943_v61 = vmax.f32 %v894_v52, %v2974_v59  ;;  %v2980_v63 = vld [vmem:[%s2882_s17 + $0x68] sm:$0xff]  ;;  %v523_v6 = vld [vmem:[#allocation2 + $0xf9] sm:$0xff]  ;;  %v493_v43 = vld [vmem:[#allocation2 + $0x110] sm:$0xff] }
  0x54   : > { %1012 = vst.msk [vmem:[#allocation2 + $0x4a] sm:$0xff] %vm402_vm1, %v988_v54  ;;  %v990_v62 = vmax.f32 %v941_v53, %v2974_v59  ;;  %v848_v3 = vmax.f32 %v2942_v32, %v2966_v55  ;;  %v849_v7 = vmax.f32 %v2957_v16, %v2974_v59  ;;  %v2992_v8 = vmax.f32 %v847_v51, %v2974_v59  ;;  %v710_v11 = vld [vmem:[#allocation2 + $0xc4] sm:$0xff]  ;;  %v584_v13 = vld [vmem:[#allocation2 + $0xda] sm:$0xff]  ;;  %v711_v27 = vld [vmem:[#allocation2 + $0xcc] sm:$0xff] }
  0x55   : > { %1013 = vst.msk [vmem:[#allocation2 + $0x52] sm:$0xff] %vm402_vm1, %v989_v58  ;;  %v991_v23 = vmax.f32 %v942_v57, %v2980_v63  ;;  %v944_v9 = vmax.f32 %v895_v56, %v2980_v63  ;;  %v585_v14 = vld [vmem:[#allocation2 + $0xe2] sm:$0xff]  ;;  %v678_v19 = vmax.f32 %v614_v49, %v646_v15  ;;  %v615_v20 = vmax.f32 %v551_v50, %v583_v0  ;;  %v586_v31 = vld [vmem:[#allocation2 + $0xf2] sm:$0xff]  ;;  %v587_v47 = vld [vmem:[#allocation2 + $0xfa] sm:$0xff] }
  0x56   : > { %v2987_v4 = vld [vmem:[%s2882_s17 + $0x70] sm:$0xff]  ;;  %1014 = vst.msk [vmem:[#allocation2 + $0x62] sm:$0xff] %vm402_vm1, %v990_v62  ;;  %v616_v21 = vmax.f32 %v552_v24, %v584_v13  ;;  %v648_v22 = vld [vmem:[#allocation2 + $0xdb] sm:$0xff]  ;;  %v617_v25 = vmax.f32 %v553_v60, %v585_v14  ;;  %v850_v26 = vmax.f32 %v2966_v55, %v2980_v63  ;;  %v649_v32 = vld [vmem:[#allocation2 + $0xe3] sm:$0xff]  ;;  %v554_v30 = vmax.f32 %v490_v1, %v522_v2 }
  0x57   : > { %v992_v10 = vmax.f32 %v943_v61, %v2987_v4  ;;  %1015 = vst.msk [vmem:[#allocation2 + $0x6a] sm:$0xff] %vm402_vm1, %v991_v23  ;;  %v524_v17 = vld [vmem:[#allocation2 + $0x109] sm:$0xff]  ;;  %v712_v28 = vld [vmem:[#allocation2 + $0xdc] sm:$0xff]  ;;  %v555_v33 = vmax.f32 %v491_v5, %v523_v6  ;;  %v742_v36 = vmax.f32 %v678_v19, %v710_v11  ;;  %v679_v38 = vmax.f32 %v615_v20, %v647_v12  ;;  %v525_v37 = vld [vmem:[#allocation2 + $0x111] sm:$0xff] }
  0x58   : > { %v713_v29 = vld [vmem:[#allocation2 + $0xe4] sm:$0xff]  ;;  %v556_v34 = vmax.f32 %v492_v18, %v524_v17  ;;  %v680_v39 = vmax.f32 %v616_v21, %v648_v22  ;;  %v681_v40 = vmax.f32 %v617_v25, %v649_v32  ;;  %v3005_v41 = vmax.f32 %v848_v3, %v2980_v63  ;;  %v650_v46 = vld [vmem:[#allocation2 + $0xf3] sm:$0xff]  ;;  %v651_v52 = vld [vmem:[#allocation2 + $0xfb] sm:$0xff] }
  0x59   : > { %1016 = vst.msk [vmem:[#allocation2 + $0x7a] sm:$0xff] %vm402_vm1, %v992_v10  ;;  %v3002_v35 = vld [vmem:[%s2882_s17 + $0x78] sm:$0xff]  ;;  %v851_v42 = vmax.f32 %v2974_v59, %v2987_v4  ;;  %v3010_v44 = vmax.f32 %v849_v7, %v2987_v4  ;;  %v494_v48 = vld [vmem:[#allocation2 + $0x120] sm:$0xff]  ;;  %774 = vst.msk [vmem:[%s2882_s17 + $0x80] sm:$0xff] %vm402_vm1, %v742_v36  ;;  %v743_v49 = vmax.f32 %v679_v38, %v711_v27 }
  0x5a   : > { %v993_v45 = vmax.f32 %v944_v9, %v3002_v35  ;;  %v526_v16 = vld [vmem:[#allocation2 + $0x121] sm:$0xff]  ;;  %v744_v50 = vmax.f32 %v680_v39, %v712_v28  ;;  %v745_v24 = vmax.f32 %v681_v40, %v713_v29  ;;  %v618_v51 = vmax.f32 %v554_v30, %v586_v31  ;;  %v588_v53 = vld [vmem:[#allocation2 + $0x10a] sm:$0xff]  ;;  %v714_v57 = vld [vmem:[#allocation2 + $0xf4] sm:$0xff] }
  0x5b   : > { %v652_v54 = vld [vmem:[#allocation2 + $0x10b] sm:$0xff]  ;;  %v590_v56 = vld [vmem:[#allocation2 + $0x122] sm:$0xff]  ;;  %v619_v58 = vmax.f32 %v555_v33, %v587_v47  ;;  %v620_v60 = vmax.f32 %v556_v34, %v588_v53  ;;  %v557_v61 = vmax.f32 %v493_v43, %v525_v37  ;;  %v558_v62 = vmax.f32 %v494_v48, %v526_v16  ;;  %775 = vst.msk [vmem:[%s2882_s17 + $0x88] sm:$0xff] %vm402_vm1, %v743_v49  ;;  %v496_v13 = vld [vmem:[#allocation2 + $0x138] sm:$0xff] }
  0x5c   : > { %1017 = vst.msk [vmem:[#allocation2 + $0x82] sm:$0xff] %vm402_vm1, %v993_v45  ;;  %v495_v15 = vld [vmem:[#allocation2 + $0x128] sm:$0xff]  ;;  %v3017_v2 = vld [vmem:[%s2882_s17 + $0xe0] sm:$0xff]  ;;  %v3020_v3 = vld [vmem:[%s2882_s17 + $0xf0] sm:$0xff]  ;;  %v945_v23 = vmax.f32 %v2992_v8, %v2987_v4  ;;  %v852_v5 = vmax.f32 %v2980_v63, %v3002_v35  ;;  %v682_v6 = vmax.f32 %v618_v51, %v650_v46  ;;  %v3036_v22 = vmax.f32 %v850_v26, %v3002_v35 }
  0x5d   : > { %v527_v0 = vld [vmem:[#allocation2 + $0x129] sm:$0xff]  ;;  %776 = vst.msk [vmem:[%s2882_s17 + $0x90] sm:$0xff] %vm402_vm1, %v744_v50  ;;  %777 = vst.msk [vmem:[%s2882_s17 + $0x98] sm:$0xff] %vm402_vm1, %v745_v24  ;;  %v715_v7 = vld [vmem:[#allocation2 + $0xfc] sm:$0xff]  ;;  %v683_v14 = vmax.f32 %v619_v58, %v651_v52  ;;  %v684_v18 = vmax.f32 %v620_v60, %v652_v54  ;;  %v622_v8 = vmax.f32 %v558_v62, %v590_v56 }
  0x5e   : > { %v591_v1 = vld [vmem:[#allocation2 + $0x12a] sm:$0xff]  ;;  %v589_v10 = vld [vmem:[#allocation2 + $0x112] sm:$0xff]  ;;  %v559_v11 = vmax.f32 %v495_v15, %v527_v0  ;;  %v592_v21 = vld [vmem:[#allocation2 + $0x13a] sm:$0xff]  ;;  %v746_v25 = vmax.f32 %v682_v6, %v714_v57  ;;  %v946_v26 = vmax.f32 %v3005_v41, %v3002_v35  ;;  %v1054_v48 = vmax.f32 %v3020_v3, %v3017_v2 }
  0x5f   : > { %v716_v9 = vld [vmem:[#allocation2 + $0x10c] sm:$0xff]  ;;  %v621_v19 = vmax.f32 %v557_v61, %v589_v10  ;;  %v528_v12 = vld [vmem:[#allocation2 + $0x139] sm:$0xff]  ;;  %v654_v27 = vld [vmem:[#allocation2 + $0x123] sm:$0xff]  ;;  %v747_v31 = vmax.f32 %v683_v14, %v715_v7 }
  0x60   : > { %v653_v20 = vld [vmem:[#allocation2 + $0x113] sm:$0xff]  ;;  %v623_v28 = vmax.f32 %v559_v11, %v591_v1  ;;  %v560_v32 = vmax.f32 %v496_v13, %v528_v12  ;;  %v497_v29 = vld [vmem:[#allocation2 + $0x140] sm:$0xff]  ;;  %v748_v33 = vmax.f32 %v684_v18, %v716_v9  ;;  %v686_v36 = vmax.f32 %v622_v8, %v654_v27  ;;  %v655_v39 = vld [vmem:[#allocation2 + $0x12b] sm:$0xff]  ;;  %778 = vst.msk [vmem:[%s2882_s17 + $0xa0] sm:$0xff] %vm402_vm1, %v746_v25 }
  0x61   : > { %v717_v17 = vld [vmem:[#allocation2 + $0x114] sm:$0xff]  ;;  %v529_v30 = vld [vmem:[#allocation2 + $0x141] sm:$0xff]  ;;  %v685_v34 = vmax.f32 %v621_v19, %v653_v20  ;;  %779 = vst.msk [vmem:[%s2882_s17 + $0xa8] sm:$0xff] %vm402_vm1, %v747_v31  ;;  %v719_v54 = vld [vmem:[#allocation2 + $0x12c] sm:$0xff] }
  0x62   : > { %v718_v38 = vld [vmem:[#allocation2 + $0x124] sm:$0xff]  ;;  %v656_v55 = vld [vmem:[#allocation2 + $0x13b] sm:$0xff]  ;;  %v687_v40 = vmax.f32 %v623_v28, %v655_v39  ;;  %v624_v43 = vmax.f32 %v560_v32, %v592_v21  ;;  %v561_v37 = vmax.f32 %v497_v29, %v529_v30  ;;  %780 = vst.msk [vmem:[%s2882_s17 + $0xb0] sm:$0xff] %vm402_vm1, %v748_v33 }
  0x63   : > { %v593_v45 = vld [vmem:[#allocation2 + $0x142] sm:$0xff]  ;;  %v749_v41 = vmax.f32 %v685_v34, %v717_v17  ;;  %v750_v49 = vmax.f32 %v686_v36, %v718_v38  ;;  %v3096_v30 = vld [vmem:[%s2882_s17 + $0xf8] sm:$0xff] }
  0x64   : > { %v1074_v46 = vld [vmem:[#allocation2] sm:$0xff]  ;;  %v807_v57 = vld [vmem:[%s2882_s17 + $0x88] sm:$0xff]  ;;  %v808_v58 = vld [vmem:[%s2882_s17 + $0x90] sm:$0xff]  ;;  %v751_v61 = vmax.f32 %v687_v40, %v719_v54  ;;  %v688_v62 = vmax.f32 %v624_v43, %v656_v55  ;;  %v3061_v15 = vmax.f32 %v561_v37, %v593_v45 }
  0x65   : > { %v1106_v47 = vld [vmem:[#allocation2 + $0x1] sm:$0xff]  ;;  %v809_v60 = vld [vmem:[%s2882_s17 + $0x98] sm:$0xff]  ;;  %781 = vst.msk [vmem:[%s2882_s17 + $0xb8] sm:$0xff] %vm402_vm1, %v749_v41  ;;  %782 = vst.msk [vmem:[%s2882_s17 + $0xc0] sm:$0xff] %vm402_vm1, %v750_v49  ;;  %v854_v59 = vmax.f32 %v3002_v35, %v807_v57 }
  0x66   : > { %v806_v16 = vld [vmem:[%s2882_s17 + $0x80] sm:$0xff]  ;;  %v1138_v50 = vmax.f32 %v1074_v46, %v1106_v47  ;;  %v3075_v6 = vld [vmem:[#allocation2 + $0x9] sm:$0xff]  ;;  %783 = vst.msk [vmem:[%s2882_s17 + $0xc8] sm:$0xff] %vm402_vm1, %v751_v61  ;;  %v856_v63 = vmax.f32 %v807_v57, %v809_v60  ;;  %v1076_v38 = vld [vmem:[#allocation2 + $0x18] sm:$0xff] }
  0x67   : > { %v853_v24 = vmax.f32 %v2987_v4, %v806_v16  ;;  %v900_v51 = vmax.f32 %v851_v42, %v806_v16  ;;  %v947_v52 = vmax.f32 %v3010_v44, %v806_v16  ;;  %v994_v53 = vmax.f32 %v945_v23, %v806_v16  ;;  %v1170_v56 = vld [vmem:[#allocation2 + $0x2] sm:$0xff]  ;;  %v1108_v39 = vld [vmem:[#allocation2 + $0x19] sm:$0xff] }
  0x68   : > { %v3063_v0 = vmax.f32 %v1138_v50, %v1170_v56  ;;  %v901_v4 = vmax.f32 %v852_v5, %v807_v57  ;;  %v948_v42 = vmax.f32 %v3036_v22, %v807_v57  ;;  %v995_v44 = vmax.f32 %v946_v26, %v807_v57  ;;  %v3071_v1 = vld [vmem:[#allocation2 + $0x143] sm:$0xff]  ;;  %v1079_v61 = vld [vmem:[#allocation2 + $0x38] sm:$0xff] }
  0x69   : > { %1018 = vst.msk [vmem:[#allocation2 + $0x92] sm:$0xff] %vm402_vm1, %v994_v53  ;;  %v3073_v23 = vld [vmem:[#allocation2 + $0x8] sm:$0xff]  ;;  %v855_v7 = vmax.f32 %v806_v16, %v808_v58  ;;  %v902_v9 = vmax.f32 %v853_v24, %v808_v58  ;;  %v949_v10 = vmax.f32 %v900_v51, %v808_v58  ;;  %v996_v11 = vmax.f32 %v947_v52, %v808_v58  ;;  %v720_v14 = vld [vmem:[#allocation2 + $0x13c] sm:$0xff]  ;;  %v3093_v29 = vld [vmem:[%s2882_s17 + $0xb0] sm:$0xff] }
  0x6a   : > { %1019 = vst.msk [vmem:[#allocation2 + $0x9a] sm:$0xff] %vm402_vm1, %v995_v44  ;;  %v903_v35 = vmax.f32 %v854_v59, %v809_v60  ;;  %v950_v5 = vmax.f32 %v901_v4, %v809_v60  ;;  %v997_v13 = vmax.f32 %v948_v42, %v809_v60  ;;  %v1234_v18 = vld [vmem:[#allocation2 + $0x3] sm:$0xff]  ;;  %v752_v20 = vmax.f32 %v688_v62, %v720_v14  ;;  %v1078_v52 = vld [vmem:[#allocation2 + $0x30] sm:$0xff]  ;;  %v1111_v62 = vld [vmem:[#allocation2 + $0x39] sm:$0xff] }
  0x6b   : > { %1020 = vst.msk [vmem:[#allocation2 + $0xaa] sm:$0xff] %vm402_vm1, %v996_v11  ;;  %v810_v19 = vld [vmem:[%s2882_s17 + $0xa0] sm:$0xff]  ;;  %v689_v8 = vmax.f32 %v3061_v15, %v3071_v1  ;;  %v1266_v12 = vmax.f32 %v3063_v0, %v1234_v18  ;;  %v1139_v21 = vmax.f32 %v3073_v23, %v3075_v6  ;;  %v3088_v22 = vld [vmem:[%s2882_s17 + $0xe8] sm:$0xff]  ;;  %v1110_v53 = vld [vmem:[#allocation2 + $0x31] sm:$0xff]  ;;  %v1143_v14 = vmax.f32 %v1079_v61, %v1111_v62 }
  0x6c   : > { %1021 = vst.msk [vmem:[#allocation2 + $0xb2] sm:$0xff] %vm402_vm1, %v997_v13  ;;  %v857_v25 = vmax.f32 %v808_v58, %v810_v19  ;;  %v904_v17 = vmax.f32 %v855_v7, %v810_v19  ;;  %v951_v27 = vmax.f32 %v902_v9, %v810_v19  ;;  %v998_v28 = vmax.f32 %v949_v10, %v810_v19  ;;  %v811_v32 = vld [vmem:[%s2882_s17 + $0xa8] sm:$0xff]  ;;  %v3106_v37 = vld [vmem:[%s2882_s17 + $0xb8] sm:$0xff]  ;;  %v3109_v45 = vld [vmem:[%s2882_s17 + $0xc0] sm:$0xff] }
  0x6d   : > { %v858_v31 = vmax.f32 %v809_v60, %v811_v32  ;;  %v905_v33 = vmax.f32 %v856_v63, %v811_v32  ;;  %v952_v34 = vmax.f32 %v903_v35, %v811_v32  ;;  %v999_v36 = vmax.f32 %v950_v5, %v811_v32  ;;  %784 = vst.msk [vmem:[%s2882_s17 + $0xd0] sm:$0xff] %vm402_vm1, %v752_v20  ;;  %v3111_v46 = vld [vmem:[#allocation2 + $0x20] sm:$0xff]  ;;  %v3128_v60 = vld [vmem:[%s2882_s17 + $0xc8] sm:$0xff]  ;;  %v1081_v18 = vld [vmem:[#allocation2 + $0x50] sm:$0xff] }
  0x6e   : > { %1022 = vst.msk [vmem:[#allocation2 + $0xc2] sm:$0xff] %vm402_vm1, %v998_v28  ;;  %v859_v55 = vmax.f32 %v810_v19, %v3093_v29  ;;  %v906_v26 = vmax.f32 %v857_v25, %v3093_v29  ;;  %v953_v40 = vmax.f32 %v904_v17, %v3093_v29  ;;  %v1000_v43 = vmax.f32 %v951_v27, %v3093_v29  ;;  %v721_v50 = vld [vmem:[#allocation2 + $0x144] sm:$0xff]  ;;  %v1299_v63 = vld [vmem:[#allocation2 + $0xc] sm:$0xff]  ;;  %v1172_v35 = vld [vmem:[#allocation2 + $0x1a] sm:$0xff] }
  0x6f   : > { %1023 = vst.msk [vmem:[#allocation2 + $0xca] sm:$0xff] %vm402_vm1, %v999_v36  ;;  %v860_v47 = vmax.f32 %v811_v32, %v3106_v37  ;;  %v3116_v16 = vmax.f32 %v858_v31, %v3106_v37  ;;  %v954_v41 = vmax.f32 %v905_v33, %v3106_v37  ;;  %v1001_v49 = vmax.f32 %v952_v34, %v3106_v37  ;;  %v1298_v24 = vld [vmem:[#allocation2 + $0x4] sm:$0xff]  ;;  %v1113_v19 = vld [vmem:[#allocation2 + $0x51] sm:$0xff]  ;;  %v1300_v33 = vld [vmem:[#allocation2 + $0x1c] sm:$0xff] }
  0x70   : > { %v1109_v51 = vld [vmem:[#allocation2 + $0x21] sm:$0xff]  ;;  %v1055_v54 = vmax.f32 %v3096_v30, %v3088_v22  ;;  %1024 = vst.msk [vmem:[#allocation2 + $0xda] sm:$0xff] %vm402_vm1, %v1000_v43  ;;  %v861_v56 = vmax.f32 %v3093_v29, %v3109_v45  ;;  %v908_v57 = vmax.f32 %v859_v55, %v3109_v45  ;;  %v1002_v58 = vmax.f32 %v953_v40, %v3109_v45  ;;  %v1171_v42 = vld [vmem:[#allocation2 + $0xa] sm:$0xff]  ;;  %v1174_v36 = vld [vmem:[#allocation2 + $0x32] sm:$0xff] }
  0x71   : > { %1025 = vst.msk [vmem:[#allocation2 + $0xe2] sm:$0xff] %vm402_vm1, %v1001_v49  ;;  %v955_v15 = vmax.f32 %v906_v26, %v3109_v45  ;;  %v862_v0 = vmax.f32 %v3106_v37, %v3128_v60  ;;  %v3135_v59 = vmax.f32 %v860_v47, %v3128_v60  ;;  %v1003_v4 = vmax.f32 %v954_v41, %v3128_v60  ;;  %v1080_v44 = vld [vmem:[#allocation2 + $0x48] sm:$0xff]  ;;  %v1082_v47 = vld [vmem:[#allocation2 + $0x60] sm:$0xff] }
  0x72   : > { %v1112_v1 = vld [vmem:[#allocation2 + $0x49] sm:$0xff]  ;;  %1026 = vst.msk [vmem:[#allocation2 + $0xf2] sm:$0xff] %vm402_vm1, %v1002_v58  ;;  %v753_v23 = vmax.f32 %v689_v8, %v721_v50  ;;  %v1330_v6 = vmax.f32 %v1266_v12, %v1298_v24  ;;  %v1203_v7 = vmax.f32 %v1139_v21, %v1171_v42  ;;  %v1140_v10 = vmax.f32 %v1076_v38, %v1108_v39  ;;  %v1236_v21 = vld [vmem:[#allocation2 + $0x1b] sm:$0xff]  ;;  %v1238_v38 = vld [vmem:[#allocation2 + $0x33] sm:$0xff] }
  0x73   : > { %v1235_v9 = vld [vmem:[#allocation2 + $0xb] sm:$0xff]  ;;  %v956_v11 = vmax.f32 %v3116_v16, %v3128_v60  ;;  %1027 = vst.msk [vmem:[#allocation2 + $0xfa] sm:$0xff] %vm402_vm1, %v1003_v4  ;;  %v1141_v5 = vmax.f32 %v3111_v46, %v1109_v51  ;;  %v1142_v13 = vmax.f32 %v1078_v52, %v1110_v53  ;;  %v1173_v25 = vld [vmem:[#allocation2 + $0x22] sm:$0xff]  ;;  %v1144_v17 = vmax.f32 %v1080_v44, %v1112_v1  ;;  %v1175_v39 = vld [vmem:[#allocation2 + $0x3a] sm:$0xff] }
  0x74   : > { %v2313_v20 = vld [vmem:[%s2882_s17 + $0xd0] sm:$0xff]  ;;  %785 = vst.msk [vmem:[%s2882_s17 + $0xd8] sm:$0xff] %vm402_vm1, %v753_v23  ;;  %2377 = vst.msk [vmem:[%s2882_s17 + $0x100] sm:$0xff] %vm402_vm1, %v1330_v6  ;;  %v1267_v8 = vmax.f32 %v1203_v7, %v1235_v9  ;;  %v1204_v12 = vmax.f32 %v1140_v10, %v1172_v35  ;;  %v1145_v27 = vmax.f32 %v1081_v18, %v1113_v19  ;;  %v1237_v34 = vld [vmem:[#allocation2 + $0x23] sm:$0xff] }
  0x75   : > { %v910_v28 = vmax.f32 %v861_v56, %v2313_v20  ;;  %v957_v32 = vmax.f32 %v908_v57, %v2313_v20  ;;  %v1004_v29 = vmax.f32 %v955_v15, %v2313_v20  ;;  %v1059_v31 = vmax.f32 %v1054_v48, %v2313_v20  ;;  %v1239_v46 = vld [vmem:[#allocation2 + $0x3b] sm:$0xff]  ;;  %v1301_v48 = vld [vmem:[#allocation2 + $0x24] sm:$0xff]  ;;  %v1177_v15 = vld [vmem:[#allocation2 + $0x52] sm:$0xff] }
  0x76   : > { %v1331_v55 = vmax.f32 %v1267_v8, %v1299_v63  ;;  %v1268_v26 = vmax.f32 %v1204_v12, %v1236_v21  ;;  %v1205_v40 = vmax.f32 %v1141_v5, %v1173_v25  ;;  %v1206_v43 = vmax.f32 %v1142_v13, %v1174_v36  ;;  %v1114_v41 = vld [vmem:[#allocation2 + $0x61] sm:$0xff]  ;;  %v1176_v52 = vld [vmem:[#allocation2 + $0x4a] sm:$0xff]  ;;  %v1116_v4 = vld [vmem:[#allocation2 + $0x79] sm:$0xff] }
  0x77   : > { %v959_v49 = vmax.f32 %v910_v28, %v3017_v2  ;;  %v1006_v50 = vmax.f32 %v957_v32, %v3017_v2  ;;  %v1064_v24 = vmax.f32 %v1059_v31, %v3109_v45  ;;  %1028 = vst.msk [vmem:[#allocation2 + $0x10a] sm:$0xff] %vm402_vm1, %v1004_v29  ;;  %1070 = vst.msk [vmem:[#allocation2 + $0x16a] sm:$0xff] %vm402_vm1, %v1059_v31  ;;  %v1083_v53 = vld [vmem:[#allocation2 + $0x68] sm:$0xff]  ;;  %v1084_v2 = vld [vmem:[#allocation2 + $0x78] sm:$0xff] }
  0x78   : > { %v1207_v51 = vmax.f32 %v1143_v14, %v1175_v39  ;;  %v1115_v56 = vld [vmem:[#allocation2 + $0x69] sm:$0xff]  ;;  %2378 = vst.msk [vmem:[%s2882_s17 + $0x108] sm:$0xff] %vm402_vm1, %v1331_v55  ;;  %v1332_v57 = vmax.f32 %v1268_v26, %v1300_v33  ;;  %v1269_v58 = vmax.f32 %v1205_v40, %v1237_v34  ;;  %v1270_v61 = vmax.f32 %v1206_v43, %v1238_v38  ;;  %v1302_v42 = vld [vmem:[#allocation2 + $0x34] sm:$0xff]  ;;  %v1303_v1 = vld [vmem:[#allocation2 + $0x3c] sm:$0xff] }
  0x79   : > { %v1208_v62 = vmax.f32 %v1144_v17, %v1176_v52  ;;  %v1008_v45 = vmax.f32 %v959_v49, %v3020_v3  ;;  %1030 = vst.msk [vmem:[#allocation2 + $0x122] sm:$0xff] %vm402_vm1, %v1006_v50  ;;  %1072 = vst.msk [vmem:[#allocation2 + $0x152] sm:$0xff] %vm402_vm1, %v1064_v24  ;;  %v1240_v23 = vld [vmem:[#allocation2 + $0x4b] sm:$0xff]  ;;  %v1209_v6 = vmax.f32 %v1145_v27, %v1177_v15  ;;  %v1241_v5 = vld [vmem:[#allocation2 + $0x53] sm:$0xff] }
  0x7a   : > { %v1271_v44 = vmax.f32 %v1207_v51, %v1239_v46  ;;  %v1146_v7 = vmax.f32 %v1082_v47, %v1114_v41  ;;  %2379 = vst.msk [vmem:[%s2882_s17 + $0x110] sm:$0xff] %vm402_vm1, %v1332_v57  ;;  %v1333_v9 = vmax.f32 %v1269_v58, %v1301_v48  ;;  %v1334_v10 = vmax.f32 %v1270_v61, %v1302_v42  ;;  %v1304_v35 = vld [vmem:[#allocation2 + $0x4c] sm:$0xff]  ;;  %v1305_v3 = vld [vmem:[#allocation2 + $0x54] sm:$0xff]  ;;  %v1178_v13 = vld [vmem:[#allocation2 + $0x62] sm:$0xff] }
  0x7b   : > { %v1272_v63 = vmax.f32 %v1208_v62, %v1240_v23  ;;  %v1147_v14 = vmax.f32 %v1083_v53, %v1115_v56  ;;  %v2314_v18 = vld [vmem:[%s2882_s17 + $0xd8] sm:$0xff]  ;;  %1032 = vst.msk [vmem:[#allocation2 + $0x13a] sm:$0xff] %vm402_vm1, %v1008_v45  ;;  %v1273_v20 = vmax.f32 %v1209_v6, %v1241_v5  ;;  %v1242_v12 = vld [vmem:[#allocation2 + $0x63] sm:$0xff]  ;;  %v1148_v25 = vmax.f32 %v1084_v2, %v1116_v4  ;;  %v1243_v31 = vld [vmem:[#allocation2 + $0x6b] sm:$0xff] }
  0x7c   : > { %v1335_v19 = vmax.f32 %v1271_v44, %v1303_v1  ;;  %v1210_v8 = vmax.f32 %v1146_v7, %v1178_v13  ;;  %v1179_v21 = vld [vmem:[#allocation2 + $0x6a] sm:$0xff]  ;;  %v911_v17 = vmax.f32 %v862_v0, %v2314_v18  ;;  %v958_v27 = vmax.f32 %v3135_v59, %v2314_v18  ;;  %2380 = vst.msk [vmem:[%s2882_s17 + $0x118] sm:$0xff] %vm402_vm1, %v1333_v9  ;;  %v1180_v33 = vld [vmem:[#allocation2 + $0x7a] sm:$0xff]  ;;  %v1181_v41 = vld [vmem:[#allocation2 + $0x82] sm:$0xff] }
  0x7d   : > { %v1005_v28 = vmax.f32 %v956_v11, %v2314_v18  ;;  %v1060_v32 = vmax.f32 %v1055_v54, %v2314_v18  ;;  %2381 = vst.msk [vmem:[%s2882_s17 + $0x120] sm:$0xff] %vm402_vm1, %v1334_v10  ;;  %v1306_v29 = vld [vmem:[#allocation2 + $0x64] sm:$0xff]  ;;  %v1336_v0 = vmax.f32 %v1272_v63, %v1304_v35  ;;  %v1337_v59 = vmax.f32 %v1273_v20, %v1305_v3  ;;  %v1244_v36 = vld [vmem:[#allocation2 + $0x7b] sm:$0xff]  ;;  %v1086_v54 = vld [vmem:[#allocation2 + $0x90] sm:$0xff] }
  0x7e   : > { %v1085_v34 = vld [vmem:[#allocation2 + $0x80] sm:$0xff]  ;;  %2382 = vst.msk [vmem:[%s2882_s17 + $0x128] sm:$0xff] %vm402_vm1, %v1335_v19  ;;  %v1274_v16 = vmax.f32 %v1210_v8, %v1242_v12  ;;  %v1211_v11 = vmax.f32 %v1147_v14, %v1179_v21  ;;  %v1118_v38 = vld [vmem:[#allocation2 + $0x91] sm:$0xff]  ;;  %v960_v39 = vmax.f32 %v911_v17, %v3088_v22  ;;  %v1007_v55 = vmax.f32 %v958_v27, %v3088_v22  ;;  %v1104_v40 = vld [vmem:[#allocation2 + $0x168] sm:$0xff] }
  0x7f   : > { %v1117_v37 = vld [vmem:[#allocation2 + $0x81] sm:$0xff]  ;;  %v1065_v26 = vmax.f32 %v1060_v32, %v3128_v60  ;;  %1029 = vst.msk [vmem:[#allocation2 + $0x112] sm:$0xff] %vm402_vm1, %v1005_v28  ;;  %1071 = vst.msk [vmem:[#allocation2 + $0x172] sm:$0xff] %vm402_vm1, %v1060_v32  ;;  %v1136_v43 = vld [vmem:[#allocation2 + $0x169] sm:$0xff]  ;;  %v1212_v47 = vmax.f32 %v1148_v25, %v1180_v33  ;;  %v1150_v2 = vmax.f32 %v1086_v54, %v1118_v38 }
  0x80   : > { %v1307_v46 = vld [vmem:[#allocation2 + $0x6c] sm:$0xff]  ;;  %v2409_v49 = vld [vmem:[%s2882_s17 + $0x100] sm:$0xff]  ;;  %v1168_v50 = vmax.f32 %v1104_v40, %v1136_v43  ;;  %2383 = vst.msk [vmem:[%s2882_s17 + $0x130] sm:$0xff] %vm402_vm1, %v1336_v0  ;;  %2384 = vst.msk [vmem:[%s2882_s17 + $0x138] sm:$0xff] %vm402_vm1, %v1337_v59  ;;  %v1338_v24 = vmax.f32 %v1274_v16, %v1306_v29  ;;  %v1275_v48 = vmax.f32 %v1211_v11, %v1243_v31 }
  0x81   : > { %v1308_v22 = vld [vmem:[#allocation2 + $0x7c] sm:$0xff]  ;;  %v1149_v60 = vmax.f32 %v1085_v34, %v1117_v37  ;;  %v1182_v51 = vld [vmem:[#allocation2 + $0x92] sm:$0xff]  ;;  %v1009_v56 = vmax.f32 %v960_v39, %v3096_v30  ;;  %1031 = vst.msk [vmem:[#allocation2 + $0x12a] sm:$0xff] %vm402_vm1, %v1007_v55  ;;  %1073 = vst.msk [vmem:[#allocation2 + $0x15a] sm:$0xff] %vm402_vm1, %v1065_v26  ;;  %v1276_v62 = vmax.f32 %v1212_v47, %v1244_v36 }
  0x82   : > { %v1087_v52 = vld [vmem:[#allocation2 + $0x98] sm:$0xff]  ;;  %v1200_v57 = vld [vmem:[#allocation2 + $0x16a] sm:$0xff]  ;;  %2385 = vst.msk [vmem:[%s2882_s17 + $0x140] sm:$0xff] %vm402_vm1, %v1338_v24  ;;  %v1339_v30 = vmax.f32 %v1275_v48, %v1307_v46  ;;  %v1214_v35 = vmax.f32 %v1150_v2, %v1182_v51 }
  0x83   : > { %v1119_v53 = vld [vmem:[#allocation2 + $0x99] sm:$0xff]  ;;  %v1102_v58 = vld [vmem:[#allocation2 + $0x150] sm:$0xff]  ;;  %v1245_v15 = vld [vmem:[#allocation2 + $0x83] sm:$0xff]  ;;  %v1232_v45 = vmax.f32 %v1168_v50, %v1200_v57  ;;  %v1213_v1 = vmax.f32 %v1149_v60, %v1181_v41  ;;  %1033 = vst.msk [vmem:[#allocation2 + $0x142] sm:$0xff] %vm402_vm1, %v1009_v56  ;;  %v1340_v10 = vmax.f32 %v1276_v62, %v1308_v22 }
  0x84   : > { %v1134_v61 = vld [vmem:[#allocation2 + $0x151] sm:$0xff]  ;;  %v1151_v4 = vmax.f32 %v1087_v52, %v1119_v53  ;;  %v1183_v6 = vld [vmem:[#allocation2 + $0x9a] sm:$0xff]  ;;  %v2410_v7 = vld [vmem:[%s2882_s17 + $0x108] sm:$0xff]  ;;  %2386 = vst.msk [vmem:[%s2882_s17 + $0x148] sm:$0xff] %vm402_vm1, %v1339_v30 }
  0x85   : > { %v3195_v42 = vld [vmem:[%s2882_s17 + $0x110] sm:$0xff]  ;;  %v1166_v44 = vmax.f32 %v1102_v58, %v1134_v61  ;;  %v1309_v63 = vld [vmem:[#allocation2 + $0x84] sm:$0xff]  ;;  %v2412_v14 = vld [vmem:[%s2882_s17 + $0x118] sm:$0xff]  ;;  %v1277_v20 = vmax.f32 %v1213_v1, %v1245_v15  ;;  %2387 = vst.msk [vmem:[%s2882_s17 + $0x150] sm:$0xff] %vm402_vm1, %v1340_v10 }
  0x86   : > { %v1246_v23 = vld [vmem:[#allocation2 + $0x93] sm:$0xff]  ;;  %v1444_v9 = vmax.f32 %v2409_v49, %v3195_v42  ;;  %v1215_v5 = vmax.f32 %v1151_v4, %v1183_v6  ;;  %v1088_v3 = vld [vmem:[#allocation2 + $0xa8] sm:$0xff]  ;;  %v3204_v19 = vld [vmem:[%s2882_s17 + $0x120] sm:$0xff]  ;;  %v1445_v12 = vmax.f32 %v2410_v7, %v2412_v14 }
  0x87   : > { %v1120_v13 = vld [vmem:[#allocation2 + $0xa9] sm:$0xff]  ;;  %v1198_v18 = vld [vmem:[#allocation2 + $0x152] sm:$0xff]  ;;  %v1278_v27 = vmax.f32 %v1214_v35, %v1246_v23  ;;  %v1247_v28 = vld [vmem:[#allocation2 + $0x9b] sm:$0xff]  ;;  %v1341_v33 = vmax.f32 %v1277_v20, %v1309_v63  ;;  %v1446_v11 = vmax.f32 %v3195_v42, %v3204_v19 }
  0x88   : > { %v1152_v8 = vmax.f32 %v1088_v3, %v1120_v13  ;;  %v1230_v21 = vmax.f32 %v1166_v44, %v1198_v18  ;;  %v1493_v25 = vmax.f32 %v1444_v9, %v3204_v19  ;;  %v3210_v17 = vld [vmem:[%s2882_s17 + $0x128] sm:$0xff]  ;;  %v1105_v31 = vld [vmem:[#allocation2 + $0x170] sm:$0xff]  ;;  %v1279_v37 = vmax.f32 %v1215_v5, %v1247_v28  ;;  %v1311_v38 = vld [vmem:[#allocation2 + $0x9c] sm:$0xff] }
  0x89   : > { %v1184_v32 = vld [vmem:[#allocation2 + $0xaa] sm:$0xff]  ;;  %v1310_v34 = vld [vmem:[#allocation2 + $0x94] sm:$0xff]  ;;  %v1494_v36 = vmax.f32 %v1445_v12, %v3210_v17  ;;  %v1447_v43 = vmax.f32 %v2412_v14, %v3210_v17  ;;  %2388 = vst.msk [vmem:[%s2882_s17 + $0x158] sm:$0xff] %vm402_vm1, %v1341_v33  ;;  %v1327_v14 = vld [vmem:[#allocation2 + $0x15c] sm:$0xff] }
  0x8a   : > { %v1264_v29 = vld [vmem:[#allocation2 + $0x16b] sm:$0xff]  ;;  %v1216_v0 = vmax.f32 %v1152_v8, %v1184_v32  ;;  %1671 = vst.msk [vmem:[#allocation2 + $0x2] sm:$0xff] %vm402_vm1, %v1493_v25  ;;  %v1342_v54 = vmax.f32 %v1278_v27, %v1310_v34  ;;  %v1262_v40 = vld [vmem:[#allocation2 + $0x153] sm:$0xff]  ;;  %v1343_v46 = vmax.f32 %v1279_v37, %v1311_v38  ;;  %v1263_v6 = vld [vmem:[#allocation2 + $0x15b] sm:$0xff] }
  0x8b   : > { %v1296_v59 = vmax.f32 %v1232_v45, %v1264_v29  ;;  %v1137_v16 = vld [vmem:[#allocation2 + $0x171] sm:$0xff]  ;;  %v1294_v24 = vmax.f32 %v1230_v21, %v1262_v40  ;;  %v1135_v22 = vld [vmem:[#allocation2 + $0x159] sm:$0xff]  ;;  %1672 = vst.msk [vmem:[#allocation2 + $0xa] sm:$0xff] %vm402_vm1, %v1494_v36  ;;  %v3250_v13 = vld [vmem:[%s2882_s17 + $0x148] sm:$0xff] }
  0x8c   : > { %v1248_v39 = vld [vmem:[#allocation2 + $0xab] sm:$0xff]  ;;  %v1169_v26 = vmax.f32 %v1105_v31, %v1137_v16  ;;  %v1103_v48 = vld [vmem:[#allocation2 + $0x158] sm:$0xff]  ;;  %2389 = vst.msk [vmem:[%s2882_s17 + $0x160] sm:$0xff] %vm402_vm1, %v1342_v54  ;;  %2390 = vst.msk [vmem:[%s2882_s17 + $0x168] sm:$0xff] %vm402_vm1, %v1343_v46 }
  0x8d   : > { %v1328_v55 = vld [vmem:[#allocation2 + $0x16c] sm:$0xff]  ;;  %v1280_v47 = vmax.f32 %v1216_v0, %v1248_v39  ;;  %v1326_v52 = vld [vmem:[#allocation2 + $0x154] sm:$0xff]  ;;  %v1167_v53 = vmax.f32 %v1103_v48, %v1135_v22  ;;  %v3234_v45 = vld [vmem:[%s2882_s17 + $0x140] sm:$0xff] }
  0x8e   : > { %v1312_v41 = vld [vmem:[#allocation2 + $0xac] sm:$0xff]  ;;  %v1360_v49 = vmax.f32 %v1296_v59, %v1328_v55  ;;  %v1358_v58 = vmax.f32 %v1294_v24, %v1326_v52  ;;  %v1199_v61 = vld [vmem:[#allocation2 + $0x15a] sm:$0xff]  ;;  %v1250_v22 = vld [vmem:[#allocation2 + $0xc3] sm:$0xff] }
  0x8f   : > { %v1201_v50 = vld [vmem:[#allocation2 + $0x172] sm:$0xff]  ;;  %v1344_v57 = vmax.f32 %v1280_v47, %v1312_v41  ;;  %v1231_v44 = vmax.f32 %v1167_v53, %v1199_v61  ;;  %v1090_v34 = vld [vmem:[#allocation2 + $0xc0] sm:$0xff] }
  0x90   : > { %v1233_v60 = vmax.f32 %v1169_v26, %v1201_v50  ;;  %v1265_v51 = vld [vmem:[#allocation2 + $0x173] sm:$0xff]  ;;  %2407 = vst.msk [vmem:[%s2882_s17 + $0x1f0] sm:$0xff] %vm402_vm1, %v1360_v49  ;;  %2405 = vst.msk [vmem:[%s2882_s17 + $0x1e0] sm:$0xff] %vm402_vm1, %v1358_v58  ;;  %v1122_v37 = vld [vmem:[#allocation2 + $0xc1] sm:$0xff] }
  0x91   : > { %v2415_v56 = vld [vmem:[%s2882_s17 + $0x130] sm:$0xff]  ;;  %v3231_v4 = vld [vmem:[%s2882_s17 + $0x138] sm:$0xff]  ;;  %2391 = vst.msk [vmem:[%s2882_s17 + $0x170] sm:$0xff] %vm402_vm1, %v1344_v57  ;;  %v1295_v5 = vmax.f32 %v1231_v44, %v1263_v6  ;;  %v1154_v46 = vmax.f32 %v1090_v34, %v1122_v37  ;;  %v1186_v47 = vld [vmem:[#allocation2 + $0xc2] sm:$0xff] }
  0x92   : > { %v1448_v62 = vmax.f32 %v3204_v19, %v2415_v56  ;;  %v1495_v15 = vmax.f32 %v1446_v11, %v2415_v56  ;;  %v1542_v2 = vmax.f32 %v1493_v25, %v2415_v56  ;;  %v1297_v42 = vmax.f32 %v1233_v60, %v1265_v51  ;;  %v1329_v23 = vld [vmem:[#allocation2 + $0x174] sm:$0xff]  ;;  %v1091_v11 = vld [vmem:[#allocation2 + $0xc8] sm:$0xff]  ;;  %v1093_v49 = vld [vmem:[#allocation2 + $0xe0] sm:$0xff] }
  0x93   : > { %v1449_v30 = vmax.f32 %v3210_v17, %v3231_v4  ;;  %v1496_v1 = vmax.f32 %v1447_v43, %v3231_v4  ;;  %v1543_v7 = vmax.f32 %v1494_v36, %v3231_v4  ;;  %v1450_v9 = vmax.f32 %v2415_v56, %v3234_v45  ;;  %v3257_v8 = vld [vmem:[%s2882_s17 + $0x150] sm:$0xff]  ;;  %v3266_v27 = vld [vmem:[%s2882_s17 + $0x158] sm:$0xff]  ;;  %v3272_v33 = vld [vmem:[%s2882_s17 + $0x160] sm:$0xff] }
  0x94   : > { %1673 = vst.msk [vmem:[#allocation2 + $0x1a] sm:$0xff] %vm402_vm1, %v1542_v2  ;;  %v1497_v10 = vmax.f32 %v1448_v62, %v3234_v45  ;;  %v1544_v63 = vmax.f32 %v1495_v15, %v3234_v45  ;;  %v1361_v35 = vmax.f32 %v1297_v42, %v1329_v23  ;;  %v1591_v3 = vmax.f32 %v1542_v2, %v3234_v45  ;;  %v1089_v28 = vld [vmem:[#allocation2 + $0xb0] sm:$0xff]  ;;  %v3280_v16 = vld [vmem:[%s2882_s17 + $0x168] sm:$0xff]  ;;  %v1092_v39 = vld [vmem:[#allocation2 + $0xd8] sm:$0xff] }
  0x95   : > { %1674 = vst.msk [vmem:[#allocation2 + $0x22] sm:$0xff] %vm402_vm1, %v1543_v7  ;;  %v1498_v18 = vmax.f32 %v1449_v30, %v3250_v13  ;;  %v1545_v19 = vmax.f32 %v1496_v1, %v3250_v13  ;;  %v1592_v20 = vmax.f32 %v1543_v7, %v3250_v13  ;;  %v1359_v12 = vmax.f32 %v1295_v5, %v1327_v14  ;;  %v1121_v32 = vld [vmem:[#allocation2 + $0xb1] sm:$0xff]  ;;  %v1123_v36 = vld [vmem:[#allocation2 + $0xc9] sm:$0xff]  ;;  %v1124_v55 = vld [vmem:[#allocation2 + $0xd9] sm:$0xff] }
  0x96   : > { %2408 = vst.msk [vmem:[%s2882_s17 + $0x1f8] sm:$0xff] %vm402_vm1, %v1361_v35  ;;  %1615 = vst.msk [vmem:[#allocation2 + $0x32] sm:$0xff] %vm402_vm1, %v1591_v3  ;;  %v1499_v21 = vmax.f32 %v1450_v9, %v3257_v8  ;;  %v1546_v25 = vmax.f32 %v1497_v10, %v3257_v8  ;;  %v1593_v17 = vmax.f32 %v1544_v63, %v3257_v8  ;;  %v1185_v40 = vld [vmem:[#allocation2 + $0xb2] sm:$0xff]  ;;  %v1125_v50 = vld [vmem:[#allocation2 + $0xe1] sm:$0xff] }
  0x97   : > { %1616 = vst.msk [vmem:[#allocation2 + $0x3a] sm:$0xff] %vm402_vm1, %v1592_v20  ;;  %v1547_v29 = vmax.f32 %v1498_v18, %v3266_v27  ;;  %v1594_v31 = vmax.f32 %v1545_v19, %v3266_v27  ;;  %2406 = vst.msk [vmem:[%s2882_s17 + $0x1e8] sm:$0xff] %vm402_vm1, %v1359_v12  ;;  %v1153_v43 = vmax.f32 %v1089_v28, %v1121_v32  ;;  %v1249_v48 = vld [vmem:[#allocation2 + $0xb3] sm:$0xff]  ;;  %v1187_v60 = vld [vmem:[#allocation2 + $0xca] sm:$0xff] }
  0x98   : > { %1617 = vst.msk [vmem:[#allocation2 + $0x4a] sm:$0xff] %vm402_vm1, %v1593_v17  ;;  %v1548_v0 = vmax.f32 %v1499_v21, %v3272_v33  ;;  %v1595_v59 = vmax.f32 %v1546_v25, %v3272_v33  ;;  %v3285_v38 = vld [vmem:[%s2882_s17 + $0x170] sm:$0xff]  ;;  %v1155_v41 = vmax.f32 %v1091_v11, %v1123_v36  ;;  %v1451_v24 = vmax.f32 %v3231_v4, %v3250_v13  ;;  %v1188_v61 = vld [vmem:[#allocation2 + $0xda] sm:$0xff]  ;;  %v1189_v62 = vld [vmem:[#allocation2 + $0xe2] sm:$0xff] }
  0x99   : > { %1618 = vst.msk [vmem:[#allocation2 + $0x52] sm:$0xff] %vm402_vm1, %v1594_v31  ;;  %v1596_v54 = vmax.f32 %v1547_v29, %v3280_v16  ;;  %v1156_v51 = vmax.f32 %v1092_v39, %v1124_v55  ;;  %v1157_v52 = vmax.f32 %v1093_v49, %v1125_v50  ;;  %v1094_v53 = vld [vmem:[#allocation2 + $0xf0] sm:$0xff]  ;;  %v1217_v56 = vmax.f32 %v1153_v43, %v1185_v40  ;;  %v1314_v44 = vld [vmem:[#allocation2 + $0xc4] sm:$0xff]  ;;  %v1252_v1 = vld [vmem:[#allocation2 + $0xdb] sm:$0xff] }
  0x9a   : > { %1619 = vst.msk [vmem:[#allocation2 + $0x62] sm:$0xff] %vm402_vm1, %v1595_v59  ;;  %v1597_v26 = vmax.f32 %v1548_v0, %v3285_v38  ;;  %v1218_v57 = vmax.f32 %v1154_v46, %v1186_v47  ;;  %v1219_v58 = vmax.f32 %v1155_v41, %v1187_v60  ;;  %v1126_v15 = vld [vmem:[#allocation2 + $0xf1] sm:$0xff]  ;;  %v1452_v2 = vmax.f32 %v3234_v45, %v3257_v8  ;;  %v1253_v5 = vld [vmem:[#allocation2 + $0xe3] sm:$0xff]  ;;  %v1127_v14 = vld [vmem:[#allocation2 + $0xf9] sm:$0xff] }
  0x9b   : > { %1620 = vst.msk [vmem:[#allocation2 + $0x6a] sm:$0xff] %vm402_vm1, %v1596_v54  ;;  %v1313_v42 = vld [vmem:[#allocation2 + $0xb4] sm:$0xff]  ;;  %v1251_v4 = vld [vmem:[#allocation2 + $0xcb] sm:$0xff]  ;;  %v1220_v30 = vmax.f32 %v1156_v51, %v1188_v61  ;;  %v1221_v23 = vmax.f32 %v1157_v52, %v1189_v62  ;;  %v1158_v6 = vmax.f32 %v1094_v53, %v1126_v15  ;;  %v1453_v9 = vmax.f32 %v3250_v13, %v3266_v27  ;;  %v1316_v20 = vld [vmem:[#allocation2 + $0xdc] sm:$0xff] }
  0x9c   : > { %1621 = vst.msk [vmem:[#allocation2 + $0x7a] sm:$0xff] %vm402_vm1, %v1597_v26  ;;  %v1095_v7 = vld [vmem:[#allocation2 + $0xf8] sm:$0xff]  ;;  %v1281_v10 = vmax.f32 %v1217_v56, %v1249_v48  ;;  %v1282_v63 = vmax.f32 %v1218_v57, %v1250_v22  ;;  %v1283_v35 = vmax.f32 %v1219_v58, %v1251_v4  ;;  %v3298_v18 = vmax.f32 %v1451_v24, %v3266_v27  ;;  %v1315_v45 = vld [vmem:[#allocation2 + $0xcc] sm:$0xff]  ;;  %v1317_v32 = vld [vmem:[#allocation2 + $0xe4] sm:$0xff] }
  0x9d   : > { %v1190_v3 = vld [vmem:[#allocation2 + $0xf2] sm:$0xff]  ;;  %v1284_v19 = vmax.f32 %v1220_v30, %v1252_v1  ;;  %v1285_v12 = vmax.f32 %v1221_v23, %v1253_v5  ;;  %v1096_v25 = vld [vmem:[#allocation2 + $0x108] sm:$0xff]  ;;  %v1159_v31 = vmax.f32 %v1095_v7, %v1127_v14  ;;  %v1191_v11 = vld [vmem:[#allocation2 + $0xfa] sm:$0xff]  ;;  %v1454_v47 = vmax.f32 %v3257_v8, %v3272_v33 }
  0x9e   : > { %v1222_v21 = vmax.f32 %v1158_v6, %v1190_v3  ;;  %v1345_v17 = vmax.f32 %v1281_v10, %v1313_v42  ;;  %v1346_v13 = vmax.f32 %v1282_v63, %v1314_v44  ;;  %v1347_v28 = vmax.f32 %v1283_v35, %v1315_v45  ;;  %v1254_v29 = vld [vmem:[#allocation2 + $0xf3] sm:$0xff]  ;;  %v1128_v34 = vld [vmem:[#allocation2 + $0x109] sm:$0xff]  ;;  %v1255_v40 = vld [vmem:[#allocation2 + $0xfb] sm:$0xff] }
  0x9f   : > { %v1348_v37 = vmax.f32 %v1284_v19, %v1316_v20  ;;  %v1349_v0 = vmax.f32 %v1285_v12, %v1317_v32  ;;  %v1160_v36 = vmax.f32 %v1096_v25, %v1128_v34  ;;  %v1097_v54 = vld [vmem:[#allocation2 + $0x110] sm:$0xff]  ;;  %v1223_v26 = vmax.f32 %v1159_v31, %v1191_v11  ;;  %v1098_v48 = vld [vmem:[#allocation2 + $0x120] sm:$0xff]  ;;  %v1099_v57 = vld [vmem:[#allocation2 + $0x128] sm:$0xff] }
  0xa0   : > { %v1286_v59 = vmax.f32 %v1222_v21, %v1254_v29  ;;  %v1129_v39 = vld [vmem:[#allocation2 + $0x111] sm:$0xff]  ;;  %2392 = vst.msk [vmem:[%s2882_s17 + $0x178] sm:$0xff] %vm402_vm1, %v1345_v17  ;;  %2393 = vst.msk [vmem:[%s2882_s17 + $0x180] sm:$0xff] %vm402_vm1, %v1346_v13  ;;  %v1501_v41 = vmax.f32 %v1452_v2, %v3272_v33  ;;  %v1130_v22 = vld [vmem:[#allocation2 + $0x121] sm:$0xff]  ;;  %v1455_v60 = vmax.f32 %v3266_v27, %v3280_v16 }
  0xa1   : > { %2394 = vst.msk [vmem:[%s2882_s17 + $0x188] sm:$0xff] %vm402_vm1, %v1347_v28  ;;  %v1318_v55 = vld [vmem:[#allocation2 + $0xf4] sm:$0xff]  ;;  %v1192_v43 = vld [vmem:[#allocation2 + $0x10a] sm:$0xff]  ;;  %v1161_v46 = vmax.f32 %v1097_v54, %v1129_v39  ;;  %2395 = vst.msk [vmem:[%s2882_s17 + $0x190] sm:$0xff] %vm402_vm1, %v1348_v37  ;;  %v1287_v51 = vmax.f32 %v1223_v26, %v1255_v40  ;;  %v1162_v8 = vmax.f32 %v1098_v48, %v1130_v22 }
  0xa2   : > { %2396 = vst.msk [vmem:[%s2882_s17 + $0x198] sm:$0xff] %vm402_vm1, %v1349_v0  ;;  %v1350_v49 = vmax.f32 %v1286_v59, %v1318_v55  ;;  %v1224_v50 = vmax.f32 %v1160_v36, %v1192_v43  ;;  %v1193_v24 = vld [vmem:[#allocation2 + $0x112] sm:$0xff]  ;;  %v1319_v52 = vld [vmem:[#allocation2 + $0xfc] sm:$0xff]  ;;  %v1502_v58 = vmax.f32 %v1453_v9, %v3280_v16  ;;  %v1549_v61 = vmax.f32 %v3298_v18, %v3280_v16  ;;  %v1131_v27 = vld [vmem:[#allocation2 + $0x129] sm:$0xff] }
  0xa3   : > { %v1256_v53 = vld [vmem:[#allocation2 + $0x10b] sm:$0xff]  ;;  %v1225_v56 = vmax.f32 %v1161_v46, %v1193_v24  ;;  %v1456_v62 = vmax.f32 %v3272_v33, %v3285_v38  ;;  %v1257_v2 = vld [vmem:[#allocation2 + $0x113] sm:$0xff]  ;;  %v1194_v42 = vld [vmem:[#allocation2 + $0x122] sm:$0xff]  ;;  %v1351_v44 = vmax.f32 %v1287_v51, %v1319_v52  ;;  %v1163_v23 = vmax.f32 %v1099_v57, %v1131_v27 }
  0xa4   : > { %2397 = vst.msk [vmem:[%s2882_s17 + $0x1a0] sm:$0xff] %vm402_vm1, %v1350_v49  ;;  %v1288_v15 = vmax.f32 %v1224_v50, %v1256_v53  ;;  %v1320_v4 = vld [vmem:[#allocation2 + $0x10c] sm:$0xff]  ;;  %v3322_v1 = vmax.f32 %v1162_v8, %v1194_v42  ;;  %v1100_v6 = vld [vmem:[#allocation2 + $0x138] sm:$0xff]  ;;  %v1503_v33 = vmax.f32 %v1454_v47, %v3285_v38  ;;  %v1550_v9 = vmax.f32 %v1501_v41, %v3285_v38  ;;  %v3326_v35 = vld [vmem:[#allocation2 + $0x123] sm:$0xff] }
  0xa5   : > { %v1289_v30 = vmax.f32 %v1225_v56, %v1257_v2  ;;  %v1132_v7 = vld [vmem:[#allocation2 + $0x139] sm:$0xff]  ;;  %v1195_v5 = vld [vmem:[#allocation2 + $0x12a] sm:$0xff]  ;;  %2398 = vst.msk [vmem:[%s2882_s17 + $0x1a8] sm:$0xff] %vm402_vm1, %v1351_v44  ;;  %v3332_v19 = vld [vmem:[#allocation2 + $0x141] sm:$0xff] }
  0xa6   : > { %v1352_v10 = vmax.f32 %v1288_v15, %v1320_v4  ;;  %v1321_v63 = vld [vmem:[#allocation2 + $0x114] sm:$0xff]  ;;  %v1164_v3 = vmax.f32 %v1100_v6, %v1132_v7  ;;  %v3330_v45 = vld [vmem:[#allocation2 + $0x140] sm:$0xff]  ;;  %v1290_v25 = vmax.f32 %v3322_v1, %v3326_v35  ;;  %v3341_v17 = vmax.f32 %v1163_v23, %v1195_v5  ;;  %v1680_v8 = vld [vmem:[#allocation2 + $0x8] sm:$0xff] }
  0xa7   : > { %v1353_v14 = vmax.f32 %v1289_v30, %v1321_v63  ;;  %v1196_v18 = vld [vmem:[#allocation2 + $0x13a] sm:$0xff]  ;;  %v1165_v28 = vmax.f32 %v3330_v45, %v3332_v19  ;;  %v1322_v15 = vld [vmem:[#allocation2 + $0x124] sm:$0xff] }
  0xa8   : > { %v2424_v20 = vld [vmem:[%s2882_s17 + $0x178] sm:$0xff]  ;;  %v2425_v12 = vld [vmem:[%s2882_s17 + $0x180] sm:$0xff]  ;;  %v2426_v21 = vld [vmem:[%s2882_s17 + $0x188] sm:$0xff]  ;;  %2399 = vst.msk [vmem:[%s2882_s17 + $0x1b0] sm:$0xff] %vm402_vm1, %v1352_v10  ;;  %v3343_v13 = vmax.f32 %v1164_v3, %v1196_v18 }
  0xa9   : > { %v1457_v32 = vmax.f32 %v3280_v16, %v2424_v20  ;;  %v1504_v29 = vmax.f32 %v1455_v60, %v2424_v20  ;;  %v1551_v31 = vmax.f32 %v1502_v58, %v2424_v20  ;;  %v1598_v34 = vmax.f32 %v1549_v61, %v2424_v20  ;;  %v2427_v37 = vld [vmem:[%s2882_s17 + $0x190] sm:$0xff]  ;;  %2400 = vst.msk [vmem:[%s2882_s17 + $0x1b8] sm:$0xff] %vm402_vm1, %v1353_v14  ;;  %v2428_v54 = vld [vmem:[%s2882_s17 + $0x198] sm:$0xff]  ;;  %v1679_v53 = vld [vmem:[#allocation2] sm:$0xff] }
  0xaa   : > { %v1458_v0 = vmax.f32 %v3285_v38, %v2425_v12  ;;  %v1505_v59 = vmax.f32 %v1456_v62, %v2425_v12  ;;  %v1552_v11 = vmax.f32 %v1503_v33, %v2425_v12  ;;  %v1599_v36 = vmax.f32 %v1550_v9, %v2425_v12  ;;  %v1711_v56 = vld [vmem:[#allocation2 + $0x1] sm:$0xff]  ;;  %v1259_v2 = vld [vmem:[#allocation2 + $0x12b] sm:$0xff]  ;;  %v1681_v44 = vld [vmem:[#allocation2 + $0x18] sm:$0xff] }
  0xab   : > { %1622 = vst.msk [vmem:[#allocation2 + $0x82] sm:$0xff] %vm402_vm1, %v1598_v34  ;;  %v1459_v39 = vmax.f32 %v2424_v20, %v2426_v21  ;;  %v1506_v55 = vmax.f32 %v1457_v32, %v2426_v21  ;;  %v1553_v26 = vmax.f32 %v1504_v29, %v2426_v21  ;;  %v1600_v40 = vmax.f32 %v1551_v31, %v2426_v21  ;;  %v3355_v16 = vld [vmem:[%s2882_s17 + $0x1a0] sm:$0xff]  ;;  %v1712_v27 = vld [vmem:[#allocation2 + $0x9] sm:$0xff] }
  0xac   : > { %1623 = vst.msk [vmem:[#allocation2 + $0x92] sm:$0xff] %vm402_vm1, %v1599_v36  ;;  %v1460_v43 = vmax.f32 %v2425_v12, %v2427_v37  ;;  %v1507_v46 = vmax.f32 %v1458_v0, %v2427_v37  ;;  %v1554_v47 = vmax.f32 %v1505_v59, %v2427_v37  ;;  %v1601_v41 = vmax.f32 %v1552_v11, %v2427_v37  ;;  %v3367_v52 = vld [vmem:[%s2882_s17 + $0x1a8] sm:$0xff]  ;;  %v1260_v42 = vld [vmem:[#allocation2 + $0x13b] sm:$0xff]  ;;  %v1715_v0 = vld [vmem:[#allocation2 + $0x31] sm:$0xff] }
  0xad   : > { %1624 = vst.msk [vmem:[#allocation2 + $0x9a] sm:$0xff] %vm402_vm1, %v1600_v40  ;;  %v1461_v38 = vmax.f32 %v2426_v21, %v2428_v54  ;;  %v1508_v49 = vmax.f32 %v1459_v39, %v2428_v54  ;;  %v1555_v50 = vmax.f32 %v1506_v55, %v2428_v54  ;;  %v1602_v24 = vmax.f32 %v1553_v26, %v2428_v54  ;;  %v1713_v33 = vld [vmem:[#allocation2 + $0x19] sm:$0xff]  ;;  %v1323_v14 = vld [vmem:[#allocation2 + $0x12c] sm:$0xff]  ;;  %v1197_v20 = vld [vmem:[#allocation2 + $0x142] sm:$0xff] }
  0xae   : > { %1625 = vst.msk [vmem:[#allocation2 + $0xaa] sm:$0xff] %vm402_vm1, %v1601_v41  ;;  %v1462_v48 = vmax.f32 %v2427_v37, %v3355_v16  ;;  %v3362_v22 = vmax.f32 %v1460_v43, %v3355_v16  ;;  %v1556_v60 = vmax.f32 %v1507_v46, %v3355_v16  ;;  %v1603_v51 = vmax.f32 %v1554_v47, %v3355_v16  ;;  %v1682_v9 = vld [vmem:[#allocation2 + $0x20] sm:$0xff]  ;;  %v1683_v37 = vld [vmem:[#allocation2 + $0x30] sm:$0xff]  ;;  %v1684_v43 = vld [vmem:[#allocation2 + $0x38] sm:$0xff] }
  0xaf   : > { %1626 = vst.msk [vmem:[#allocation2 + $0xb2] sm:$0xff] %vm402_vm1, %v1602_v24  ;;  %v1463_v57 = vmax.f32 %v2428_v54, %v3367_v52  ;;  %v1557_v58 = vmax.f32 %v1508_v49, %v3367_v52  ;;  %v1604_v61 = vmax.f32 %v1555_v50, %v3367_v52  ;;  %v3374_v62 = vld [vmem:[%s2882_s17 + $0x1b0] sm:$0xff]  ;;  %v3378_v4 = vmax.f32 %v1461_v38, %v3367_v52  ;;  %v1324_v18 = vld [vmem:[#allocation2 + $0x13c] sm:$0xff]  ;;  %v1325_v59 = vld [vmem:[#allocation2 + $0x144] sm:$0xff] }
  0xb0   : > { %1627 = vst.msk [vmem:[#allocation2 + $0xc2] sm:$0xff] %vm402_vm1, %v1603_v51  ;;  %v1464_v30 = vmax.f32 %v3355_v16, %v3374_v62  ;;  %v3383_v23 = vmax.f32 %v1462_v48, %v3374_v62  ;;  %v1605_v6 = vmax.f32 %v1556_v60, %v3374_v62  ;;  %v3387_v7 = vld [vmem:[%s2882_s17 + $0x1b8] sm:$0xff]  ;;  %v1558_v10 = vmax.f32 %v3362_v22, %v3374_v62  ;;  %v1714_v12 = vld [vmem:[#allocation2 + $0x21] sm:$0xff]  ;;  %v1776_v1 = vld [vmem:[#allocation2 + $0xa] sm:$0xff] }
  0xb1   : > { %1628 = vst.msk [vmem:[#allocation2 + $0xca] sm:$0xff] %vm402_vm1, %v1604_v61  ;;  %v1465_v63 = vmax.f32 %v3367_v52, %v3387_v7  ;;  %v3395_v5 = vmax.f32 %v1463_v57, %v3387_v7  ;;  %v1606_v3 = vmax.f32 %v1557_v58, %v3387_v7  ;;  %v1354_v21 = vmax.f32 %v1290_v25, %v1322_v15  ;;  %v1261_v34 = vld [vmem:[#allocation2 + $0x143] sm:$0xff]  ;;  %v1777_v25 = vld [vmem:[#allocation2 + $0x1a] sm:$0xff]  ;;  %v1779_v24 = vld [vmem:[#allocation2 + $0x32] sm:$0xff] }
  0xb2   : > { %1629 = vst.msk [vmem:[#allocation2 + $0xda] sm:$0xff] %vm402_vm1, %v1605_v6  ;;  %v1291_v32 = vmax.f32 %v3341_v17, %v1259_v2  ;;  %v1292_v29 = vmax.f32 %v3343_v13, %v1260_v42  ;;  %v1229_v31 = vmax.f32 %v1165_v28, %v1197_v20  ;;  %v1743_v11 = vmax.f32 %v1679_v53, %v1711_v56  ;;  %v1775_v36 = vld [vmem:[#allocation2 + $0x2] sm:$0xff]  ;;  %v1840_v28 = vld [vmem:[#allocation2 + $0xb] sm:$0xff]  ;;  %v1716_v46 = vld [vmem:[#allocation2 + $0x39] sm:$0xff] }
  0xb3   : > { %1630 = vst.msk [vmem:[#allocation2 + $0xe2] sm:$0xff] %vm402_vm1, %v1606_v3  ;;  %v1744_v54 = vmax.f32 %v1680_v8, %v1712_v27  ;;  %v1745_v35 = vmax.f32 %v1681_v44, %v1713_v33  ;;  %v1746_v39 = vmax.f32 %v1682_v9, %v1714_v12  ;;  %2401 = vst.msk [vmem:[%s2882_s17 + $0x1c0] sm:$0xff] %vm402_vm1, %v1354_v21  ;;  %v1839_v19 = vld [vmem:[#allocation2 + $0x3] sm:$0xff]  ;;  %v1841_v55 = vld [vmem:[#allocation2 + $0x1b] sm:$0xff] }
  0xb4   : > { %v1355_v17 = vmax.f32 %v1291_v32, %v1323_v14  ;;  %v1356_v13 = vmax.f32 %v1292_v29, %v1324_v18  ;;  %v1293_v45 = vmax.f32 %v1229_v31, %v1261_v34  ;;  %v1778_v26 = vld [vmem:[#allocation2 + $0x22] sm:$0xff]  ;;  %v1747_v40 = vmax.f32 %v1683_v37, %v1715_v0  ;;  %v1904_v57 = vld [vmem:[#allocation2 + $0xc] sm:$0xff]  ;;  %v1780_v3 = vld [vmem:[#allocation2 + $0x3a] sm:$0xff] }
  0xb5   : > { %v1807_v47 = vmax.f32 %v1743_v11, %v1775_v36  ;;  %v1808_v41 = vmax.f32 %v1744_v54, %v1776_v1  ;;  %v1809_v38 = vmax.f32 %v1745_v35, %v1777_v25  ;;  %v1810_v49 = vmax.f32 %v1746_v39, %v1778_v26  ;;  %v1842_v50 = vld [vmem:[#allocation2 + $0x23] sm:$0xff]  ;;  %v1843_v2 = vld [vmem:[#allocation2 + $0x33] sm:$0xff]  ;;  %v1844_v32 = vld [vmem:[#allocation2 + $0x3b] sm:$0xff] }
  0xb6   : > { %v1685_v48 = vld [vmem:[#allocation2 + $0x48] sm:$0xff]  ;;  %v3411_v60 = vld [vmem:[%s2882_s17 + $0x1e0] sm:$0xff]  ;;  %v1559_v53 = vmax.f32 %v3378_v4, %v3387_v7  ;;  %2402 = vst.msk [vmem:[%s2882_s17 + $0x1c8] sm:$0xff] %vm402_vm1, %v1355_v17  ;;  %2403 = vst.msk [vmem:[%s2882_s17 + $0x1d0] sm:$0xff] %vm402_vm1, %v1356_v13  ;;  %v1357_v56 = vmax.f32 %v1293_v45, %v1325_v59  ;;  %v1811_v15 = vmax.f32 %v1747_v40, %v1779_v24 }
  0xb7   : > { %v3414_v51 = vld [vmem:[%s2882_s17 + $0x1e8] sm:$0xff]  ;;  %v1905_v58 = vld [vmem:[#allocation2 + $0x1c] sm:$0xff]  ;;  %v1748_v42 = vmax.f32 %v1684_v43, %v1716_v46  ;;  %v1871_v44 = vmax.f32 %v1807_v47, %v1839_v19  ;;  %v1872_v6 = vmax.f32 %v1808_v41, %v1840_v28  ;;  %v1873_v33 = vmax.f32 %v1809_v38, %v1841_v55  ;;  %v1686_v14 = vld [vmem:[#allocation2 + $0x50] sm:$0xff] }
  0xb8   : > { %v1903_v8 = vld [vmem:[#allocation2 + $0x4] sm:$0xff]  ;;  %v1874_v9 = vmax.f32 %v1810_v49, %v1842_v50  ;;  %v1718_v18 = vld [vmem:[#allocation2 + $0x51] sm:$0xff]  ;;  %2404 = vst.msk [vmem:[%s2882_s17 + $0x1d8] sm:$0xff] %vm402_vm1, %v1357_v56  ;;  %v1875_v20 = vmax.f32 %v1811_v15, %v1843_v2  ;;  %v1908_v26 = vld [vmem:[#allocation2 + $0x3c] sm:$0xff] }
  0xb9   : > { %v1906_v61 = vld [vmem:[#allocation2 + $0x24] sm:$0xff]  ;;  %v1907_v12 = vld [vmem:[#allocation2 + $0x34] sm:$0xff]  ;;  %v1812_v21 = vmax.f32 %v1748_v42, %v1780_v3  ;;  %v1750_v34 = vmax.f32 %v1686_v14, %v1718_v18  ;;  %v1935_v37 = vmax.f32 %v1871_v44, %v1903_v8  ;;  %v1936_v0 = vmax.f32 %v1872_v6, %v1904_v57  ;;  %v1909_v57 = vld [vmem:[#allocation2 + $0x4c] sm:$0xff] }
  0xba   : > { %v1717_v27 = vld [vmem:[#allocation2 + $0x49] sm:$0xff]  ;;  %v1937_v59 = vmax.f32 %v1873_v33, %v1905_v58  ;;  %v1938_v11 = vmax.f32 %v1874_v9, %v1906_v61  ;;  %v1782_v36 = vld [vmem:[#allocation2 + $0x52] sm:$0xff]  ;;  %v1687_v54 = vld [vmem:[#allocation2 + $0x60] sm:$0xff]  ;;  %v1939_v39 = vmax.f32 %v1875_v20, %v1907_v12 }
  0xbb   : > { %v1749_v29 = vmax.f32 %v1685_v48, %v1717_v27  ;;  %v1781_v31 = vld [vmem:[#allocation2 + $0x4a] sm:$0xff]  ;;  %v1719_v1 = vld [vmem:[#allocation2 + $0x61] sm:$0xff]  ;;  %v3428_v25 = vld [vmem:[%s2882_s17 + $0x1f8] sm:$0xff]  ;;  %v1876_v17 = vmax.f32 %v1812_v21, %v1844_v32  ;;  %v1814_v45 = vmax.f32 %v1750_v34, %v1782_v36  ;;  %2545 = vst.msk [vmem:[%s2882_s17 + $0x200] sm:$0xff] %vm402_vm1, %v1935_v37 }
  0xbc   : > { %v3425_v35 = vld [vmem:[%s2882_s17 + $0x1f0] sm:$0xff]  ;;  %v1660_v28 = vmax.f32 %v3428_v25, %v3414_v51  ;;  %v3435_v55 = vld [vmem:[%s2882_s17 + $0x1c0] sm:$0xff]  ;;  %2546 = vst.msk [vmem:[%s2882_s17 + $0x208] sm:$0xff] %vm402_vm1, %v1936_v0  ;;  %2547 = vst.msk [vmem:[%s2882_s17 + $0x210] sm:$0xff] %vm402_vm1, %v1937_v59  ;;  %v1751_v40 = vmax.f32 %v1687_v54, %v1719_v1 }
  0xbd   : > { %v1813_v13 = vmax.f32 %v1749_v29, %v1781_v31  ;;  %v1659_v19 = vmax.f32 %v3425_v35, %v3411_v60  ;;  %2548 = vst.msk [vmem:[%s2882_s17 + $0x218] sm:$0xff] %vm402_vm1, %v1938_v11  ;;  %v1466_v43 = vmax.f32 %v3374_v62, %v3435_v55  ;;  %v1513_v46 = vmax.f32 %v1464_v30, %v3435_v55  ;;  %v1845_v38 = vld [vmem:[#allocation2 + $0x4b] sm:$0xff]  ;;  %v1846_v49 = vld [vmem:[#allocation2 + $0x53] sm:$0xff]  ;;  %v1783_v50 = vld [vmem:[#allocation2 + $0x62] sm:$0xff] }
  0xbe   : > { %v1560_v47 = vmax.f32 %v3383_v23, %v3435_v55  ;;  %v1607_v41 = vmax.f32 %v1558_v10, %v3435_v55  ;;  %2549 = vst.msk [vmem:[%s2882_s17 + $0x220] sm:$0xff] %vm402_vm1, %v1939_v39  ;;  %v2456_v24 = vld [vmem:[%s2882_s17 + $0x1c8] sm:$0xff]  ;;  %v2479_v48 = vld [vmem:[%s2882_s17 + $0x1d0] sm:$0xff]  ;;  %v1940_v56 = vmax.f32 %v1876_v17, %v1908_v26  ;;  %v1878_v30 = vmax.f32 %v1814_v45, %v1846_v49  ;;  %v1689_v9 = vld [vmem:[#allocation2 + $0x78] sm:$0xff] }
  0xbf   : > { %v1877_v16 = vmax.f32 %v1813_v13, %v1845_v38  ;;  %v3461_v8 = vmax.f32 %v1751_v40, %v1783_v50  ;;  %v1467_v23 = vmax.f32 %v3387_v7, %v2456_v24  ;;  %v1514_v22 = vmax.f32 %v1465_v63, %v2456_v24  ;;  %v2480_v42 = vld [vmem:[%s2882_s17 + $0x1d8] sm:$0xff]  ;;  %v1688_v44 = vld [vmem:[#allocation2 + $0x68] sm:$0xff]  ;;  %v1690_v7 = vld [vmem:[#allocation2 + $0x80] sm:$0xff] }
  0xc0   : > { %1631 = vst.msk [vmem:[#allocation2 + $0xf2] sm:$0xff] %vm402_vm1, %v1607_v41  ;;  %v1561_v62 = vmax.f32 %v3395_v5, %v2456_v24  ;;  %v1608_v10 = vmax.f32 %v1559_v53, %v2456_v24  ;;  %v1515_v58 = vmax.f32 %v1466_v43, %v2479_v48  ;;  %v1562_v61 = vmax.f32 %v1513_v46, %v2479_v48  ;;  %v1910_v27 = vld [vmem:[#allocation2 + $0x54] sm:$0xff]  ;;  %v1720_v6 = vld [vmem:[#allocation2 + $0x69] sm:$0xff]  ;;  %v1722_v20 = vld [vmem:[#allocation2 + $0x81] sm:$0xff] }
  0xc1   : > { %v1609_v15 = vmax.f32 %v1560_v47, %v2479_v48  ;;  %v1664_v2 = vmax.f32 %v1659_v19, %v2479_v48  ;;  %2550 = vst.msk [vmem:[%s2882_s17 + $0x228] sm:$0xff] %vm402_vm1, %v1940_v56  ;;  %v1516_v52 = vmax.f32 %v1467_v23, %v2480_v42  ;;  %v1563_v63 = vmax.f32 %v1514_v22, %v2480_v42  ;;  %v1721_v4 = vld [vmem:[#allocation2 + $0x79] sm:$0xff]  ;;  %v1691_v12 = vld [vmem:[#allocation2 + $0x90] sm:$0xff]  ;;  %v1847_v34 = vld [vmem:[#allocation2 + $0x63] sm:$0xff] }
  0xc2   : > { %1632 = vst.msk [vmem:[#allocation2 + $0xfa] sm:$0xff] %vm402_vm1, %v1608_v10  ;;  %v1610_v5 = vmax.f32 %v1561_v62, %v2480_v42  ;;  %v1665_v33 = vmax.f32 %v1660_v28, %v2480_v42  ;;  %v1564_v53 = vmax.f32 %v1515_v58, %v3411_v60  ;;  %v1611_v3 = vmax.f32 %v1562_v61, %v3411_v60  ;;  %v1723_v21 = vld [vmem:[#allocation2 + $0x91] sm:$0xff]  ;;  %v1911_v37 = vld [vmem:[#allocation2 + $0x64] sm:$0xff]  ;;  %v1785_v1 = vld [vmem:[#allocation2 + $0x7a] sm:$0xff] }
  0xc3   : > { %v1669_v14 = vmax.f32 %v1664_v2, %v3435_v55  ;;  %1633 = vst.msk [vmem:[#allocation2 + $0x10a] sm:$0xff] %vm402_vm1, %v1609_v15  ;;  %1675 = vst.msk [vmem:[#allocation2 + $0x16a] sm:$0xff] %vm402_vm1, %v1664_v2  ;;  %v1941_v18 = vmax.f32 %v1877_v16, %v1909_v57  ;;  %v1565_v32 = vmax.f32 %v1516_v52, %v3414_v51  ;;  %v1692_v0 = vld [vmem:[#allocation2 + $0x98] sm:$0xff]  ;;  %v1784_v36 = vld [vmem:[#allocation2 + $0x6a] sm:$0xff] }
  0xc4   : > { %v1612_v29 = vmax.f32 %v1563_v63, %v3414_v51  ;;  %v1670_v31 = vmax.f32 %v1665_v33, %v2456_v24  ;;  %1634 = vst.msk [vmem:[#allocation2 + $0x112] sm:$0xff] %vm402_vm1, %v1610_v5  ;;  %1676 = vst.msk [vmem:[#allocation2 + $0x172] sm:$0xff] %vm402_vm1, %v1665_v33  ;;  %v1942_v60 = vmax.f32 %v1878_v30, %v1910_v27  ;;  %v1724_v39 = vld [vmem:[#allocation2 + $0x99] sm:$0xff]  ;;  %v1786_v19 = vld [vmem:[#allocation2 + $0x82] sm:$0xff] }
  0xc5   : > { %v1613_v59 = vmax.f32 %v1564_v53, %v3425_v35  ;;  %1635 = vst.msk [vmem:[#allocation2 + $0x122] sm:$0xff] %vm402_vm1, %v1611_v3  ;;  %1677 = vst.msk [vmem:[#allocation2 + $0x152] sm:$0xff] %vm402_vm1, %v1669_v14  ;;  %v1879_v51 = vmax.f32 %v3461_v8, %v1847_v34  ;;  %v1752_v11 = vmax.f32 %v1688_v44, %v1720_v6  ;;  %v1848_v35 = vld [vmem:[#allocation2 + $0x6b] sm:$0xff]  ;;  %v1849_v13 = vld [vmem:[#allocation2 + $0x7b] sm:$0xff] }
  0xc6   : > { %2551 = vst.msk [vmem:[%s2882_s17 + $0x230] sm:$0xff] %vm402_vm1, %v1941_v18  ;;  %v1753_v54 = vmax.f32 %v1689_v9, %v1721_v4  ;;  %v1614_v17 = vmax.f32 %v1565_v32, %v3428_v25  ;;  %1636 = vst.msk [vmem:[#allocation2 + $0x12a] sm:$0xff] %vm402_vm1, %v1612_v29  ;;  %v1754_v45 = vmax.f32 %v1690_v7, %v1722_v20  ;;  %v1693_v26 = vld [vmem:[#allocation2 + $0xa8] sm:$0xff]  ;;  %v1787_v41 = vld [vmem:[#allocation2 + $0x92] sm:$0xff] }
  0xc7   : > { %1678 = vst.msk [vmem:[#allocation2 + $0x15a] sm:$0xff] %vm402_vm1, %v1670_v31  ;;  %2552 = vst.msk [vmem:[%s2882_s17 + $0x238] sm:$0xff] %vm402_vm1, %v1942_v60  ;;  %v1755_v28 = vmax.f32 %v1691_v12, %v1723_v21  ;;  %v1756_v55 = vmax.f32 %v1692_v0, %v1724_v39  ;;  %v1725_v40 = vld [vmem:[#allocation2 + $0xa9] sm:$0xff]  ;;  %v1943_v43 = vmax.f32 %v1879_v51, %v1911_v37  ;;  %v1851_v38 = vld [vmem:[#allocation2 + $0x93] sm:$0xff] }
  0xc8   : > { %1637 = vst.msk [vmem:[#allocation2 + $0x13a] sm:$0xff] %vm402_vm1, %v1613_v59  ;;  %v1816_v46 = vmax.f32 %v1752_v11, %v1784_v36  ;;  %v1817_v25 = vmax.f32 %v1753_v54, %v1785_v1  ;;  %v1850_v47 = vld [vmem:[#allocation2 + $0x83] sm:$0xff]  ;;  %v1788_v49 = vld [vmem:[#allocation2 + $0x9a] sm:$0xff]  ;;  %v1757_v50 = vmax.f32 %v1693_v26, %v1725_v40  ;;  %1638 = vst.msk [vmem:[#allocation2 + $0x142] sm:$0xff] %vm402_vm1, %v1614_v17 }
  0xc9   : > { %v1912_v24 = vld [vmem:[#allocation2 + $0x6c] sm:$0xff]  ;;  %v1913_v48 = vld [vmem:[#allocation2 + $0x7c] sm:$0xff]  ;;  %v1818_v56 = vmax.f32 %v1754_v45, %v1786_v19  ;;  %v1819_v16 = vmax.f32 %v1755_v28, %v1787_v41  ;;  %v1820_v30 = vmax.f32 %v1756_v55, %v1788_v49  ;;  %2553 = vst.msk [vmem:[%s2882_s17 + $0x240] sm:$0xff] %vm402_vm1, %v1943_v43  ;;  %v1914_v57 = vld [vmem:[#allocation2 + $0x84] sm:$0xff] }
  0xca   : > { %v1789_v8 = vld [vmem:[#allocation2 + $0xaa] sm:$0xff]  ;;  %v1880_v62 = vmax.f32 %v1816_v46, %v1848_v35  ;;  %v1881_v10 = vmax.f32 %v1817_v25, %v1849_v13  ;;  %v1915_v58 = vld [vmem:[#allocation2 + $0x94] sm:$0xff]  ;;  %v1916_v15 = vld [vmem:[#allocation2 + $0x9c] sm:$0xff] }
  0xcb   : > { %v1694_v23 = vld [vmem:[#allocation2 + $0xb0] sm:$0xff]  ;;  %v1852_v61 = vld [vmem:[#allocation2 + $0x9b] sm:$0xff]  ;;  %v1821_v2 = vmax.f32 %v1757_v50, %v1789_v8  ;;  %v1709_v44 = vld [vmem:[#allocation2 + $0x168] sm:$0xff]  ;;  %v1882_v52 = vmax.f32 %v1818_v56, %v1850_v47  ;;  %v1883_v63 = vmax.f32 %v1819_v16, %v1851_v38 }
  0xcc   : > { %v1726_v22 = vld [vmem:[#allocation2 + $0xb1] sm:$0xff]  ;;  %v1741_v6 = vld [vmem:[#allocation2 + $0x169] sm:$0xff]  ;;  %v1884_v5 = vmax.f32 %v1820_v30, %v1852_v61  ;;  %v1944_v7 = vmax.f32 %v1880_v62, %v1912_v24  ;;  %v1945_v53 = vmax.f32 %v1881_v10, %v1913_v48  ;;  %v1695_v60 = vld [vmem:[#allocation2 + $0xc0] sm:$0xff] }
  0xcd   : > { %v1853_v42 = vld [vmem:[#allocation2 + $0xab] sm:$0xff]  ;;  %v1758_v27 = vmax.f32 %v1694_v23, %v1726_v22  ;;  %v1773_v9 = vmax.f32 %v1709_v44, %v1741_v6  ;;  %v1854_v18 = vld [vmem:[#allocation2 + $0xb3] sm:$0xff]  ;;  %v1946_v21 = vmax.f32 %v1882_v52, %v1914_v57  ;;  %v1947_v32 = vmax.f32 %v1883_v63, %v1915_v58  ;;  %v1727_v47 = vld [vmem:[#allocation2 + $0xc1] sm:$0xff] }
  0xce   : > { %v1917_v33 = vld [vmem:[#allocation2 + $0xac] sm:$0xff]  ;;  %v1885_v3 = vmax.f32 %v1821_v2, %v1853_v42  ;;  %v1948_v29 = vmax.f32 %v1884_v5, %v1916_v15  ;;  %2554 = vst.msk [vmem:[%s2882_s17 + $0x248] sm:$0xff] %vm402_vm1, %v1944_v7  ;;  %2555 = vst.msk [vmem:[%s2882_s17 + $0x250] sm:$0xff] %vm402_vm1, %v1945_v53  ;;  %v1918_v36 = vld [vmem:[#allocation2 + $0xb4] sm:$0xff]  ;;  %v1759_v48 = vmax.f32 %v1695_v60, %v1727_v47 }
  0xcf   : > { %v1710_v4 = vld [vmem:[#allocation2 + $0x170] sm:$0xff]  ;;  %2556 = vst.msk [vmem:[%s2882_s17 + $0x258] sm:$0xff] %vm402_vm1, %v1946_v21  ;;  %2557 = vst.msk [vmem:[%s2882_s17 + $0x260] sm:$0xff] %vm402_vm1, %v1947_v32  ;;  %v1708_v28 = vld [vmem:[#allocation2 + $0x158] sm:$0xff] }
  0xd0   : > { %v1790_v14 = vld [vmem:[#allocation2 + $0xb2] sm:$0xff]  ;;  %v1805_v20 = vld [vmem:[#allocation2 + $0x16a] sm:$0xff]  ;;  %v1949_v11 = vmax.f32 %v1885_v3, %v1917_v33  ;;  %2558 = vst.msk [vmem:[%s2882_s17 + $0x268] sm:$0xff] %vm402_vm1, %v1948_v29  ;;  %v1804_v50 = vld [vmem:[#allocation2 + $0x15a] sm:$0xff] }
  0xd1   : > { %v1742_v12 = vld [vmem:[#allocation2 + $0x171] sm:$0xff]  ;;  %v1822_v31 = vmax.f32 %v1758_v27, %v1790_v14  ;;  %v1837_v34 = vmax.f32 %v1773_v9, %v1805_v20  ;;  %v1740_v55 = vld [vmem:[#allocation2 + $0x159] sm:$0xff]  ;;  %v1791_v30 = vld [vmem:[#allocation2 + $0xc2] sm:$0xff] }
  0xd2   : > { %v1869_v37 = vld [vmem:[#allocation2 + $0x16b] sm:$0xff]  ;;  %v1774_v0 = vmax.f32 %v1710_v4, %v1742_v12  ;;  %v1870_v39 = vld [vmem:[#allocation2 + $0x173] sm:$0xff]  ;;  %2559 = vst.msk [vmem:[%s2882_s17 + $0x270] sm:$0xff] %vm402_vm1, %v1949_v11  ;;  %v1772_v46 = vmax.f32 %v1708_v28, %v1740_v55  ;;  %v1868_v24 = vld [vmem:[#allocation2 + $0x15b] sm:$0xff]  ;;  %v1823_v10 = vmax.f32 %v1759_v48, %v1791_v30 }
  0xd3   : > { %v1707_v59 = vld [vmem:[#allocation2 + $0x150] sm:$0xff]  ;;  %v1886_v35 = vmax.f32 %v1822_v31, %v1854_v18  ;;  %v1901_v13 = vmax.f32 %v1837_v34, %v1869_v37  ;;  %v1696_v8 = vld [vmem:[#allocation2 + $0xc8] sm:$0xff]  ;;  %v1932_v62 = vld [vmem:[#allocation2 + $0x15c] sm:$0xff] }
  0xd4   : > { %v1739_v51 = vld [vmem:[#allocation2 + $0x151] sm:$0xff]  ;;  %v1836_v16 = vmax.f32 %v1772_v46, %v1804_v50  ;;  %v1728_v23 = vld [vmem:[#allocation2 + $0xc9] sm:$0xff]  ;;  %v1729_v44 = vld [vmem:[#allocation2 + $0xd9] sm:$0xff] }
  0xd5   : > { %v1933_v54 = vld [vmem:[#allocation2 + $0x16c] sm:$0xff]  ;;  %v1771_v17 = vmax.f32 %v1707_v59, %v1739_v51  ;;  %v1934_v26 = vld [vmem:[#allocation2 + $0x174] sm:$0xff]  ;;  %v1950_v25 = vmax.f32 %v1886_v35, %v1918_v36  ;;  %v1855_v57 = vld [vmem:[#allocation2 + $0xc3] sm:$0xff]  ;;  %v1760_v58 = vmax.f32 %v1696_v8, %v1728_v23 }
  0xd6   : > { %v1806_v1 = vld [vmem:[#allocation2 + $0x172] sm:$0xff]  ;;  %v1965_v41 = vmax.f32 %v1901_v13, %v1933_v54  ;;  %v1900_v2 = vmax.f32 %v1836_v16, %v1868_v24  ;;  %v1919_v42 = vld [vmem:[#allocation2 + $0xc4] sm:$0xff]  ;;  %v1887_v6 = vmax.f32 %v1823_v10, %v1855_v57  ;;  %v1793_v53 = vld [vmem:[#allocation2 + $0xda] sm:$0xff] }
  0xd7   : > { %v1838_v45 = vmax.f32 %v1774_v0, %v1806_v1  ;;  %v1803_v19 = vld [vmem:[#allocation2 + $0x152] sm:$0xff]  ;;  %2560 = vst.msk [vmem:[%s2882_s17 + $0x278] sm:$0xff] %vm402_vm1, %v1950_v25  ;;  %v1792_v27 = vld [vmem:[#allocation2 + $0xca] sm:$0xff]  ;;  %v1698_v33 = vld [vmem:[#allocation2 + $0xe0] sm:$0xff] }
  0xd8   : > { %v1835_v40 = vmax.f32 %v1771_v17, %v1803_v19  ;;  %v1867_v43 = vld [vmem:[#allocation2 + $0x153] sm:$0xff]  ;;  %2575 = vst.msk [vmem:[%s2882_s17 + $0x2f0] sm:$0xff] %vm402_vm1, %v1965_v41  ;;  %v1824_v52 = vmax.f32 %v1760_v58, %v1792_v27  ;;  %v1856_v63 = vld [vmem:[#allocation2 + $0xcb] sm:$0xff]  ;;  %v1730_v9 = vld [vmem:[#allocation2 + $0xe1] sm:$0xff]  ;;  %v1964_v4 = vmax.f32 %v1900_v2, %v1932_v62  ;;  %v1951_v18 = vmax.f32 %v1887_v6, %v1919_v42 }
  0xd9   : > { %v1902_v38 = vmax.f32 %v1838_v45, %v1870_v39  ;;  %v1931_v49 = vld [vmem:[#allocation2 + $0x154] sm:$0xff]  ;;  %v1920_v7 = vld [vmem:[#allocation2 + $0xcc] sm:$0xff]  ;;  %v1762_v14 = vmax.f32 %v1698_v33, %v1730_v9  ;;  %v1794_v21 = vld [vmem:[#allocation2 + $0xe2] sm:$0xff] }
  0xda   : > { %v1899_v56 = vmax.f32 %v1835_v40, %v1867_v43  ;;  %v1697_v61 = vld [vmem:[#allocation2 + $0xd8] sm:$0xff]  ;;  %v1888_v20 = vmax.f32 %v1824_v52, %v1856_v63  ;;  %v1699_v32 = vld [vmem:[#allocation2 + $0xf0] sm:$0xff]  ;;  %2574 = vst.msk [vmem:[%s2882_s17 + $0x2e8] sm:$0xff] %vm402_vm1, %v1964_v4  ;;  %v1858_v34 = vld [vmem:[#allocation2 + $0xe3] sm:$0xff] }
  0xdb   : > { %v1966_v22 = vmax.f32 %v1902_v38, %v1934_v26  ;;  %v1761_v5 = vmax.f32 %v1697_v61, %v1729_v44  ;;  %v1857_v3 = vld [vmem:[#allocation2 + $0xdb] sm:$0xff]  ;;  %v1731_v29 = vld [vmem:[#allocation2 + $0xf1] sm:$0xff]  ;;  %v1826_v60 = vmax.f32 %v1762_v14, %v1794_v21  ;;  %2561 = vst.msk [vmem:[%s2882_s17 + $0x280] sm:$0xff] %vm402_vm1, %v1951_v18  ;;  %v1922_v11 = vld [vmem:[#allocation2 + $0xe4] sm:$0xff] }
  0xdc   : > { %v1963_v15 = vmax.f32 %v1899_v56, %v1931_v49  ;;  %v1921_v31 = vld [vmem:[#allocation2 + $0xdc] sm:$0xff]  ;;  %v1763_v37 = vmax.f32 %v1699_v32, %v1731_v29  ;;  %v1952_v59 = vmax.f32 %v1888_v20, %v1920_v7  ;;  %v1795_v36 = vld [vmem:[#allocation2 + $0xf2] sm:$0xff]  ;;  %v1701_v13 = vld [vmem:[#allocation2 + $0x108] sm:$0xff] }
  0xdd   : > { %2576 = vst.msk [vmem:[%s2882_s17 + $0x2f8] sm:$0xff] %vm402_vm1, %v1966_v22  ;;  %v1825_v12 = vmax.f32 %v1761_v5, %v1793_v53  ;;  %v1700_v0 = vld [vmem:[#allocation2 + $0xf8] sm:$0xff]  ;;  %v1890_v1 = vmax.f32 %v1826_v60, %v1858_v34  ;;  %v1733_v45 = vld [vmem:[#allocation2 + $0x109] sm:$0xff]  ;;  %v1703_v56 = vld [vmem:[#allocation2 + $0x120] sm:$0xff] }
  0xde   : > { %2573 = vst.msk [vmem:[%s2882_s17 + $0x2e0] sm:$0xff] %vm402_vm1, %v1963_v15  ;;  %v1732_v54 = vld [vmem:[#allocation2 + $0xf9] sm:$0xff]  ;;  %v1827_v39 = vmax.f32 %v1763_v37, %v1795_v36  ;;  %2562 = vst.msk [vmem:[%s2882_s17 + $0x288] sm:$0xff] %vm402_vm1, %v1952_v59  ;;  %v1765_v40 = vmax.f32 %v1701_v13, %v1733_v45  ;;  %v1797_v47 = vld [vmem:[#allocation2 + $0x10a] sm:$0xff] }
  0xdf   : > { %v1889_v51 = vmax.f32 %v1825_v12, %v1857_v3  ;;  %v1859_v17 = vld [vmem:[#allocation2 + $0xf3] sm:$0xff]  ;;  %v1764_v35 = vmax.f32 %v1700_v0, %v1732_v54  ;;  %v1860_v26 = vld [vmem:[#allocation2 + $0xfb] sm:$0xff]  ;;  %v1954_v43 = vmax.f32 %v1890_v1, %v1922_v11  ;;  %v1861_v24 = vld [vmem:[#allocation2 + $0x10b] sm:$0xff] }
  0xe0   : > { %v1923_v28 = vld [vmem:[#allocation2 + $0xf4] sm:$0xff]  ;;  %v1891_v46 = vmax.f32 %v1827_v39, %v1859_v17  ;;  %v1924_v49 = vld [vmem:[#allocation2 + $0xfc] sm:$0xff]  ;;  %v1829_v50 = vmax.f32 %v1765_v40, %v1797_v47  ;;  %v1925_v8 = vld [vmem:[#allocation2 + $0x10c] sm:$0xff] }
  0xe1   : > { %v1953_v19 = vmax.f32 %v1889_v51, %v1921_v31  ;;  %v1796_v55 = vld [vmem:[#allocation2 + $0xfa] sm:$0xff]  ;;  %v1702_v41 = vld [vmem:[#allocation2 + $0x110] sm:$0xff]  ;;  %2564 = vst.msk [vmem:[%s2882_s17 + $0x298] sm:$0xff] %vm402_vm1, %v1954_v43  ;;  %v1704_v61 = vld [vmem:[#allocation2 + $0x128] sm:$0xff] }
  0xe2   : > { %v1828_v25 = vmax.f32 %v1764_v35, %v1796_v55  ;;  %v1734_v38 = vld [vmem:[#allocation2 + $0x111] sm:$0xff]  ;;  %v1955_v16 = vmax.f32 %v1891_v46, %v1923_v28  ;;  %v1735_v22 = vld [vmem:[#allocation2 + $0x121] sm:$0xff]  ;;  %v1893_v62 = vmax.f32 %v1829_v50, %v1861_v24  ;;  %v1736_v15 = vld [vmem:[#allocation2 + $0x129] sm:$0xff] }
  0xe3   : > { %2563 = vst.msk [vmem:[%s2882_s17 + $0x290] sm:$0xff] %vm402_vm1, %v1953_v19  ;;  %v1766_v48 = vmax.f32 %v1702_v41, %v1734_v38  ;;  %v1798_v23 = vld [vmem:[#allocation2 + $0x112] sm:$0xff]  ;;  %v1767_v58 = vmax.f32 %v1703_v56, %v1735_v22  ;;  %v1799_v27 = vld [vmem:[#allocation2 + $0x122] sm:$0xff]  ;;  %v1768_v6 = vmax.f32 %v1704_v61, %v1736_v15  ;;  %v1800_v33 = vld [vmem:[#allocation2 + $0x12a] sm:$0xff] }
  0xe4   : > { %v1892_v30 = vmax.f32 %v1828_v25, %v1860_v26  ;;  %v1862_v57 = vld [vmem:[#allocation2 + $0x113] sm:$0xff]  ;;  %2565 = vst.msk [vmem:[%s2882_s17 + $0x2a0] sm:$0xff] %vm402_vm1, %v1955_v16  ;;  %v1863_v44 = vld [vmem:[#allocation2 + $0x123] sm:$0xff]  ;;  %v1957_v52 = vmax.f32 %v1893_v62, %v1925_v8  ;;  %v1864_v3 = vld [vmem:[#allocation2 + $0x12b] sm:$0xff] }
  0xe5   : > { %v1830_v10 = vmax.f32 %v1766_v48, %v1798_v23  ;;  %v1926_v42 = vld [vmem:[#allocation2 + $0x114] sm:$0xff]  ;;  %v1831_v5 = vmax.f32 %v1767_v58, %v1799_v27  ;;  %v1927_v7 = vld [vmem:[#allocation2 + $0x124] sm:$0xff]  ;;  %v1832_v53 = vmax.f32 %v1768_v6, %v1800_v33  ;;  %v1928_v21 = vld [vmem:[#allocation2 + $0x12c] sm:$0xff] }
  0xe6   : > { %v1956_v2 = vmax.f32 %v1892_v30, %v1924_v49  ;;  %v1705_v9 = vld [vmem:[#allocation2 + $0x138] sm:$0xff]  ;;  %v1706_v18 = vld [vmem:[#allocation2 + $0x140] sm:$0xff]  ;;  %2567 = vst.msk [vmem:[%s2882_s17 + $0x2b0] sm:$0xff] %vm402_vm1, %v1957_v52  ;;  %v2001_v51 = vld [vmem:[%s2735_s13 + $0x8] sm:$0xff] }
  0xe7   : > { %v1894_v63 = vmax.f32 %v1830_v10, %v1862_v57  ;;  %v1737_v4 = vld [vmem:[#allocation2 + $0x139] sm:$0xff]  ;;  %v1895_v12 = vmax.f32 %v1831_v5, %v1863_v44  ;;  %v1738_v31 = vld [vmem:[#allocation2 + $0x141] sm:$0xff]  ;;  %v1896_v60 = vmax.f32 %v1832_v53, %v1864_v3  ;;  %2578 = vst.msk [vmem:[%s2882_s17 + $0x308] sm:$0xff] %vm402_vm1, %v2001_v51  ;;  %v2002_v1 = vld [vmem:[%s2735_s13 + $0x10] sm:$0xff] }
  0xe8   : > { %2566 = vst.msk [vmem:[%s2882_s17 + $0x2a8] sm:$0xff] %vm402_vm1, %v1956_v2  ;;  %v1769_v14 = vmax.f32 %v1705_v9, %v1737_v4  ;;  %v1801_v32 = vld [vmem:[#allocation2 + $0x13a] sm:$0xff]  ;;  %v1770_v37 = vmax.f32 %v1706_v18, %v1738_v31  ;;  %v1802_v0 = vld [vmem:[#allocation2 + $0x142] sm:$0xff]  ;;  %2579 = vst.msk [vmem:[%s2882_s17 + $0x310] sm:$0xff] %vm402_vm1, %v2002_v1 }
  0xe9   : > { %v1958_v20 = vmax.f32 %v1894_v63, %v1926_v42  ;;  %v1865_v29 = vld [vmem:[#allocation2 + $0x13b] sm:$0xff]  ;;  %v1959_v11 = vmax.f32 %v1895_v12, %v1927_v7  ;;  %v1866_v54 = vld [vmem:[#allocation2 + $0x143] sm:$0xff]  ;;  %v1960_v35 = vmax.f32 %v1896_v60, %v1928_v21  ;;  %v2006_v28 = vld [vmem:[%s2735_s13 + $0x30] sm:$0xff] }
  0xea   : > { %v1833_v34 = vmax.f32 %v1769_v14, %v1801_v32  ;;  %v2000_v59 = vld [vmem:[%s2735_s13] sm:$0xff]  ;;  %v2003_v39 = vld [vmem:[%s2735_s13 + $0x18] sm:$0xff]  ;;  %v1834_v45 = vmax.f32 %v1770_v37, %v1802_v0  ;;  %v2005_v19 = vld [vmem:[%s2735_s13 + $0x28] sm:$0xff]  ;;  %2583 = vst.msk [vmem:[%s2882_s17 + $0x330] sm:$0xff] %vm402_vm1, %v2006_v28 }
  0xeb   : > { %2568 = vst.msk [vmem:[%s2882_s17 + $0x2b8] sm:$0xff] %vm402_vm1, %v1958_v20  ;;  %v1929_v36 = vld [vmem:[#allocation2 + $0x13c] sm:$0xff]  ;;  %2577 = vst.msk [vmem:[%s2882_s17 + $0x300] sm:$0xff] %vm402_vm1, %v2000_v59  ;;  %v1930_v26 = vld [vmem:[#allocation2 + $0x144] sm:$0xff] }
  0xec   : > { %v2004_v17 = vld [vmem:[%s2735_s13 + $0x20] sm:$0xff]  ;;  %v1897_v13 = vmax.f32 %v1833_v34, %v1865_v29  ;;  %2580 = vst.msk [vmem:[%s2882_s17 + $0x318] sm:$0xff] %vm402_vm1, %v2003_v39  ;;  %v2007_v55 = vld [vmem:[%s2735_s13 + $0x38] sm:$0xff]  ;;  %2569 = vst.msk [vmem:[%s2882_s17 + $0x2c0] sm:$0xff] %vm402_vm1, %v1959_v11  ;;  %v1898_v47 = vmax.f32 %v1834_v45, %v1866_v54 }
  0xed   : > { %2581 = vst.msk [vmem:[%s2882_s17 + $0x320] sm:$0xff] %vm402_vm1, %v2004_v17  ;;  %2582 = vst.msk [vmem:[%s2882_s17 + $0x328] sm:$0xff] %vm402_vm1, %v2005_v19  ;;  %v2008_v40 = vld [vmem:[%s2735_s13 + $0x40] sm:$0xff]  ;;  %v2009_v43 = vld [vmem:[%s2735_s13 + $0x48] sm:$0xff] }
  0xee   : > { %2584 = vst.msk [vmem:[%s2882_s17 + $0x338] sm:$0xff] %vm402_vm1, %v2007_v55  ;;  %v2010_v46 = vld [vmem:[%s2735_s13 + $0x50] sm:$0xff]  ;;  %2570 = vst.msk [vmem:[%s2882_s17 + $0x2c8] sm:$0xff] %vm402_vm1, %v1960_v35  ;;  %v1961_v25 = vmax.f32 %v1897_v13, %v1929_v36  ;;  %v2011_v41 = vld [vmem:[%s2735_s13 + $0x58] sm:$0xff]  ;;  %v1962_v56 = vmax.f32 %v1898_v47, %v1930_v26 }
  0xef   : > { %2585 = vst.msk [vmem:[%s2882_s17 + $0x340] sm:$0xff] %vm402_vm1, %v2008_v40  ;;  %2586 = vst.msk [vmem:[%s2882_s17 + $0x348] sm:$0xff] %vm402_vm1, %v2009_v43  ;;  %v2012_v38 = vld [vmem:[%s2735_s13 + $0x60] sm:$0xff]  ;;  %v2013_v49 = vld [vmem:[%s2735_s13 + $0x68] sm:$0xff] }
  0xf0   : > { %2587 = vst.msk [vmem:[%s2882_s17 + $0x350] sm:$0xff] %vm402_vm1, %v2010_v46  ;;  %2588 = vst.msk [vmem:[%s2882_s17 + $0x358] sm:$0xff] %vm402_vm1, %v2011_v41  ;;  %v2014_v50 = vld [vmem:[%s2735_s13 + $0x70] sm:$0xff]  ;;  %v2015_v24 = vld [vmem:[%s2735_s13 + $0x78] sm:$0xff] }
  0xf1   : > { %2589 = vst.msk [vmem:[%s2882_s17 + $0x360] sm:$0xff] %vm402_vm1, %v2012_v38  ;;  %2590 = vst.msk [vmem:[%s2882_s17 + $0x368] sm:$0xff] %vm402_vm1, %v2013_v49  ;;  %v2016_v48 = vld [vmem:[%s2735_s13 + $0x80] sm:$0xff]  ;;  %v2017_v16 = vld [vmem:[%s2735_s13 + $0x88] sm:$0xff] }
  0xf2   : > { %2571 = vst.msk [vmem:[%s2882_s17 + $0x2d0] sm:$0xff] %vm402_vm1, %v1961_v25  ;;  %2591 = vst.msk [vmem:[%s2882_s17 + $0x370] sm:$0xff] %vm402_vm1, %v2014_v50  ;;  %v2018_v30 = vld [vmem:[%s2735_s13 + $0x90] sm:$0xff]  ;;  %v2019_v8 = vld [vmem:[%s2735_s13 + $0x98] sm:$0xff] }
  0xf3   : > { %2592 = vst.msk [vmem:[%s2882_s17 + $0x378] sm:$0xff] %vm402_vm1, %v2015_v24  ;;  %2593 = vst.msk [vmem:[%s2882_s17 + $0x380] sm:$0xff] %vm402_vm1, %v2016_v48  ;;  %v2020_v23 = vld [vmem:[%s2735_s13 + $0xa0] sm:$0xff]  ;;  %v2021_v22 = vld [vmem:[%s2735_s13 + $0xa8] sm:$0xff] }
  0xf4   : > { %2594 = vst.msk [vmem:[%s2882_s17 + $0x388] sm:$0xff] %vm402_vm1, %v2017_v16  ;;  %2595 = vst.msk [vmem:[%s2882_s17 + $0x390] sm:$0xff] %vm402_vm1, %v2018_v30  ;;  %v2022_v62 = vld [vmem:[%s2735_s13 + $0xb0] sm:$0xff]  ;;  %v2023_v10 = vld [vmem:[%s2735_s13 + $0xb8] sm:$0xff] }
  0xf5   : > { %2596 = vst.msk [vmem:[%s2882_s17 + $0x398] sm:$0xff] %vm402_vm1, %v2019_v8  ;;  %2572 = vst.msk [vmem:[%s2882_s17 + $0x2d8] sm:$0xff] %vm402_vm1, %v1962_v56  ;;  %v2024_v57 = vld [vmem:[%s2735_s13 + $0xc0] sm:$0xff]  ;;  %v2025_v58 = vld [vmem:[%s2735_s13 + $0xc8] sm:$0xff] }
  0xf6   : > { %2597 = vst.msk [vmem:[%s2882_s17 + $0x3a0] sm:$0xff] %vm402_vm1, %v2020_v23  ;;  %2598 = vst.msk [vmem:[%s2882_s17 + $0x3a8] sm:$0xff] %vm402_vm1, %v2021_v22  ;;  %v2026_v61 = vld [vmem:[%s2735_s13 + $0xd0] sm:$0xff]  ;;  %v2027_v15 = vld [vmem:[%s2735_s13 + $0xd8] sm:$0xff] }
  0xf7   : > { %2599 = vst.msk [vmem:[%s2882_s17 + $0x3b0] sm:$0xff] %vm402_vm1, %v2022_v62  ;;  %2600 = vst.msk [vmem:[%s2882_s17 + $0x3b8] sm:$0xff] %vm402_vm1, %v2023_v10  ;;  %v2028_v2 = vld [vmem:[%s2735_s13 + $0xe0] sm:$0xff]  ;;  %v2029_v42 = vld [vmem:[%s2735_s13 + $0xe8] sm:$0xff] }
  0xf8   : > { %2601 = vst.msk [vmem:[%s2882_s17 + $0x3c0] sm:$0xff] %vm402_vm1, %v2024_v57  ;;  %2602 = vst.msk [vmem:[%s2882_s17 + $0x3c8] sm:$0xff] %vm402_vm1, %v2025_v58  ;;  %v2030_v27 = vld [vmem:[%s2735_s13 + $0xf0] sm:$0xff]  ;;  %v2031_v44 = vld [vmem:[%s2735_s13 + $0xf8] sm:$0xff] }
  0xf9   : > { %2603 = vst.msk [vmem:[%s2882_s17 + $0x3d0] sm:$0xff] %vm402_vm1, %v2026_v61  ;;  %2604 = vst.msk [vmem:[%s2882_s17 + $0x3d8] sm:$0xff] %vm402_vm1, %v2027_v15 }
  0xfa   : > { %2605 = vst.msk [vmem:[%s2882_s17 + $0x3e0] sm:$0xff] %vm402_vm1, %v2028_v2  ;;  %2606 = vst.msk [vmem:[%s2882_s17 + $0x3e8] sm:$0xff] %vm402_vm1, %v2029_v42 }
  0xfb   : > { %2607 = vst.msk [vmem:[%s2882_s17 + $0x3f0] sm:$0xff] %vm402_vm1, %v2030_v27  ;;  %2608 = vst.msk [vmem:[%s2882_s17 + $0x3f8] sm:$0xff] %vm402_vm1, %v2031_v44 }
  0xfc PF: > { %s11_s8 = sadd.s32 1, %s2660_s8   ;;  %s3653_s6 = smov %s2656_s7 }
  0xfd   : > { %p8_p5 = scmp.ge.s32.totalorder %s11_s8, 4   ;;  %s3654_s7 = smov %s3656_s9 }
  0xff   :  { %10 = sbr.rel (!%p8_p5) target bundleno = 2 (0x2), region = 85 }

</bundles_post_ra>
